<compile_context>
chip_gen: v7x
topology: tpu7x:2x2x1
jax: 0.10.0
libtpu: 0.0.40
codegen_flags: <defaults>
</compile_context>

<pallas_src>
import jax
import jax.numpy as jnp
from jax.experimental import pallas as pl
from jax.experimental.pallas import tpu as pltpu

# ---- model hyper-parameters (consistent with img_size=(64,64)) --------------
PATCH = 32                                # backbone overall stride
CIN   = 3                                 # RGB
CFEAT = 128                               # backbone feature channels
IMG_H = IMG_W = 64                        # args.img_size
SPAT  = (IMG_H // 32) * (IMG_W // 32)     # SAFA in_channel = 4
NUM_H = 4                                 # SAFA aggregation heads
HID   = max(SPAT // 2, 1)                 # SAFA hidden dim per head
PDIM  = CIN * PATCH * PATCH               # flattened patch length (3072)
OUTD  = NUM_H * CFEAT                     # lane-dense kernel output width (512)
BBLK_MAX = 256                            # images per grid step (review: 64 -> 256)
W_SZ = NUM_H * SPAT * SPAT                # pre-composed SAFA weights (64 scalars)
B_SZ = NUM_H * SPAT                       # pre-composed SAFA biases  (16 scalars)


def _cdiv(a, b):
    return -(-a // b)


def _rup(a, b):
    return _cdiv(a, b) * b


def _choose_block(batch):
    """Pick (bblk, bpad): multiple of 8, >=2 grid steps when possible, low pad waste."""
    b8 = _rup(max(batch, 1), 8)           # sublane-aligned per-spatial chunks
    if b8 <= 8:
        nsteps = 1                        # too small to split across cores
    else:
        nsteps = max(2, _cdiv(b8, BBLK_MAX))   # >=2 steps so v7x megacore shards
    bblk = _rup(_cdiv(b8, nsteps), 8)
    bpad = _rup(b8, bblk)
    return bblk, bpad


def _kernel(x_ref, wemb_ref, bemb_ref, wsafa_ref, out_ref):
    # x_ref:     (SPAT, bblk, PDIM) bf16, spatial-major patch rows
    # wemb_ref:  (PDIM, CFEAT) bf16
    # bemb_ref:  (1, CFEAT) f32
    # wsafa_ref: (W_SZ + B_SZ,) f32 in SMEM  (pre-composed FC1∘FC2)
    # out_ref:   (bblk, OUTD) f32, lane-dense (head-major along lanes)
    bblk = x_ref.shape[1]
    wemb = wemb_ref[...]
    bias = jnp.broadcast_to(bemb_ref[...], (bblk, CFEAT))   # hoisted once

    # --- backbone stem: per-spatial-position patch-embed matmul + ReLU ------
    chunks = []            # SPAT x (bblk, CFEAT) f32, lane-dense
    pools = []             # SPAT x (bblk, 1)     f32, channel-max pool
    for s in range(SPAT):
        f = jnp.dot(x_ref[s], wemb, preferred_element_type=jnp.float32)
        f = jnp.maximum(f + bias, 0.0)
        chunks.append(f)
        pools.append(jnp.max(f, axis=-1, keepdims=True))

    # --- SAFA with pre-composed FCs, unrolled spatial aggregation -----------
    # att[b,n,t] = sum_s pool[b,s] * Weff[n,s,t] + beff[n,t]
    # agg[b,n,:] = sum_t att[b,n,t] * feat[b,t,:]
    aggs = []
    sq = None
    for n in range(NUM_H):
        acc = None
        for t in range(SPAT):
            col = pools[0] * wsafa_ref[n * SPAT * SPAT + t]
            for s in range(1, SPAT):
                col = col + pools[s] * wsafa_ref[n * SPAT * SPAT + s * SPAT + t]
            col = col + wsafa_ref[W_SZ + n * SPAT + t]        # (bblk, 1)
            term = col * chunks[t]                            # (bblk, CFEAT)
            acc = term if acc is None else acc + term
        aggs.append(acc)
        ssq = jnp.sum(acc * acc, axis=-1, keepdims=True)      # (bblk, 1)
        sq = ssq if sq is None else sq + ssq

    # --- F.normalize(dim=-1): x / max(||x||, 1e-12) == x * rsqrt(max(sq,1e-24))
    inv = jax.lax.rsqrt(jnp.maximum(sq, 1e-24))               # EUP rsqrt
    for n in range(NUM_H):
        out_ref[:, n * CFEAT:(n + 1) * CFEAT] = aggs[n] * inv


def make_timm_model(params):
    """share=True TimmModel: one backbone + SAFA applied to both views."""
    wemb, bemb, w1, b1, w2, b2 = params
    wemb_bf16 = wemb.astype(jnp.bfloat16)

    # Pre-compose the two SAFA FCs (exact: no nonlinearity between them).
    weff = jnp.einsum('nsk,nkt->nst', w1, w2)                 # (N, S, S)
    beff = jnp.einsum('nk,nkt->nt', b1, w2) + b2              # (N, S)
    wsafa = jnp.concatenate(
        [weff.reshape(-1), beff.reshape(-1)]).astype(jnp.float32)   # (80,)

    def _backbone(img):
        # img: NCHW float32, (B, CIN, H, W)
        B, Cin, H, W = img.shape
        hp, wp = H // PATCH, W // PATCH
        assert hp * wp == SPAT and Cin == CIN

        # Patchify (XLA glue): NCHW -> (SPAT, B, PDIM), patch flattened (c,kh,kw),
        # spatial-major so each per-s row group in a block is contiguous/aligned.
        p = img.reshape(B, Cin, hp, PATCH, wp, PATCH)
        p = p.transpose(2, 4, 0, 1, 3, 5).reshape(SPAT, B, PDIM)
        p = p.astype(jnp.bfloat16)

        bblk, bpad = _choose_block(B)
        if bpad != B:
            p = jnp.pad(p, ((0, 0), (0, bpad - B), (0, 0)))
        grid = bpad // bblk

        out = pl.pallas_call(
            _kernel,
            out_shape=jax.ShapeDtypeStruct((bpad, OUTD), jnp.float32),
            grid_spec=pltpu.PrefetchScalarGridSpec(
                num_scalar_prefetch=0,
                grid=(grid,),
                in_specs=[
                    pl.BlockSpec((SPAT, bblk, PDIM), lambda i: (0, i, 0)),
                    pl.BlockSpec((PDIM, CFEAT), lambda i: (0, 0)),
                    pl.BlockSpec((1, CFEAT), lambda i: (0, 0)),
                    pl.BlockSpec(memory_space=pltpu.MemorySpace.SMEM),
                ],
                out_specs=pl.BlockSpec((bblk, OUTD), lambda i: (i, 0)),
            ),
            compiler_params=pltpu.CompilerParams(
                dimension_semantics=("parallel",),
                vmem_limit_bytes=48 << 20,   # v5e default (16 MiB) too small;
                                             # stays under v7x's 64 MiB physical
            ),
        )(p, wemb_bf16, bemb, wsafa)

        out = out[:B]
        # kernel output is head-major per row: (B, N, C) -> (B, C, N) -> (B, C*N)
        # matching torch.matmul(feat, att).flatten(1); L2 norm is permutation-invariant.
        return out.reshape(B, NUM_H, CFEAT).transpose(0, 2, 1).reshape(B, CFEAT * NUM_H)

    backbone = jax.jit(_backbone)

    def forward(img1, img2=None):
        if img2 is not None:
            B = img1.shape[0]
            both = jnp.concatenate([img1, img2], axis=0)   # share=True: one kernel call
            out = backbone(both)
            return out[:B], out[B:]                        # already L2-normalized
        return backbone(img1)

    return forward


def init_params(key):
    kw, kb, k1, kb1, k2, kb2 = jax.random.split(key, 6)
    wemb = 0.02 * jax.random.normal(kw, (PDIM, CFEAT), jnp.float32)
    bemb = 0.02 * jax.random.normal(kb, (1, CFEAT), jnp.float32)
    w1 = 0.1 * jax.random.normal(k1, (NUM_H, SPAT, HID), jnp.float32)
    b1 = 0.1 * jax.random.normal(kb1, (NUM_H, HID), jnp.float32)
    w2 = 0.1 * jax.random.normal(k2, (NUM_H, HID, SPAT), jnp.float32)
    b2 = 0.1 * jax.random.normal(kb2, (NUM_H, SPAT), jnp.float32)
    return (wemb, bemb, w1, b1, w2, b2)


if __name__ == "__main__":
    root = jax.random.PRNGKey(0)
    k_img1, k_img2, k_par = jax.random.split(root, 3)

    B = 2
    img1 = jax.random.normal(k_img1, (B, CIN, IMG_H, IMG_W), jnp.float32)
    img2 = jax.random.normal(k_img2, (B, CIN, IMG_H, IMG_W), jnp.float32)

    model = make_timm_model(init_params(k_par))
    f1, f2 = model(img1, img2)          # share=True branch: (normed, normed)
    (f1, f2) = jax.block_until_ready((f1, f2))

    assert f1.shape == (B, CFEAT * NUM_H) and f2.shape == (B, CFEAT * NUM_H)
    # each row must be L2-normalized (F.normalize semantics)
    n1 = jnp.linalg.norm(f1, axis=-1)
    n2 = jnp.linalg.norm(f2, axis=-1)
    assert bool(jnp.all(jnp.abs(n1 - 1.0) < 1e-4)) and bool(jnp.all(jnp.abs(n2 - 1.0) < 1e-4))

    print("KERNEL_OK")
</pallas_src>

<mosaic_0001>
module attributes {stable_mosaic.version = 11 : i64} {
  func.func @_kernel(%arg0: i32, %arg1: memref<4x8x3072xbf16, #tpu.memory_space<vmem>>, %arg2: memref<3072x128xbf16, #tpu.memory_space<vmem>>, %arg3: memref<1x128xf32, #tpu.memory_space<vmem>>, %arg4: memref<80xf32, #tpu.memory_space<smem>>, %arg5: memref<8x512xf32, #tpu.memory_space<vmem>>) attributes {dimension_semantics = [#tpu.dimension_semantics<parallel>], iteration_bounds = array<i64: 1>, scalar_prefetch = 0 : i64, scratch_operands = 0 : i64, tpu.core_type = #tpu.core_type<tc>, window_params = [{transform_indices = @transform_0, window_bounds = array<i64: 4, 8, 3072>}, {pipeline_mode = #tpu.pipeline_mode<synchronous>, transform_indices = @transform_1, window_bounds = array<i64: 3072, 128>}, {pipeline_mode = #tpu.pipeline_mode<synchronous>, transform_indices = @transform_2, window_bounds = array<i64: 1, 128>}, {transform_indices = @transform_3, window_bounds = array<i64: 80>}, {transform_indices = @transform_4, window_bounds = array<i64: 8, 512>}]} {
    %c0 = arith.constant 0 : index
    %c0_0 = arith.constant 0 : index
    %0 = vector.load %arg2[%c0, %c0_0] : memref<3072x128xbf16, #tpu.memory_space<vmem>>, vector<3072x128xbf16>
    %c0_1 = arith.constant 0 : index
    %c0_2 = arith.constant 0 : index
    %1 = vector.load %arg3[%c0_1, %c0_2] : memref<1x128xf32, #tpu.memory_space<vmem>>, vector<1x128xf32>
    %2 = vector.shape_cast %1 : vector<1x128xf32> to vector<1x128xf32>
    %3 = vector.broadcast %2 : vector<1x128xf32> to vector<8x128xf32>
    %c0_3 = arith.constant 0 : index
    %c0_4 = arith.constant 0 : index
    %c0_5 = arith.constant 0 : index
    %4 = vector.load %arg1[%c0_3, %c0_4, %c0_5] : memref<4x8x3072xbf16, #tpu.memory_space<vmem>>, vector<1x8x3072xbf16>
    %5 = vector.shape_cast %4 : vector<1x8x3072xbf16> to vector<8x3072xbf16>
    %cst = arith.constant dense<0.000000e+00> : vector<8x128xf32>
    %6 = tpu.matmul %5, %0, %cst {dimension_numbers = #tpu.dot_dimension_numbers<[1], [0], [0], [1], [0, 0, 1, 1], [], []>} : vector<8x3072xbf16>, vector<3072x128xbf16>, vector<8x128xf32> -> vector<8x128xf32>
    %7 = arith.addf %6, %3 : vector<8x128xf32>
    %cst_6 = arith.constant 0.000000e+00 : f32
    %8 = vector.broadcast %cst_6 : f32 to vector<8x128xf32>
    %9 = arith.maximumf %7, %8 : vector<8x128xf32>
    %cst_7 = arith.constant dense<0xFF800000> : vector<8xf32>
    %10 = vector.multi_reduction <maximumf>, %9, %cst_7 [1] : vector<8x128xf32> to vector<8xf32>
    %11 = vector.shape_cast %10 : vector<8xf32> to vector<8x1xf32>
    %c1 = arith.constant 1 : index
    %c0_8 = arith.constant 0 : index
    %c0_9 = arith.constant 0 : index
    %12 = vector.load %arg1[%c1, %c0_8, %c0_9] : memref<4x8x3072xbf16, #tpu.memory_space<vmem>>, vector<1x8x3072xbf16>
    %13 = vector.shape_cast %12 : vector<1x8x3072xbf16> to vector<8x3072xbf16>
    %cst_10 = arith.constant dense<0.000000e+00> : vector<8x128xf32>
    %14 = tpu.matmul %13, %0, %cst_10 {dimension_numbers = #tpu.dot_dimension_numbers<[1], [0], [0], [1], [0, 0, 1, 1], [], []>} : vector<8x3072xbf16>, vector<3072x128xbf16>, vector<8x128xf32> -> vector<8x128xf32>
    %15 = arith.addf %14, %3 : vector<8x128xf32>
    %cst_11 = arith.constant 0.000000e+00 : f32
    %16 = vector.broadcast %cst_11 : f32 to vector<8x128xf32>
    %17 = arith.maximumf %15, %16 : vector<8x128xf32>
    %cst_12 = arith.constant dense<0xFF800000> : vector<8xf32>
    %18 = vector.multi_reduction <maximumf>, %17, %cst_12 [1] : vector<8x128xf32> to vector<8xf32>
    %19 = vector.shape_cast %18 : vector<8xf32> to vector<8x1xf32>
    %c2 = arith.constant 2 : index
    %c0_13 = arith.constant 0 : index
    %c0_14 = arith.constant 0 : index
    %20 = vector.load %arg1[%c2, %c0_13, %c0_14] : memref<4x8x3072xbf16, #tpu.memory_space<vmem>>, vector<1x8x3072xbf16>
    %21 = vector.shape_cast %20 : vector<1x8x3072xbf16> to vector<8x3072xbf16>
    %cst_15 = arith.constant dense<0.000000e+00> : vector<8x128xf32>
    %22 = tpu.matmul %21, %0, %cst_15 {dimension_numbers = #tpu.dot_dimension_numbers<[1], [0], [0], [1], [0, 0, 1, 1], [], []>} : vector<8x3072xbf16>, vector<3072x128xbf16>, vector<8x128xf32> -> vector<8x128xf32>
    %23 = arith.addf %22, %3 : vector<8x128xf32>
    %cst_16 = arith.constant 0.000000e+00 : f32
    %24 = vector.broadcast %cst_16 : f32 to vector<8x128xf32>
    %25 = arith.maximumf %23, %24 : vector<8x128xf32>
    %cst_17 = arith.constant dense<0xFF800000> : vector<8xf32>
    %26 = vector.multi_reduction <maximumf>, %25, %cst_17 [1] : vector<8x128xf32> to vector<8xf32>
    %27 = vector.shape_cast %26 : vector<8xf32> to vector<8x1xf32>
    %c3 = arith.constant 3 : index
    %c0_18 = arith.constant 0 : index
    %c0_19 = arith.constant 0 : index
    %28 = vector.load %arg1[%c3, %c0_18, %c0_19] : memref<4x8x3072xbf16, #tpu.memory_space<vmem>>, vector<1x8x3072xbf16>
    %29 = vector.shape_cast %28 : vector<1x8x3072xbf16> to vector<8x3072xbf16>
    %cst_20 = arith.constant dense<0.000000e+00> : vector<8x128xf32>
    %30 = tpu.matmul %29, %0, %cst_20 {dimension_numbers = #tpu.dot_dimension_numbers<[1], [0], [0], [1], [0, 0, 1, 1], [], []>} : vector<8x3072xbf16>, vector<3072x128xbf16>, vector<8x128xf32> -> vector<8x128xf32>
    %31 = arith.addf %30, %3 : vector<8x128xf32>
    %cst_21 = arith.constant 0.000000e+00 : f32
    %32 = vector.broadcast %cst_21 : f32 to vector<8x128xf32>
    %33 = arith.maximumf %31, %32 : vector<8x128xf32>
    %cst_22 = arith.constant dense<0xFF800000> : vector<8xf32>
    %34 = vector.multi_reduction <maximumf>, %33, %cst_22 [1] : vector<8x128xf32> to vector<8xf32>
    %35 = vector.shape_cast %34 : vector<8xf32> to vector<8x1xf32>
    %c0_23 = arith.constant 0 : index
    %36 = memref.load %arg4[%c0_23] : memref<80xf32, #tpu.memory_space<smem>>
    %37 = vector.broadcast %36 : f32 to vector<8x1xf32>
    %38 = arith.mulf %11, %37 : vector<8x1xf32>
    %c4 = arith.constant 4 : index
    %39 = memref.load %arg4[%c4] : memref<80xf32, #tpu.memory_space<smem>>
    %40 = vector.broadcast %39 : f32 to vector<8x1xf32>
    %41 = arith.mulf %19, %40 : vector<8x1xf32>
    %42 = arith.addf %38, %41 : vector<8x1xf32>
    %c8 = arith.constant 8 : index
    %43 = memref.load %arg4[%c8] : memref<80xf32, #tpu.memory_space<smem>>
    %44 = vector.broadcast %43 : f32 to vector<8x1xf32>
    %45 = arith.mulf %27, %44 : vector<8x1xf32>
    %46 = arith.addf %42, %45 : vector<8x1xf32>
    %c12 = arith.constant 12 : index
    %47 = memref.load %arg4[%c12] : memref<80xf32, #tpu.memory_space<smem>>
    %48 = vector.broadcast %47 : f32 to vector<8x1xf32>
    %49 = arith.mulf %35, %48 : vector<8x1xf32>
    %50 = arith.addf %46, %49 : vector<8x1xf32>
    %c64 = arith.constant 64 : index
    %51 = memref.load %arg4[%c64] : memref<80xf32, #tpu.memory_space<smem>>
    %52 = vector.broadcast %51 : f32 to vector<8x1xf32>
    %53 = arith.addf %50, %52 : vector<8x1xf32>
    %54 = vector.broadcast %53 : vector<8x1xf32> to vector<8x128xf32>
    %55 = arith.mulf %54, %9 : vector<8x128xf32>
    %c1_24 = arith.constant 1 : index
    %56 = memref.load %arg4[%c1_24] : memref<80xf32, #tpu.memory_space<smem>>
    %57 = vector.broadcast %56 : f32 to vector<8x1xf32>
    %58 = arith.mulf %11, %57 : vector<8x1xf32>
    %c5 = arith.constant 5 : index
    %59 = memref.load %arg4[%c5] : memref<80xf32, #tpu.memory_space<smem>>
    %60 = vector.broadcast %59 : f32 to vector<8x1xf32>
    %61 = arith.mulf %19, %60 : vector<8x1xf32>
    %62 = arith.addf %58, %61 : vector<8x1xf32>
    %c9 = arith.constant 9 : index
    %63 = memref.load %arg4[%c9] : memref<80xf32, #tpu.memory_space<smem>>
    %64 = vector.broadcast %63 : f32 to vector<8x1xf32>
    %65 = arith.mulf %27, %64 : vector<8x1xf32>
    %66 = arith.addf %62, %65 : vector<8x1xf32>
    %c13 = arith.constant 13 : index
    %67 = memref.load %arg4[%c13] : memref<80xf32, #tpu.memory_space<smem>>
    %68 = vector.broadcast %67 : f32 to vector<8x1xf32>
    %69 = arith.mulf %35, %68 : vector<8x1xf32>
    %70 = arith.addf %66, %69 : vector<8x1xf32>
    %c65 = arith.constant 65 : index
    %71 = memref.load %arg4[%c65] : memref<80xf32, #tpu.memory_space<smem>>
    %72 = vector.broadcast %71 : f32 to vector<8x1xf32>
    %73 = arith.addf %70, %72 : vector<8x1xf32>
    %74 = vector.broadcast %73 : vector<8x1xf32> to vector<8x128xf32>
    %75 = arith.mulf %74, %17 : vector<8x128xf32>
    %76 = arith.addf %55, %75 : vector<8x128xf32>
    %c2_25 = arith.constant 2 : index
    %77 = memref.load %arg4[%c2_25] : memref<80xf32, #tpu.memory_space<smem>>
    %78 = vector.broadcast %77 : f32 to vector<8x1xf32>
    %79 = arith.mulf %11, %78 : vector<8x1xf32>
    %c6 = arith.constant 6 : index
    %80 = memref.load %arg4[%c6] : memref<80xf32, #tpu.memory_space<smem>>
    %81 = vector.broadcast %80 : f32 to vector<8x1xf32>
    %82 = arith.mulf %19, %81 : vector<8x1xf32>
    %83 = arith.addf %79, %82 : vector<8x1xf32>
    %c10 = arith.constant 10 : index
    %84 = memref.load %arg4[%c10] : memref<80xf32, #tpu.memory_space<smem>>
    %85 = vector.broadcast %84 : f32 to vector<8x1xf32>
    %86 = arith.mulf %27, %85 : vector<8x1xf32>
    %87 = arith.addf %83, %86 : vector<8x1xf32>
    %c14 = arith.constant 14 : index
    %88 = memref.load %arg4[%c14] : memref<80xf32, #tpu.memory_space<smem>>
    %89 = vector.broadcast %88 : f32 to vector<8x1xf32>
    %90 = arith.mulf %35, %89 : vector<8x1xf32>
    %91 = arith.addf %87, %90 : vector<8x1xf32>
    %c66 = arith.constant 66 : index
    %92 = memref.load %arg4[%c66] : memref<80xf32, #tpu.memory_space<smem>>
    %93 = vector.broadcast %92 : f32 to vector<8x1xf32>
    %94 = arith.addf %91, %93 : vector<8x1xf32>
    %95 = vector.broadcast %94 : vector<8x1xf32> to vector<8x128xf32>
    %96 = arith.mulf %95, %25 : vector<8x128xf32>
    %97 = arith.addf %76, %96 : vector<8x128xf32>
    %c3_26 = arith.constant 3 : index
    %98 = memref.load %arg4[%c3_26] : memref<80xf32, #tpu.memory_space<smem>>
    %99 = vector.broadcast %98 : f32 to vector<8x1xf32>
    %100 = arith.mulf %11, %99 : vector<8x1xf32>
    %c7 = arith.constant 7 : index
    %101 = memref.load %arg4[%c7] : memref<80xf32, #tpu.memory_space<smem>>
    %102 = vector.broadcast %101 : f32 to vector<8x1xf32>
    %103 = arith.mulf %19, %102 : vector<8x1xf32>
    %104 = arith.addf %100, %103 : vector<8x1xf32>
    %c11 = arith.constant 11 : index
    %105 = memref.load %arg4[%c11] : memref<80xf32, #tpu.memory_space<smem>>
    %106 = vector.broadcast %105 : f32 to vector<8x1xf32>
    %107 = arith.mulf %27, %106 : vector<8x1xf32>
    %108 = arith.addf %104, %107 : vector<8x1xf32>
    %c15 = arith.constant 15 : index
    %109 = memref.load %arg4[%c15] : memref<80xf32, #tpu.memory_space<smem>>
    %110 = vector.broadcast %109 : f32 to vector<8x1xf32>
    %111 = arith.mulf %35, %110 : vector<8x1xf32>
    %112 = arith.addf %108, %111 : vector<8x1xf32>
    %c67 = arith.constant 67 : index
    %113 = memref.load %arg4[%c67] : memref<80xf32, #tpu.memory_space<smem>>
    %114 = vector.broadcast %113 : f32 to vector<8x1xf32>
    %115 = arith.addf %112, %114 : vector<8x1xf32>
    %116 = vector.broadcast %115 : vector<8x1xf32> to vector<8x128xf32>
    %117 = arith.mulf %116, %33 : vector<8x128xf32>
    %118 = arith.addf %97, %117 : vector<8x128xf32>
    %119 = arith.mulf %118, %118 : vector<8x128xf32>
    %cst_27 = arith.constant dense<0.000000e+00> : vector<8xf32>
    %120 = vector.multi_reduction <add>, %119, %cst_27 [1] : vector<8x128xf32> to vector<8xf32>
    %121 = vector.shape_cast %120 : vector<8xf32> to vector<8x1xf32>
    %c16 = arith.constant 16 : index
    %122 = memref.load %arg4[%c16] : memref<80xf32, #tpu.memory_space<smem>>
    %123 = vector.broadcast %122 : f32 to vector<8x1xf32>
    %124 = arith.mulf %11, %123 : vector<8x1xf32>
    %c20 = arith.constant 20 : index
    %125 = memref.load %arg4[%c20] : memref<80xf32, #tpu.memory_space<smem>>
    %126 = vector.broadcast %125 : f32 to vector<8x1xf32>
    %127 = arith.mulf %19, %126 : vector<8x1xf32>
    %128 = arith.addf %124, %127 : vector<8x1xf32>
    %c24 = arith.constant 24 : index
    %129 = memref.load %arg4[%c24] : memref<80xf32, #tpu.memory_space<smem>>
    %130 = vector.broadcast %129 : f32 to vector<8x1xf32>
    %131 = arith.mulf %27, %130 : vector<8x1xf32>
    %132 = arith.addf %128, %131 : vector<8x1xf32>
    %c28 = arith.constant 28 : index
    %133 = memref.load %arg4[%c28] : memref<80xf32, #tpu.memory_space<smem>>
    %134 = vector.broadcast %133 : f32 to vector<8x1xf32>
    %135 = arith.mulf %35, %134 : vector<8x1xf32>
    %136 = arith.addf %132, %135 : vector<8x1xf32>
    %c68 = arith.constant 68 : index
    %137 = memref.load %arg4[%c68] : memref<80xf32, #tpu.memory_space<smem>>
    %138 = vector.broadcast %137 : f32 to vector<8x1xf32>
    %139 = arith.addf %136, %138 : vector<8x1xf32>
    %140 = vector.broadcast %139 : vector<8x1xf32> to vector<8x128xf32>
    %141 = arith.mulf %140, %9 : vector<8x128xf32>
    %c17 = arith.constant 17 : index
    %142 = memref.load %arg4[%c17] : memref<80xf32, #tpu.memory_space<smem>>
    %143 = vector.broadcast %142 : f32 to vector<8x1xf32>
    %144 = arith.mulf %11, %143 : vector<8x1xf32>
    %c21 = arith.constant 21 : index
    %145 = memref.load %arg4[%c21] : memref<80xf32, #tpu.memory_space<smem>>
    %146 = vector.broadcast %145 : f32 to vector<8x1xf32>
    %147 = arith.mulf %19, %146 : vector<8x1xf32>
    %148 = arith.addf %144, %147 : vector<8x1xf32>
    %c25 = arith.constant 25 : index
    %149 = memref.load %arg4[%c25] : memref<80xf32, #tpu.memory_space<smem>>
    %150 = vector.broadcast %149 : f32 to vector<8x1xf32>
    %151 = arith.mulf %27, %150 : vector<8x1xf32>
    %152 = arith.addf %148, %151 : vector<8x1xf32>
    %c29 = arith.constant 29 : index
    %153 = memref.load %arg4[%c29] : memref<80xf32, #tpu.memory_space<smem>>
    %154 = vector.broadcast %153 : f32 to vector<8x1xf32>
    %155 = arith.mulf %35, %154 : vector<8x1xf32>
    %156 = arith.addf %152, %155 : vector<8x1xf32>
    %c69 = arith.constant 69 : index
    %157 = memref.load %arg4[%c69] : memref<80xf32, #tpu.memory_space<smem>>
    %158 = vector.broadcast %157 : f32 to vector<8x1xf32>
    %159 = arith.addf %156, %158 : vector<8x1xf32>
    %160 = vector.broadcast %159 : vector<8x1xf32> to vector<8x128xf32>
    %161 = arith.mulf %160, %17 : vector<8x128xf32>
    %162 = arith.addf %141, %161 : vector<8x128xf32>
    %c18 = arith.constant 18 : index
    %163 = memref.load %arg4[%c18] : memref<80xf32, #tpu.memory_space<smem>>
    %164 = vector.broadcast %163 : f32 to vector<8x1xf32>
    %165 = arith.mulf %11, %164 : vector<8x1xf32>
    %c22 = arith.constant 22 : index
    %166 = memref.load %arg4[%c22] : memref<80xf32, #tpu.memory_space<smem>>
    %167 = vector.broadcast %166 : f32 to vector<8x1xf32>
    %168 = arith.mulf %19, %167 : vector<8x1xf32>
    %169 = arith.addf %165, %168 : vector<8x1xf32>
    %c26 = arith.constant 26 : index
    %170 = memref.load %arg4[%c26] : memref<80xf32, #tpu.memory_space<smem>>
    %171 = vector.broadcast %170 : f32 to vector<8x1xf32>
    %172 = arith.mulf %27, %171 : vector<8x1xf32>
    %173 = arith.addf %169, %172 : vector<8x1xf32>
    %c30 = arith.constant 30 : index
    %174 = memref.load %arg4[%c30] : memref<80xf32, #tpu.memory_space<smem>>
    %175 = vector.broadcast %174 : f32 to vector<8x1xf32>
    %176 = arith.mulf %35, %175 : vector<8x1xf32>
    %177 = arith.addf %173, %176 : vector<8x1xf32>
    %c70 = arith.constant 70 : index
    %178 = memref.load %arg4[%c70] : memref<80xf32, #tpu.memory_space<smem>>
    %179 = vector.broadcast %178 : f32 to vector<8x1xf32>
    %180 = arith.addf %177, %179 : vector<8x1xf32>
    %181 = vector.broadcast %180 : vector<8x1xf32> to vector<8x128xf32>
    %182 = arith.mulf %181, %25 : vector<8x128xf32>
    %183 = arith.addf %162, %182 : vector<8x128xf32>
    %c19 = arith.constant 19 : index
    %184 = memref.load %arg4[%c19] : memref<80xf32, #tpu.memory_space<smem>>
    %185 = vector.broadcast %184 : f32 to vector<8x1xf32>
    %186 = arith.mulf %11, %185 : vector<8x1xf32>
    %c23 = arith.constant 23 : index
    %187 = memref.load %arg4[%c23] : memref<80xf32, #tpu.memory_space<smem>>
    %188 = vector.broadcast %187 : f32 to vector<8x1xf32>
    %189 = arith.mulf %19, %188 : vector<8x1xf32>
    %190 = arith.addf %186, %189 : vector<8x1xf32>
    %c27 = arith.constant 27 : index
    %191 = memref.load %arg4[%c27] : memref<80xf32, #tpu.memory_space<smem>>
    %192 = vector.broadcast %191 : f32 to vector<8x1xf32>
    %193 = arith.mulf %27, %192 : vector<8x1xf32>
    %194 = arith.addf %190, %193 : vector<8x1xf32>
    %c31 = arith.constant 31 : index
    %195 = memref.load %arg4[%c31] : memref<80xf32, #tpu.memory_space<smem>>
    %196 = vector.broadcast %195 : f32 to vector<8x1xf32>
    %197 = arith.mulf %35, %196 : vector<8x1xf32>
    %198 = arith.addf %194, %197 : vector<8x1xf32>
    %c71 = arith.constant 71 : index
    %199 = memref.load %arg4[%c71] : memref<80xf32, #tpu.memory_space<smem>>
    %200 = vector.broadcast %199 : f32 to vector<8x1xf32>
    %201 = arith.addf %198, %200 : vector<8x1xf32>
    %202 = vector.broadcast %201 : vector<8x1xf32> to vector<8x128xf32>
    %203 = arith.mulf %202, %33 : vector<8x128xf32>
    %204 = arith.addf %183, %203 : vector<8x128xf32>
    %205 = arith.mulf %204, %204 : vector<8x128xf32>
    %cst_28 = arith.constant dense<0.000000e+00> : vector<8xf32>
    %206 = vector.multi_reduction <add>, %205, %cst_28 [1] : vector<8x128xf32> to vector<8xf32>
    %207 = vector.shape_cast %206 : vector<8xf32> to vector<8x1xf32>
    %208 = arith.addf %121, %207 : vector<8x1xf32>
    %c32 = arith.constant 32 : index
    %209 = memref.load %arg4[%c32] : memref<80xf32, #tpu.memory_space<smem>>
    %210 = vector.broadcast %209 : f32 to vector<8x1xf32>
    %211 = arith.mulf %11, %210 : vector<8x1xf32>
    %c36 = arith.constant 36 : index
    %212 = memref.load %arg4[%c36] : memref<80xf32, #tpu.memory_space<smem>>
    %213 = vector.broadcast %212 : f32 to vector<8x1xf32>
    %214 = arith.mulf %19, %213 : vector<8x1xf32>
    %215 = arith.addf %211, %214 : vector<8x1xf32>
    %c40 = arith.constant 40 : index
    %216 = memref.load %arg4[%c40] : memref<80xf32, #tpu.memory_space<smem>>
    %217 = vector.broadcast %216 : f32 to vector<8x1xf32>
    %218 = arith.mulf %27, %217 : vector<8x1xf32>
    %219 = arith.addf %215, %218 : vector<8x1xf32>
    %c44 = arith.constant 44 : index
    %220 = memref.load %arg4[%c44] : memref<80xf32, #tpu.memory_space<smem>>
    %221 = vector.broadcast %220 : f32 to vector<8x1xf32>
    %222 = arith.mulf %35, %221 : vector<8x1xf32>
    %223 = arith.addf %219, %222 : vector<8x1xf32>
    %c72 = arith.constant 72 : index
    %224 = memref.load %arg4[%c72] : memref<80xf32, #tpu.memory_space<smem>>
    %225 = vector.broadcast %224 : f32 to vector<8x1xf32>
    %226 = arith.addf %223, %225 : vector<8x1xf32>
    %227 = vector.broadcast %226 : vector<8x1xf32> to vector<8x128xf32>
    %228 = arith.mulf %227, %9 : vector<8x128xf32>
    %c33 = arith.constant 33 : index
    %229 = memref.load %arg4[%c33] : memref<80xf32, #tpu.memory_space<smem>>
    %230 = vector.broadcast %229 : f32 to vector<8x1xf32>
    %231 = arith.mulf %11, %230 : vector<8x1xf32>
    %c37 = arith.constant 37 : index
    %232 = memref.load %arg4[%c37] : memref<80xf32, #tpu.memory_space<smem>>
    %233 = vector.broadcast %232 : f32 to vector<8x1xf32>
    %234 = arith.mulf %19, %233 : vector<8x1xf32>
    %235 = arith.addf %231, %234 : vector<8x1xf32>
    %c41 = arith.constant 41 : index
    %236 = memref.load %arg4[%c41] : memref<80xf32, #tpu.memory_space<smem>>
    %237 = vector.broadcast %236 : f32 to vector<8x1xf32>
    %238 = arith.mulf %27, %237 : vector<8x1xf32>
    %239 = arith.addf %235, %238 : vector<8x1xf32>
    %c45 = arith.constant 45 : index
    %240 = memref.load %arg4[%c45] : memref<80xf32, #tpu.memory_space<smem>>
    %241 = vector.broadcast %240 : f32 to vector<8x1xf32>
    %242 = arith.mulf %35, %241 : vector<8x1xf32>
    %243 = arith.addf %239, %242 : vector<8x1xf32>
    %c73 = arith.constant 73 : index
    %244 = memref.load %arg4[%c73] : memref<80xf32, #tpu.memory_space<smem>>
    %245 = vector.broadcast %244 : f32 to vector<8x1xf32>
    %246 = arith.addf %243, %245 : vector<8x1xf32>
    %247 = vector.broadcast %246 : vector<8x1xf32> to vector<8x128xf32>
    %248 = arith.mulf %247, %17 : vector<8x128xf32>
    %249 = arith.addf %228, %248 : vector<8x128xf32>
    %c34 = arith.constant 34 : index
    %250 = memref.load %arg4[%c34] : memref<80xf32, #tpu.memory_space<smem>>
    %251 = vector.broadcast %250 : f32 to vector<8x1xf32>
    %252 = arith.mulf %11, %251 : vector<8x1xf32>
    %c38 = arith.constant 38 : index
    %253 = memref.load %arg4[%c38] : memref<80xf32, #tpu.memory_space<smem>>
    %254 = vector.broadcast %253 : f32 to vector<8x1xf32>
    %255 = arith.mulf %19, %254 : vector<8x1xf32>
    %256 = arith.addf %252, %255 : vector<8x1xf32>
    %c42 = arith.constant 42 : index
    %257 = memref.load %arg4[%c42] : memref<80xf32, #tpu.memory_space<smem>>
    %258 = vector.broadcast %257 : f32 to vector<8x1xf32>
    %259 = arith.mulf %27, %258 : vector<8x1xf32>
    %260 = arith.addf %256, %259 : vector<8x1xf32>
    %c46 = arith.constant 46 : index
    %261 = memref.load %arg4[%c46] : memref<80xf32, #tpu.memory_space<smem>>
    %262 = vector.broadcast %261 : f32 to vector<8x1xf32>
    %263 = arith.mulf %35, %262 : vector<8x1xf32>
    %264 = arith.addf %260, %263 : vector<8x1xf32>
    %c74 = arith.constant 74 : index
    %265 = memref.load %arg4[%c74] : memref<80xf32, #tpu.memory_space<smem>>
    %266 = vector.broadcast %265 : f32 to vector<8x1xf32>
    %267 = arith.addf %264, %266 : vector<8x1xf32>
    %268 = vector.broadcast %267 : vector<8x1xf32> to vector<8x128xf32>
    %269 = arith.mulf %268, %25 : vector<8x128xf32>
    %270 = arith.addf %249, %269 : vector<8x128xf32>
    %c35 = arith.constant 35 : index
    %271 = memref.load %arg4[%c35] : memref<80xf32, #tpu.memory_space<smem>>
    %272 = vector.broadcast %271 : f32 to vector<8x1xf32>
    %273 = arith.mulf %11, %272 : vector<8x1xf32>
    %c39 = arith.constant 39 : index
    %274 = memref.load %arg4[%c39] : memref<80xf32, #tpu.memory_space<smem>>
    %275 = vector.broadcast %274 : f32 to vector<8x1xf32>
    %276 = arith.mulf %19, %275 : vector<8x1xf32>
    %277 = arith.addf %273, %276 : vector<8x1xf32>
    %c43 = arith.constant 43 : index
    %278 = memref.load %arg4[%c43] : memref<80xf32, #tpu.memory_space<smem>>
    %279 = vector.broadcast %278 : f32 to vector<8x1xf32>
    %280 = arith.mulf %27, %279 : vector<8x1xf32>
    %281 = arith.addf %277, %280 : vector<8x1xf32>
    %c47 = arith.constant 47 : index
    %282 = memref.load %arg4[%c47] : memref<80xf32, #tpu.memory_space<smem>>
    %283 = vector.broadcast %282 : f32 to vector<8x1xf32>
    %284 = arith.mulf %35, %283 : vector<8x1xf32>
    %285 = arith.addf %281, %284 : vector<8x1xf32>
    %c75 = arith.constant 75 : index
    %286 = memref.load %arg4[%c75] : memref<80xf32, #tpu.memory_space<smem>>
    %287 = vector.broadcast %286 : f32 to vector<8x1xf32>
    %288 = arith.addf %285, %287 : vector<8x1xf32>
    %289 = vector.broadcast %288 : vector<8x1xf32> to vector<8x128xf32>
    %290 = arith.mulf %289, %33 : vector<8x128xf32>
    %291 = arith.addf %270, %290 : vector<8x128xf32>
    %292 = arith.mulf %291, %291 : vector<8x128xf32>
    %cst_29 = arith.constant dense<0.000000e+00> : vector<8xf32>
    %293 = vector.multi_reduction <add>, %292, %cst_29 [1] : vector<8x128xf32> to vector<8xf32>
    %294 = vector.shape_cast %293 : vector<8xf32> to vector<8x1xf32>
    %295 = arith.addf %208, %294 : vector<8x1xf32>
    %c48 = arith.constant 48 : index
    %296 = memref.load %arg4[%c48] : memref<80xf32, #tpu.memory_space<smem>>
    %297 = vector.broadcast %296 : f32 to vector<8x1xf32>
    %298 = arith.mulf %11, %297 : vector<8x1xf32>
    %c52 = arith.constant 52 : index
    %299 = memref.load %arg4[%c52] : memref<80xf32, #tpu.memory_space<smem>>
    %300 = vector.broadcast %299 : f32 to vector<8x1xf32>
    %301 = arith.mulf %19, %300 : vector<8x1xf32>
    %302 = arith.addf %298, %301 : vector<8x1xf32>
    %c56 = arith.constant 56 : index
    %303 = memref.load %arg4[%c56] : memref<80xf32, #tpu.memory_space<smem>>
    %304 = vector.broadcast %303 : f32 to vector<8x1xf32>
    %305 = arith.mulf %27, %304 : vector<8x1xf32>
    %306 = arith.addf %302, %305 : vector<8x1xf32>
    %c60 = arith.constant 60 : index
    %307 = memref.load %arg4[%c60] : memref<80xf32, #tpu.memory_space<smem>>
    %308 = vector.broadcast %307 : f32 to vector<8x1xf32>
    %309 = arith.mulf %35, %308 : vector<8x1xf32>
    %310 = arith.addf %306, %309 : vector<8x1xf32>
    %c76 = arith.constant 76 : index
    %311 = memref.load %arg4[%c76] : memref<80xf32, #tpu.memory_space<smem>>
    %312 = vector.broadcast %311 : f32 to vector<8x1xf32>
    %313 = arith.addf %310, %312 : vector<8x1xf32>
    %314 = vector.broadcast %313 : vector<8x1xf32> to vector<8x128xf32>
    %315 = arith.mulf %314, %9 : vector<8x128xf32>
    %c49 = arith.constant 49 : index
    %316 = memref.load %arg4[%c49] : memref<80xf32, #tpu.memory_space<smem>>
    %317 = vector.broadcast %316 : f32 to vector<8x1xf32>
    %318 = arith.mulf %11, %317 : vector<8x1xf32>
    %c53 = arith.constant 53 : index
    %319 = memref.load %arg4[%c53] : memref<80xf32, #tpu.memory_space<smem>>
    %320 = vector.broadcast %319 : f32 to vector<8x1xf32>
    %321 = arith.mulf %19, %320 : vector<8x1xf32>
    %322 = arith.addf %318, %321 : vector<8x1xf32>
    %c57 = arith.constant 57 : index
    %323 = memref.load %arg4[%c57] : memref<80xf32, #tpu.memory_space<smem>>
    %324 = vector.broadcast %323 : f32 to vector<8x1xf32>
    %325 = arith.mulf %27, %324 : vector<8x1xf32>
    %326 = arith.addf %322, %325 : vector<8x1xf32>
    %c61 = arith.constant 61 : index
    %327 = memref.load %arg4[%c61] : memref<80xf32, #tpu.memory_space<smem>>
    %328 = vector.broadcast %327 : f32 to vector<8x1xf32>
    %329 = arith.mulf %35, %328 : vector<8x1xf32>
    %330 = arith.addf %326, %329 : vector<8x1xf32>
    %c77 = arith.constant 77 : index
    %331 = memref.load %arg4[%c77] : memref<80xf32, #tpu.memory_space<smem>>
    %332 = vector.broadcast %331 : f32 to vector<8x1xf32>
    %333 = arith.addf %330, %332 : vector<8x1xf32>
    %334 = vector.broadcast %333 : vector<8x1xf32> to vector<8x128xf32>
    %335 = arith.mulf %334, %17 : vector<8x128xf32>
    %336 = arith.addf %315, %335 : vector<8x128xf32>
    %c50 = arith.constant 50 : index
    %337 = memref.load %arg4[%c50] : memref<80xf32, #tpu.memory_space<smem>>
    %338 = vector.broadcast %337 : f32 to vector<8x1xf32>
    %339 = arith.mulf %11, %338 : vector<8x1xf32>
    %c54 = arith.constant 54 : index
    %340 = memref.load %arg4[%c54] : memref<80xf32, #tpu.memory_space<smem>>
    %341 = vector.broadcast %340 : f32 to vector<8x1xf32>
    %342 = arith.mulf %19, %341 : vector<8x1xf32>
    %343 = arith.addf %339, %342 : vector<8x1xf32>
    %c58 = arith.constant 58 : index
    %344 = memref.load %arg4[%c58] : memref<80xf32, #tpu.memory_space<smem>>
    %345 = vector.broadcast %344 : f32 to vector<8x1xf32>
    %346 = arith.mulf %27, %345 : vector<8x1xf32>
    %347 = arith.addf %343, %346 : vector<8x1xf32>
    %c62 = arith.constant 62 : index
    %348 = memref.load %arg4[%c62] : memref<80xf32, #tpu.memory_space<smem>>
    %349 = vector.broadcast %348 : f32 to vector<8x1xf32>
    %350 = arith.mulf %35, %349 : vector<8x1xf32>
    %351 = arith.addf %347, %350 : vector<8x1xf32>
    %c78 = arith.constant 78 : index
    %352 = memref.load %arg4[%c78] : memref<80xf32, #tpu.memory_space<smem>>
    %353 = vector.broadcast %352 : f32 to vector<8x1xf32>
    %354 = arith.addf %351, %353 : vector<8x1xf32>
    %355 = vector.broadcast %354 : vector<8x1xf32> to vector<8x128xf32>
    %356 = arith.mulf %355, %25 : vector<8x128xf32>
    %357 = arith.addf %336, %356 : vector<8x128xf32>
    %c51 = arith.constant 51 : index
    %358 = memref.load %arg4[%c51] : memref<80xf32, #tpu.memory_space<smem>>
    %359 = vector.broadcast %358 : f32 to vector<8x1xf32>
    %360 = arith.mulf %11, %359 : vector<8x1xf32>
    %c55 = arith.constant 55 : index
    %361 = memref.load %arg4[%c55] : memref<80xf32, #tpu.memory_space<smem>>
    %362 = vector.broadcast %361 : f32 to vector<8x1xf32>
    %363 = arith.mulf %19, %362 : vector<8x1xf32>
    %364 = arith.addf %360, %363 : vector<8x1xf32>
    %c59 = arith.constant 59 : index
    %365 = memref.load %arg4[%c59] : memref<80xf32, #tpu.memory_space<smem>>
    %366 = vector.broadcast %365 : f32 to vector<8x1xf32>
    %367 = arith.mulf %27, %366 : vector<8x1xf32>
    %368 = arith.addf %364, %367 : vector<8x1xf32>
    %c63 = arith.constant 63 : index
    %369 = memref.load %arg4[%c63] : memref<80xf32, #tpu.memory_space<smem>>
    %370 = vector.broadcast %369 : f32 to vector<8x1xf32>
    %371 = arith.mulf %35, %370 : vector<8x1xf32>
    %372 = arith.addf %368, %371 : vector<8x1xf32>
    %c79 = arith.constant 79 : index
    %373 = memref.load %arg4[%c79] : memref<80xf32, #tpu.memory_space<smem>>
    %374 = vector.broadcast %373 : f32 to vector<8x1xf32>
    %375 = arith.addf %372, %374 : vector<8x1xf32>
    %376 = vector.broadcast %375 : vector<8x1xf32> to vector<8x128xf32>
    %377 = arith.mulf %376, %33 : vector<8x128xf32>
    %378 = arith.addf %357, %377 : vector<8x128xf32>
    %379 = arith.mulf %378, %378 : vector<8x128xf32>
    %cst_30 = arith.constant dense<0.000000e+00> : vector<8xf32>
    %380 = vector.multi_reduction <add>, %379, %cst_30 [1] : vector<8x128xf32> to vector<8xf32>
    %381 = vector.shape_cast %380 : vector<8xf32> to vector<8x1xf32>
    %382 = arith.addf %295, %381 : vector<8x1xf32>
    %cst_31 = arith.constant 1.000000e-24 : f32
    %383 = vector.broadcast %cst_31 : f32 to vector<8x1xf32>
    %384 = arith.maximumf %382, %383 : vector<8x1xf32>
    %385 = math.rsqrt %384 : vector<8x1xf32>
    %386 = vector.broadcast %385 : vector<8x1xf32> to vector<8x128xf32>
    %387 = arith.mulf %118, %386 : vector<8x128xf32>
    %c0_32 = arith.constant 0 : index
    %c0_33 = arith.constant 0 : index
    %388 = vector.load %arg5[%c0_32, %c0_33] : memref<8x512xf32, #tpu.memory_space<vmem>>, vector<8x128xf32>
    tpu.vector_store %arg5[%c0_32, %c0_33], %387 {strides = array<i32>} : memref<8x512xf32, #tpu.memory_space<vmem>>, vector<8x128xf32>,
    %389 = vector.broadcast %385 : vector<8x1xf32> to vector<8x128xf32>
    %390 = arith.mulf %204, %389 : vector<8x128xf32>
    %c0_34 = arith.constant 0 : index
    %c128 = arith.constant 128 : index
    %391 = vector.load %arg5[%c0_34, %c128] : memref<8x512xf32, #tpu.memory_space<vmem>>, vector<8x128xf32>
    tpu.vector_store %arg5[%c0_34, %c128], %390 {strides = array<i32>} : memref<8x512xf32, #tpu.memory_space<vmem>>, vector<8x128xf32>,
    %392 = vector.broadcast %385 : vector<8x1xf32> to vector<8x128xf32>
    %393 = arith.mulf %291, %392 : vector<8x128xf32>
    %c0_35 = arith.constant 0 : index
    %c256 = arith.constant 256 : index
    %394 = vector.load %arg5[%c0_35, %c256] : memref<8x512xf32, #tpu.memory_space<vmem>>, vector<8x128xf32>
    tpu.vector_store %arg5[%c0_35, %c256], %393 {strides = array<i32>} : memref<8x512xf32, #tpu.memory_space<vmem>>, vector<8x128xf32>,
    %395 = vector.broadcast %385 : vector<8x1xf32> to vector<8x128xf32>
    %396 = arith.mulf %378, %395 : vector<8x128xf32>
    %c0_36 = arith.constant 0 : index
    %c384 = arith.constant 384 : index
    %397 = vector.load %arg5[%c0_36, %c384] : memref<8x512xf32, #tpu.memory_space<vmem>>, vector<8x128xf32>
    tpu.vector_store %arg5[%c0_36, %c384], %396 {strides = array<i32>} : memref<8x512xf32, #tpu.memory_space<vmem>>, vector<8x128xf32>,
    return
  }
  func.func @transform_0(%arg0: i32) -> (i32, i32, i32) {
    %c0_i32 = arith.constant 0 : i32
    %c0_i32_0 = arith.constant 0 : i32
    %c0_i32_1 = arith.constant 0 : i32
    return %c0_i32, %arg0, %c0_i32_0 : i32, i32, i32
  }
  func.func @transform_1(%arg0: i32) -> (i32, i32) {
    %c0_i32 = arith.constant 0 : i32
    %c0_i32_0 = arith.constant 0 : i32
    %c0_i32_1 = arith.constant 0 : i32
    return %c0_i32, %c0_i32_0 : i32, i32
  }
  func.func @transform_2(%arg0: i32) -> (i32, i32) {
    %c0_i32 = arith.constant 0 : i32
    %c0_i32_0 = arith.constant 0 : i32
    %c0_i32_1 = arith.constant 0 : i32
    return %c0_i32, %c0_i32_0 : i32, i32
  }
  func.func @transform_3(%arg0: i32) -> i32 {
    %c0_i32 = arith.constant 0 : i32
    %c0_i32_0 = arith.constant 0 : i32
    return %c0_i32 : i32
  }
  func.func @transform_4(%arg0: i32) -> (i32, i32) {
    %c0_i32 = arith.constant 0 : i32
    %c0_i32_0 = arith.constant 0 : i32
    return %arg0, %c0_i32 : i32, i32
  }
}

</mosaic_0001>

<bundles_post_ra>
// kernel: _backbone.1
= control target key start
LH: loop header
LB: loop body
LE: loop exit
PB: predicated region body
PF: predicated region fallthrough
CT: control target
= control target key end

     0   :  { %9 = vsyncpa [#allocation3], 0  ;;  %s9668_s0 = inlined_call_operand.vmem [shape: bf16[4,8,3072], index: 0, kind: input, shape index: {}]   ;;  %s9669_s1 = inlined_call_operand.vmem [shape: bf16[3072,128], index: 1, kind: input, shape index: {}]   ;;  %s9670_s2 = inlined_call_operand.vmem [shape: f32[1,128], index: 2, kind: input, shape index: {}]   ;;  %s9671_s3 = inlined_call_operand.vmem [shape: f32[80], index: 3, kind: input, shape index: {}]   ;;  %s9672_s4 = inlined_call_operand.vmem [shape: f32[8,512], index: 4, kind: output, shape index: {}]  }
   0x1   :  { %s22_s17 = sshll.u32 %s9671_s3, 4  ;;  %s23_s17 = int_to_ptr.vmem [resolvable:$true] %s22_s17 }
   0x2   :  { %s6303_s18 = scalar_lea.vmem %s23_s17, 16  ;;  %p6308_p1 = scmp.lt.s32.totalorder %s23_s17, %s23_s17 }
   0x3   :  { %p6304_p0 = scmp.ne.s32.totalorder %s23_s17, %s6303_s18  ;;  %p6309_p2 = scmp.lt.s32.totalorder %s6303_s18, %s6303_s18 }
   0x5   :  { %p6310_p3 = por %p6309_p2, %p6308_p1 }
   0x7   :  { %p6311_p4 = pnand %p6310_p3, %p6304_p0 }
   0x9   :  { %6314 = shalt.err (!%p6311_p4)
}
   0xa   :  { %s6317_s19 = smov [#allocation2]  }
   0xb   :  { %25 = dma.vmem_to_smem %s23_s17, 16, %s6317_s19, [#allocation3]  }
   0xc   :  { %6315 = dma.done.wait [#allocation3], 16  }
   0xd   :  { %6316 = vsyncadd [#allocation3], 4294967280 }
   0xe   :  { %29 = sfence }
   0xf   :  { %v5700_v0 = vld [vmem:[%s9669_s1 + $0x40] sm:$0xff]   ;;  %v5704_v4 = vld [vmem:[%s9669_s1 + $0x48] sm:$0xff]   ;;  %v5708_v8 = vld [vmem:[%s9669_s1 + $0x50] sm:$0xff]   ;;  %s9257_s15 = sld [smem:[#allocation2 + $0x11]]  ;;  %s9259_s16 = sld [smem:[#allocation2 + $0x12]] }
  0x10   :  { %v5701_v1 = vld [vmem:[%s9669_s1 + $0xc0] sm:$0xff]   ;;  %4643 = vmatprep.subr.bf16.mxu0 %v5700_v0  ;;  %v5705_v5 = vld [vmem:[%s9669_s1 + $0xc8] sm:$0xff]   ;;  %v5709_v9 = vld [vmem:[%s9669_s1 + $0xd0] sm:$0xff]   ;;  %s9261_s17 = sld [smem:[#allocation2 + $0x13]]  ;;  %s9263_s18 = sld [smem:[#allocation2]] }
  0x11   :  { %v5702_v2 = vld [vmem:[%s9669_s1] sm:$0xff]   ;;  %4665 = vmatprep.subr.bf16.mxu1 %v5701_v1  ;;  %v5706_v6 = vld [vmem:[%s9669_s1 + $0x8] sm:$0xff]   ;;  %v5710_v10 = vld [vmem:[%s9669_s1 + $0x10] sm:$0xff]   ;;  %s9265_s19 = sld [smem:[#allocation2 + $0x1]]  ;;  %s9269_s20 = sld [smem:[#allocation2 + $0x3]] }
  0x12   :  { %v5703_v3 = vld [vmem:[%s9669_s1 + $0x80] sm:$0xff]   ;;  %4644 = vmatpush3.bf16.msra.mxu0 %v5702_v2  ;;  %v5707_v7 = vld [vmem:[%s9669_s1 + $0x88] sm:$0xff]   ;;  %v5711_v11 = vld [vmem:[%s9669_s1 + $0x90] sm:$0xff]   ;;  %s9271_s21 = sld [smem:[#allocation2 + $0x30]]  ;;  %s9273_s22 = sld [smem:[#allocation2 + $0x31]] }
  0x13   :  { %4666 = vmatpush3.bf16.msra.mxu1 %v5703_v3  ;;  %4645 = vmatprep.subr.bf16.mxu0 %v5704_v4  ;;  %v5712_v12 = vld [vmem:[%s9669_s1 + $0x58] sm:$0xff]   ;;  %v5716_v16 = vld [vmem:[%s9669_s1 + $0x60] sm:$0xff]   ;;  %v5720_v20 = vld [vmem:[%s9669_s1 + $0x68] sm:$0xff]   ;;  %s9275_s23 = sld [smem:[#allocation2 + $0x32]]  ;;  %s9277_s3 = sld [smem:[#allocation2 + $0x33]] }
  0x14   :  { %4667 = vmatprep.subr.bf16.mxu1 %v5705_v5  ;;  %v5713_v13 = vld [vmem:[%s9669_s1 + $0xd8] sm:$0xff]   ;;  %v5717_v17 = vld [vmem:[%s9669_s1 + $0xe0] sm:$0xff]   ;;  %v5721_v21 = vld [vmem:[%s9669_s1 + $0xe8] sm:$0xff]   ;;  %s9279_s24 = sld [smem:[#allocation2 + $0x20]]  ;;  %s9281_s25 = sld [smem:[#allocation2 + $0x21]] }
  0x15   :  { %v5714_v14 = vld [vmem:[%s9669_s1 + $0x18] sm:$0xff]   ;;  %v5718_v18 = vld [vmem:[%s9669_s1 + $0x20] sm:$0xff]   ;;  %v5722_v22 = vld [vmem:[%s9669_s1 + $0x28] sm:$0xff]   ;;  %s9283_s26 = sld [smem:[#allocation2 + $0x22]]  ;;  %s9285_s27 = sld [smem:[#allocation2 + $0x23]] }
  0x16   :  { %4646 = vmatpush3.bf16.msra.mxu0 %v5706_v6  ;;  %v5715_v15 = vld [vmem:[%s9669_s1 + $0x98] sm:$0xff]   ;;  %v5719_v19 = vld [vmem:[%s9669_s1 + $0xa0] sm:$0xff]   ;;  %v5723_v23 = vld [vmem:[%s9669_s1 + $0xa8] sm:$0xff]   ;;  %s9287_s28 = sld [smem:[#allocation2 + $0x14]]  ;;  %s9289_s29 = sld [smem:[#allocation2 + $0x15]] }
  0x17   :  { %4668 = vmatpush3.bf16.msra.mxu1 %v5707_v7  ;;  %4647 = vmatprep.subr.bf16.mxu0 %v5708_v8  ;;  %v5724_v24 = vld [vmem:[%s9669_s1 + $0x70] sm:$0xff]   ;;  %v5728_v28 = vld [vmem:[%s9669_s1 + $0x78] sm:$0xff]   ;;  %v422_v32 = vld [vmem:[%s9668_s0] sm:$0xff]  ;;  %s9291_s30 = sld [smem:[#allocation2 + $0x16]]  ;;  %s9293_s5 = sld [smem:[#allocation2 + $0x17]] }
  0x18   :  { %4669 = vmatprep.subr.bf16.mxu1 %v5709_v9  ;;  %v5725_v25 = vld [vmem:[%s9669_s1 + $0xf0] sm:$0xff]   ;;  %v5729_v29 = vld [vmem:[%s9669_s1 + $0xf8] sm:$0xff]   ;;  %v423_v33 = vld [vmem:[%s9668_s0 + $0x8] sm:$0xff]  ;;  %v4240_v34 = vcombine.low %v422_v32, %v422_v32  ;;  %v4241_v35 = vcombine.high %v422_v32, %v422_v32  ;;  %s9295_s6 = sld [smem:[#allocation2 + $0x4]]  ;;  %s9297_s7 = sld [smem:[#allocation2 + $0x5]] }
  0x19   :  { %v5726_v26 = vld [vmem:[%s9669_s1 + $0x30] sm:$0xff]   ;;  %v5730_v30 = vld [vmem:[%s9669_s1 + $0x38] sm:$0xff]   ;;  %v4242_v36 = vcombine.low %v423_v33, %v423_v33  ;;  %v4243_v37 = vcombine.high %v423_v33, %v423_v33  ;;  %v5736_v38 = vld [vmem:[%s9669_s1 + $0x140] sm:$0xff]   ;;  %s9301_s8 = sld [smem:[#allocation2 + $0x7]]  ;;  %s9307_s9 = sld [smem:[#allocation2 + $0x34]] }
  0x1a   :  { %4648 = vmatpush3.bf16.msra.mxu0 %v5710_v10  ;;  %v5727_v27 = vld [vmem:[%s9669_s1 + $0xb0] sm:$0xff]   ;;  %v5731_v31 = vld [vmem:[%s9669_s1 + $0xb8] sm:$0xff]   ;;  %v5737_v39 = vld [vmem:[%s9669_s1 + $0x1c0] sm:$0xff]   ;;  %1702 = vmatprep.mubr.bf16.mxu0 %v4241_v35  ;;  %s9309_s10 = sld [smem:[#allocation2 + $0x35]]  ;;  %s9315_s11 = sld [smem:[#allocation2 + $0x36]] }
  0x1b   :  { %4670 = vmatpush3.bf16.msra.mxu1 %v5711_v11  ;;  %4649 = vmatprep.subr.bf16.mxu0 %v5712_v12  ;;  %v5738_v40 = vld [vmem:[%s9669_s1 + $0x100] sm:$0xff]   ;;  %v5740_v42 = vld [vmem:[%s9669_s1 + $0x148] sm:$0xff]   ;;  %v5744_v46 = vld [vmem:[%s9669_s1 + $0x150] sm:$0xff]   ;;  %s9317_s12 = sld [smem:[#allocation2 + $0x37]]  ;;  %s9323_s13 = sld [smem:[#allocation2 + $0x24]] }
  0x1c   :  { %4671 = vmatprep.subr.bf16.mxu1 %v5713_v13  ;;  %1742 = vmatprep.mubr.bf16.mxu1 %v4243_v37  ;;  %v5739_v41 = vld [vmem:[%s9669_s1 + $0x180] sm:$0xff]   ;;  %v5741_v43 = vld [vmem:[%s9669_s1 + $0x1c8] sm:$0xff]   ;;  %v5745_v47 = vld [vmem:[%s9669_s1 + $0x1d0] sm:$0xff]   ;;  %s9325_s14 = sld [smem:[#allocation2 + $0x25]] }
  0x1d   :  { %v5742_v44 = vld [vmem:[%s9669_s1 + $0x108] sm:$0xff]   ;;  %v5746_v48 = vld [vmem:[%s9669_s1 + $0x110] sm:$0xff]   ;;  %v5748_v50 = vld [vmem:[%s9669_s1 + $0x158] sm:$0xff]  }
  0x1e   :  { %4650 = vmatpush3.bf16.msra.mxu0 %v5714_v14  ;;  %v5743_v45 = vld [vmem:[%s9669_s1 + $0x188] sm:$0xff]   ;;  %v5747_v49 = vld [vmem:[%s9669_s1 + $0x190] sm:$0xff]   ;;  %v5749_v51 = vld [vmem:[%s9669_s1 + $0x1d8] sm:$0xff]  }
  0x1f   :  { %4672 = vmatpush3.bf16.msra.mxu1 %v5715_v15  ;;  %4651 = vmatprep.subr.bf16.mxu0 %v5716_v16  ;;  %v5750_v52 = vld [vmem:[%s9669_s1 + $0x118] sm:$0xff]   ;;  %v5752_v54 = vld [vmem:[%s9669_s1 + $0x160] sm:$0xff]   ;;  %v5756_v58 = vld [vmem:[%s9669_s1 + $0x168] sm:$0xff]  }
  0x20   :  { %4673 = vmatprep.subr.bf16.mxu1 %v5717_v17  ;;  %v5751_v53 = vld [vmem:[%s9669_s1 + $0x198] sm:$0xff]   ;;  %v5753_v55 = vld [vmem:[%s9669_s1 + $0x1e0] sm:$0xff]   ;;  %v5757_v59 = vld [vmem:[%s9669_s1 + $0x1e8] sm:$0xff]  }
  0x21   :  { %v5754_v56 = vld [vmem:[%s9669_s1 + $0x120] sm:$0xff]   ;;  %v5758_v60 = vld [vmem:[%s9669_s1 + $0x128] sm:$0xff]   ;;  %v5760_v62 = vld [vmem:[%s9669_s1 + $0x170] sm:$0xff]  }
  0x22   :  { %4652 = vmatpush3.bf16.msra.mxu0 %v5718_v18  ;;  %v5755_v57 = vld [vmem:[%s9669_s1 + $0x1a0] sm:$0xff]   ;;  %v5759_v61 = vld [vmem:[%s9669_s1 + $0x1a8] sm:$0xff]   ;;  %v5761_v63 = vld [vmem:[%s9669_s1 + $0x1f0] sm:$0xff]  }
  0x23   :  { %4674 = vmatpush3.bf16.msra.mxu1 %v5719_v19  ;;  %4653 = vmatprep.subr.bf16.mxu0 %v5720_v20  ;;  %v5762_v0 = vld [vmem:[%s9669_s1 + $0x130] sm:$0xff]   ;;  %v5764_v2 = vld [vmem:[%s9669_s1 + $0x178] sm:$0xff]   ;;  %v5772_v12 = vld [vmem:[%s9669_s1 + $0x240] sm:$0xff]  }
  0x24   :  { %4675 = vmatprep.subr.bf16.mxu1 %v5721_v21  ;;  %v5763_v1 = vld [vmem:[%s9669_s1 + $0x1b0] sm:$0xff]   ;;  %v5765_v3 = vld [vmem:[%s9669_s1 + $0x1f8] sm:$0xff]   ;;  %v5773_v13 = vld [vmem:[%s9669_s1 + $0x2c0] sm:$0xff]  }
  0x25   :  { %v5766_v4 = vld [vmem:[%s9669_s1 + $0x138] sm:$0xff]   ;;  %v424_v6 = vld [vmem:[%s9668_s0 + $0x10] sm:$0xff]  ;;  %v5774_v14 = vld [vmem:[%s9669_s1 + $0x200] sm:$0xff]  }
  0x26   :  { %4654 = vmatpush3.bf16.msra.mxu0 %v5722_v22  ;;  %v5767_v5 = vld [vmem:[%s9669_s1 + $0x1b8] sm:$0xff]   ;;  %v4244_v7 = vcombine.low %v424_v6, %v424_v6  ;;  %v4245_v8 = vcombine.high %v424_v6, %v424_v6  ;;  %v5775_v15 = vld [vmem:[%s9669_s1 + $0x280] sm:$0xff]   ;;  %v5776_v16 = vld [vmem:[%s9669_s1 + $0x248] sm:$0xff]  }
  0x27   :  { %4676 = vmatpush3.bf16.msra.mxu1 %v5723_v23  ;;  %4655 = vmatprep.subr.bf16.mxu0 %v5724_v24  ;;  %v425_v9 = vld [vmem:[%s9668_s0 + $0x18] sm:$0xff]  ;;  %v5777_v17 = vld [vmem:[%s9669_s1 + $0x2c8] sm:$0xff]   ;;  %v5780_v20 = vld [vmem:[%s9669_s1 + $0x250] sm:$0xff]  }
  0x28   :  { %4677 = vmatprep.subr.bf16.mxu1 %v5725_v25  ;;  %v4246_v10 = vcombine.low %v425_v9, %v425_v9  ;;  %v4247_v11 = vcombine.high %v425_v9, %v425_v9  ;;  %v5778_v18 = vld [vmem:[%s9669_s1 + $0x208] sm:$0xff]   ;;  %v5781_v21 = vld [vmem:[%s9669_s1 + $0x2d0] sm:$0xff]   ;;  %v5784_v24 = vld [vmem:[%s9669_s1 + $0x258] sm:$0xff]  }
  0x29   :  { %v5779_v19 = vld [vmem:[%s9669_s1 + $0x288] sm:$0xff]   ;;  %v5782_v22 = vld [vmem:[%s9669_s1 + $0x210] sm:$0xff]   ;;  %v5785_v25 = vld [vmem:[%s9669_s1 + $0x2d8] sm:$0xff]  }
  0x2a   :  { %4656 = vmatpush3.bf16.msra.mxu0 %v5726_v26  ;;  %v5783_v23 = vld [vmem:[%s9669_s1 + $0x290] sm:$0xff]   ;;  %v5786_v26 = vld [vmem:[%s9669_s1 + $0x218] sm:$0xff]   ;;  %v5792_v32 = vld [vmem:[%s9669_s1 + $0x268] sm:$0xff]  }
  0x2b   :  { %4678 = vmatpush3.bf16.msra.mxu1 %v5727_v27  ;;  %4657 = vmatprep.subr.bf16.mxu0 %v5728_v28  ;;  %v5787_v27 = vld [vmem:[%s9669_s1 + $0x298] sm:$0xff]   ;;  %v5788_v28 = vld [vmem:[%s9669_s1 + $0x260] sm:$0xff]   ;;  %v5793_v33 = vld [vmem:[%s9669_s1 + $0x2e8] sm:$0xff]  }
  0x2c   :  { %4679 = vmatprep.subr.bf16.mxu1 %v5729_v29  ;;  %v5789_v29 = vld [vmem:[%s9669_s1 + $0x2e0] sm:$0xff]   ;;  %v5795_v35 = vld [vmem:[%s9669_s1 + $0x2a8] sm:$0xff]   ;;  %v5797_v37 = vld [vmem:[%s9669_s1 + $0x2f0] sm:$0xff]  }
  0x2d   :  { %v5828_v6 = vld [vmem:[%s9669_s1 + $0x368] sm:$0xff]  }
  0x2e   :  { %4658 = vmatpush3.bf16.msra.mxu0 %v5730_v30  ;;  %v5790_v30 = vld [vmem:[%s9669_s1 + $0x220] sm:$0xff]   ;;  %v5831_v9 = vld [vmem:[%s9669_s1 + $0x3a8] sm:$0xff]  }
  0x2f   :  { %4680 = vmatpush3.bf16.msra.mxu1 %v5731_v31  ;;  %4687 = vmatprep.subr.bf16.mxu0 %v5736_v38  ;;  %v5791_v31 = vld [vmem:[%s9669_s1 + $0x2a0] sm:$0xff]   ;;  %v5798_v38 = vld [vmem:[%s9669_s1 + $0x230] sm:$0xff]  }
  0x30   :  { %4709 = vmatprep.subr.bf16.mxu1 %v5737_v39  ;;  %v5799_v39 = vld [vmem:[%s9669_s1 + $0x2b0] sm:$0xff]  }
  0x31   :  { %1703 = vmatmul.mubr.bf16.vlgmr.msra.gmra.mrb[0].mxu0 %v4240_v34  ;;  %v5794_v34 = vld [vmem:[%s9669_s1 + $0x228] sm:$0xff]  }
  0x32   :  { %1743 = vmatmul.mubr.bf16.vlgmr.msra.gmra.mrb[0].mxu1 %v4242_v36  ;;  %4688 = vmatpush3.bf16.msra.mxu0 %v5738_v40  ;;  %v5796_v36 = vld [vmem:[%s9669_s1 + $0x270] sm:$0xff]   ;;  %v5800_v40 = vld [vmem:[%s9669_s1 + $0x278] sm:$0xff]  }
  0x33   :  { %4710 = vmatpush3.bf16.msra.mxu1 %v5739_v41  ;;  %4689 = vmatprep.subr.bf16.mxu0 %v5740_v42  ;;  %v5801_v41 = vld [vmem:[%s9669_s1 + $0x2f8] sm:$0xff]  }
  0x34   :  { %4711 = vmatprep.subr.bf16.mxu1 %v5741_v43  ;;  %1782 = vmatprep.mubr.bf16.mxu0 %v4245_v8  ;;  %v5802_v42 = vld [vmem:[%s9669_s1 + $0x238] sm:$0xff]   ;;  %v5830_v8 = vld [vmem:[%s9669_s1 + $0x328] sm:$0xff]  }
  0x35   :  { %1822 = vmatprep.mubr.bf16.mxu1 %v4247_v11  ;;  %v5803_v43 = vld [vmem:[%s9669_s1 + $0x2b8] sm:$0xff]   ;;  %v6732_v11 = vld [vmem:[%s9669_s1 + $0x3f0] sm:$0xff]  }
  0x36   :  { %4690 = vmatpush3.bf16.msra.mxu0 %v5742_v44  ;;  %v426_v44 = vld [vmem:[%s9668_s0 + $0x20] sm:$0xff] }
  0x37   :  { %4712 = vmatpush3.bf16.msra.mxu1 %v5743_v45  ;;  %4691 = vmatprep.subr.bf16.mxu0 %v5744_v46  ;;  %v427_v45 = vld [vmem:[%s9668_s0 + $0x28] sm:$0xff]  ;;  %v4248_v46 = vcombine.low %v426_v44, %v426_v44 }
  0x38   :  { %4713 = vmatprep.subr.bf16.mxu1 %v5745_v47  ;;  %v4249_v47 = vcombine.high %v426_v44, %v426_v44  ;;  %v6899_v44 = vld [vmem:[%s9669_s1 + $0x468] sm:$0xff]  }
  0x3a   :  { %4692 = vmatpush3.bf16.msra.mxu0 %v5746_v48  ;;  %v4250_v48 = vcombine.low %v427_v45, %v427_v45 }
  0x3b   :  { %4714 = vmatpush3.bf16.msra.mxu1 %v5747_v49  ;;  %4693 = vmatprep.subr.bf16.mxu0 %v5748_v50  ;;  %v4251_v49 = vcombine.high %v427_v45, %v427_v45  ;;  %v5808_v50 = vld [vmem:[%s9669_s1 + $0x340] sm:$0xff]   ;;  %v6906_v45 = vld [vmem:[%s9669_s1 + $0x4e8] sm:$0xff]  }
  0x3c   :  { %4715 = vmatprep.subr.bf16.mxu1 %v5749_v51  ;;  %v5809_v51 = vld [vmem:[%s9669_s1 + $0x3c0] sm:$0xff]  }
  0x3e   :  { %4694 = vmatpush3.bf16.msra.mxu0 %v5750_v52  ;;  %v5810_v52 = vld [vmem:[%s9669_s1 + $0x300] sm:$0xff]  }
  0x3f   :  { %4716 = vmatpush3.bf16.msra.mxu1 %v5751_v53  ;;  %4695 = vmatprep.subr.bf16.mxu0 %v5752_v54  ;;  %v5811_v53 = vld [vmem:[%s9669_s1 + $0x380] sm:$0xff]   ;;  %v5812_v54 = vld [vmem:[%s9669_s1 + $0x348] sm:$0xff]  }
  0x40   :  { %4717 = vmatprep.subr.bf16.mxu1 %v5753_v55  ;;  %v5813_v55 = vld [vmem:[%s9669_s1 + $0x3c8] sm:$0xff]  }
  0x42   :  { %4696 = vmatpush3.bf16.msra.mxu0 %v5754_v56  ;;  %v5814_v56 = vld [vmem:[%s9669_s1 + $0x308] sm:$0xff]  }
  0x43   :  { %4718 = vmatpush3.bf16.msra.mxu1 %v5755_v57  ;;  %4697 = vmatprep.subr.bf16.mxu0 %v5756_v58  ;;  %v5815_v57 = vld [vmem:[%s9669_s1 + $0x388] sm:$0xff]   ;;  %v5816_v58 = vld [vmem:[%s9669_s1 + $0x350] sm:$0xff]  }
  0x44   :  { %4719 = vmatprep.subr.bf16.mxu1 %v5757_v59  ;;  %v5817_v59 = vld [vmem:[%s9669_s1 + $0x3d0] sm:$0xff]  }
  0x46   :  { %4698 = vmatpush3.bf16.msra.mxu0 %v5758_v60  ;;  %v5818_v60 = vld [vmem:[%s9669_s1 + $0x310] sm:$0xff]  }
  0x47   :  { %4720 = vmatpush3.bf16.msra.mxu1 %v5759_v61  ;;  %4699 = vmatprep.subr.bf16.mxu0 %v5760_v62  ;;  %v5819_v61 = vld [vmem:[%s9669_s1 + $0x390] sm:$0xff]   ;;  %v5820_v62 = vld [vmem:[%s9669_s1 + $0x358] sm:$0xff]  }
  0x48   :  { %4721 = vmatprep.subr.bf16.mxu1 %v5761_v63  ;;  %v5821_v63 = vld [vmem:[%s9669_s1 + $0x3d8] sm:$0xff]  }
  0x4a   :  { %4700 = vmatpush3.bf16.msra.mxu0 %v5762_v0  ;;  %v5822_v0 = vld [vmem:[%s9669_s1 + $0x318] sm:$0xff]  }
  0x4b   :  { %4722 = vmatpush3.bf16.msra.mxu1 %v5763_v1  ;;  %4701 = vmatprep.subr.bf16.mxu0 %v5764_v2  ;;  %v5823_v1 = vld [vmem:[%s9669_s1 + $0x398] sm:$0xff]   ;;  %v5824_v2 = vld [vmem:[%s9669_s1 + $0x360] sm:$0xff]  }
  0x4c   :  { %4723 = vmatprep.subr.bf16.mxu1 %v5765_v3  ;;  %v5825_v3 = vld [vmem:[%s9669_s1 + $0x3e0] sm:$0xff]  }
  0x4e   :  { %4702 = vmatpush3.bf16.msra.mxu0 %v5766_v4  ;;  %v5826_v4 = vld [vmem:[%s9669_s1 + $0x320] sm:$0xff]  }
  0x4f   :  { %4724 = vmatpush3.bf16.msra.mxu1 %v5767_v5  ;;  %4731 = vmatprep.subr.bf16.mxu0 %v5772_v12  ;;  %v5827_v5 = vld [vmem:[%s9669_s1 + $0x3a0] sm:$0xff]   ;;  %v6738_v12 = vld [vmem:[%s9669_s1 + $0x330] sm:$0xff]  }
  0x50   :  { %4753 = vmatprep.subr.bf16.mxu1 %v5773_v13  ;;  %v6744_v13 = vld [vmem:[%s9669_s1 + $0x3b0] sm:$0xff]  }
  0x51   :  { %1783 = vmatmul.mubr.bf16.vlgmr.msra.gmra.mrb[4].mxu0 %v4244_v7  ;;  %v5829_v7 = vld [vmem:[%s9669_s1 + $0x3e8] sm:$0xff]  }
  0x52   :  { %1823 = vmatmul.mubr.bf16.vlgmr.msra.gmra.mrb[4].mxu1 %v4246_v10  ;;  %4732 = vmatpush3.bf16.msra.mxu0 %v5774_v14  ;;  %v6727_v10 = vld [vmem:[%s9669_s1 + $0x370] sm:$0xff]   ;;  %v6749_v14 = vld [vmem:[%s9669_s1 + $0x378] sm:$0xff]  }
  0x53   :  { %4754 = vmatpush3.bf16.msra.mxu1 %v5775_v15  ;;  %4733 = vmatprep.subr.bf16.mxu0 %v5776_v16  ;;  %v6756_v15 = vld [vmem:[%s9669_s1 + $0x3f8] sm:$0xff]  }
  0x54   :  { %4755 = vmatprep.subr.bf16.mxu1 %v5777_v17  ;;  %1862 = vmatprep.mubr.bf16.mxu0 %v4249_v47  ;;  %v6762_v16 = vld [vmem:[%s9669_s1 + $0x338] sm:$0xff]   ;;  %v6918_v47 = vld [vmem:[%s9669_s1 + $0x4a8] sm:$0xff]  }
  0x55   :  { %1902 = vmatprep.mubr.bf16.mxu1 %v4251_v49  ;;  %v6768_v17 = vld [vmem:[%s9669_s1 + $0x3b8] sm:$0xff]   ;;  %v6930_v49 = vld [vmem:[%s9669_s1 + $0x4f0] sm:$0xff]  }
  0x56   :  { %4734 = vmatpush3.bf16.msra.mxu0 %v5778_v18  ;;  %v428_v18 = vld [vmem:[%s9668_s0 + $0x30] sm:$0xff] }
  0x57   :  { %4756 = vmatpush3.bf16.msra.mxu1 %v5779_v19  ;;  %4735 = vmatprep.subr.bf16.mxu0 %v5780_v20  ;;  %v429_v19 = vld [vmem:[%s9668_s0 + $0x38] sm:$0xff]  ;;  %v4252_v20 = vcombine.low %v428_v18, %v428_v18 }
  0x58   :  { %4757 = vmatprep.subr.bf16.mxu1 %v5781_v21  ;;  %v4253_v21 = vcombine.high %v428_v18, %v428_v18  ;;  %v7050_v18 = vld [vmem:[%s9669_s1 + $0x558] sm:$0xff]  }
  0x59   :  { %9847 = vst [vmem:[#allocation10_spill] sm:$0xff] %v7050_v18 }
  0x5a   :  { %4736 = vmatpush3.bf16.msra.mxu0 %v5782_v22  ;;  %v4254_v22 = vcombine.low %v429_v19, %v429_v19 }
  0x5b   :  { %4758 = vmatpush3.bf16.msra.mxu1 %v5783_v23  ;;  %4737 = vmatprep.subr.bf16.mxu0 %v5784_v24  ;;  %v6781_v23 = vld [vmem:[%s9669_s1 + $0x440] sm:$0xff]   ;;  %v4255_v24 = vcombine.high %v429_v19, %v429_v19  ;;  %v7056_v19 = vld [vmem:[%s9669_s1 + $0x5d8] sm:$0xff]  }
  0x5c   :  { %4759 = vmatprep.subr.bf16.mxu1 %v5785_v25  ;;  %v6786_v25 = vld [vmem:[%s9669_s1 + $0x4c0] sm:$0xff]   ;;  %9848 = vst [vmem:[#allocation11_spill] sm:$0xff] %v7056_v19 }
  0x5e   :  { %4738 = vmatpush3.bf16.msra.mxu0 %v5786_v26  ;;  %v6792_v26 = vld [vmem:[%s9669_s1 + $0x400] sm:$0xff]  }
  0x5f   :  { %4760 = vmatpush3.bf16.msra.mxu1 %v5787_v27  ;;  %4739 = vmatprep.subr.bf16.mxu0 %v5788_v28  ;;  %v6797_v27 = vld [vmem:[%s9669_s1 + $0x480] sm:$0xff]   ;;  %v6803_v28 = vld [vmem:[%s9669_s1 + $0x448] sm:$0xff]  }
  0x60   :  { %4761 = vmatprep.subr.bf16.mxu1 %v5789_v29  ;;  %v6810_v29 = vld [vmem:[%s9669_s1 + $0x4c8] sm:$0xff]  }
  0x62   :  { %4740 = vmatpush3.bf16.msra.mxu0 %v5790_v30  ;;  %v6816_v30 = vld [vmem:[%s9669_s1 + $0x408] sm:$0xff]  }
  0x63   :  { %4762 = vmatpush3.bf16.msra.mxu1 %v5791_v31  ;;  %4741 = vmatprep.subr.bf16.mxu0 %v5792_v32  ;;  %v6822_v31 = vld [vmem:[%s9669_s1 + $0x488] sm:$0xff]   ;;  %v6827_v32 = vld [vmem:[%s9669_s1 + $0x450] sm:$0xff]  }
  0x64   :  { %4763 = vmatprep.subr.bf16.mxu1 %v5793_v33  ;;  %v6834_v33 = vld [vmem:[%s9669_s1 + $0x4d0] sm:$0xff]  }
  0x66   :  { %4742 = vmatpush3.bf16.msra.mxu0 %v5794_v34  ;;  %v6840_v34 = vld [vmem:[%s9669_s1 + $0x410] sm:$0xff]  }
  0x67   :  { %4764 = vmatpush3.bf16.msra.mxu1 %v5795_v35  ;;  %4743 = vmatprep.subr.bf16.mxu0 %v5796_v36  ;;  %v6846_v35 = vld [vmem:[%s9669_s1 + $0x490] sm:$0xff]   ;;  %v6851_v36 = vld [vmem:[%s9669_s1 + $0x458] sm:$0xff]  }
  0x68   :  { %4765 = vmatprep.subr.bf16.mxu1 %v5797_v37  ;;  %v6858_v37 = vld [vmem:[%s9669_s1 + $0x4d8] sm:$0xff]  }
  0x6a   :  { %4744 = vmatpush3.bf16.msra.mxu0 %v5798_v38  ;;  %v6864_v38 = vld [vmem:[%s9669_s1 + $0x418] sm:$0xff]  }
  0x6b   :  { %4766 = vmatpush3.bf16.msra.mxu1 %v5799_v39  ;;  %4745 = vmatprep.subr.bf16.mxu0 %v5800_v40  ;;  %v6870_v39 = vld [vmem:[%s9669_s1 + $0x498] sm:$0xff]   ;;  %v6875_v40 = vld [vmem:[%s9669_s1 + $0x460] sm:$0xff]  }
  0x6c   :  { %4767 = vmatprep.subr.bf16.mxu1 %v5801_v41  ;;  %v6882_v41 = vld [vmem:[%s9669_s1 + $0x4e0] sm:$0xff]  }
  0x6e   :  { %4746 = vmatpush3.bf16.msra.mxu0 %v5802_v42  ;;  %v6888_v42 = vld [vmem:[%s9669_s1 + $0x420] sm:$0xff]  }
  0x6f   :  { %4768 = vmatpush3.bf16.msra.mxu1 %v5803_v43  ;;  %4775 = vmatprep.subr.bf16.mxu0 %v5808_v50  ;;  %v6894_v43 = vld [vmem:[%s9669_s1 + $0x4a0] sm:$0xff]   ;;  %v6936_v50 = vld [vmem:[%s9669_s1 + $0x430] sm:$0xff]  }
  0x70   :  { %4797 = vmatprep.subr.bf16.mxu1 %v5809_v51  ;;  %v6942_v51 = vld [vmem:[%s9669_s1 + $0x4b0] sm:$0xff]  }
  0x71   :  { %1863 = vmatmul.mubr.bf16.vlgmr.msra.gmra.mrb[8].mxu0 %v4248_v46  ;;  %v6912_v46 = vld [vmem:[%s9669_s1 + $0x428] sm:$0xff]  }
  0x72   :  { %1903 = vmatmul.mubr.bf16.vlgmr.msra.gmra.mrb[8].mxu1 %v4250_v48  ;;  %4776 = vmatpush3.bf16.msra.mxu0 %v5810_v52  ;;  %v6923_v48 = vld [vmem:[%s9669_s1 + $0x470] sm:$0xff]   ;;  %v6947_v52 = vld [vmem:[%s9669_s1 + $0x478] sm:$0xff]  }
  0x73   :  { %4798 = vmatpush3.bf16.msra.mxu1 %v5811_v53  ;;  %4777 = vmatprep.subr.bf16.mxu0 %v5812_v54  ;;  %v6954_v53 = vld [vmem:[%s9669_s1 + $0x4f8] sm:$0xff]  }
  0x74   :  { %4799 = vmatprep.subr.bf16.mxu1 %v5813_v55  ;;  %1942 = vmatprep.mubr.bf16.mxu0 %v4253_v21  ;;  %v6960_v54 = vld [vmem:[%s9669_s1 + $0x438] sm:$0xff]  }
  0x75   :  { %1982 = vmatprep.mubr.bf16.mxu1 %v4255_v24  ;;  %v6966_v55 = vld [vmem:[%s9669_s1 + $0x4b8] sm:$0xff]   ;;  %v7080_v24 = vld [vmem:[%s9669_s1 + $0x5e0] sm:$0xff]  }
  0x76   :  { %4778 = vmatpush3.bf16.msra.mxu0 %v5814_v56  ;;  %v430_v56 = vld [vmem:[%s9668_s0 + $0x40] sm:$0xff]  ;;  %v7068_v21 = vld [vmem:[%s9669_s1 + $0x598] sm:$0xff]   ;;  %9852 = vst [vmem:[#allocation15_spill] sm:$0xff] %v7080_v24 }
  0x77   :  { %4800 = vmatpush3.bf16.msra.mxu1 %v5815_v57  ;;  %4779 = vmatprep.subr.bf16.mxu0 %v5816_v58  ;;  %v4256_v57 = vcombine.low %v430_v56, %v430_v56  ;;  %v4257_v58 = vcombine.high %v430_v56, %v430_v56  ;;  %9850 = vst [vmem:[#allocation13_spill] sm:$0xff] %v7068_v21  ;;  %v7086_v56 = vld [vmem:[%s9669_s1 + $0x520] sm:$0xff]  }
  0x78   :  { %4801 = vmatprep.subr.bf16.mxu1 %v5817_v59  ;;  %v431_v59 = vld [vmem:[%s9668_s0 + $0x48] sm:$0xff]  ;;  %9853 = vst [vmem:[#allocation16_spill] sm:$0xff] %v7086_v56 }
  0x7a   :  { %4780 = vmatpush3.bf16.msra.mxu0 %v5818_v60  ;;  %v4258_v60 = vcombine.low %v431_v59, %v431_v59 }
  0x7b   :  { %4802 = vmatpush3.bf16.msra.mxu1 %v5819_v61  ;;  %4781 = vmatprep.subr.bf16.mxu0 %v5820_v62  ;;  %v4259_v61 = vcombine.high %v431_v59, %v431_v59  ;;  %v6979_v62 = vld [vmem:[%s9669_s1 + $0x540] sm:$0xff]   ;;  %v7104_v59 = vld [vmem:[%s9669_s1 + $0x5e8] sm:$0xff]  }
  0x7c   :  { %4803 = vmatprep.subr.bf16.mxu1 %v5821_v63  ;;  %v6984_v63 = vld [vmem:[%s9669_s1 + $0x5c0] sm:$0xff]   ;;  %9856 = vst [vmem:[#allocation19_spill] sm:$0xff] %v7104_v59 }
  0x7e   :  { %4782 = vmatpush3.bf16.msra.mxu0 %v5822_v0  ;;  %v6990_v0 = vld [vmem:[%s9669_s1 + $0x500] sm:$0xff]  }
  0x7f   :  { %4804 = vmatpush3.bf16.msra.mxu1 %v5823_v1  ;;  %4783 = vmatprep.subr.bf16.mxu0 %v5824_v2  ;;  %v6995_v1 = vld [vmem:[%s9669_s1 + $0x580] sm:$0xff]   ;;  %v7002_v2 = vld [vmem:[%s9669_s1 + $0x548] sm:$0xff]  }
  0x80   :  { %4805 = vmatprep.subr.bf16.mxu1 %v5825_v3  ;;  %v7008_v3 = vld [vmem:[%s9669_s1 + $0x5c8] sm:$0xff]  }
  0x82   :  { %4784 = vmatpush3.bf16.msra.mxu0 %v5826_v4  ;;  %v7014_v4 = vld [vmem:[%s9669_s1 + $0x508] sm:$0xff]  }
  0x83   :  { %4806 = vmatpush3.bf16.msra.mxu1 %v5827_v5  ;;  %4785 = vmatprep.subr.bf16.mxu0 %v5828_v6  ;;  %v7020_v5 = vld [vmem:[%s9669_s1 + $0x588] sm:$0xff]   ;;  %v7026_v6 = vld [vmem:[%s9669_s1 + $0x550] sm:$0xff]  }
  0x84   :  { %4807 = vmatprep.subr.bf16.mxu1 %v5829_v7  ;;  %9842 = vst [vmem:[#allocation5_spill] sm:$0xff] %v7020_v5  ;;  %9843 = vst [vmem:[#allocation6_spill] sm:$0xff] %v7026_v6  ;;  %v7032_v7 = vld [vmem:[%s9669_s1 + $0x5d0] sm:$0xff]  }
  0x85   :  { %9844 = vst [vmem:[#allocation7_spill] sm:$0xff] %v7032_v7 }
  0x86   :  { %4786 = vmatpush3.bf16.msra.mxu0 %v5830_v8  ;;  %v7038_v8 = vld [vmem:[%s9669_s1 + $0x510] sm:$0xff]  }
  0x87   :  { %4808 = vmatpush3.bf16.msra.mxu1 %v5831_v9  ;;  %4787 = vmatprep.subr.bf16.mxu0 %v6727_v10  ;;  %9845 = vst [vmem:[#allocation8_spill] sm:$0xff] %v7038_v8  ;;  %v7044_v9 = vld [vmem:[%s9669_s1 + $0x590] sm:$0xff]  }
  0x88   :  { %4809 = vmatprep.subr.bf16.mxu1 %v6732_v11  ;;  %9846 = vst [vmem:[#allocation9_spill] sm:$0xff] %v7044_v9 }
  0x8a   :  { %4788 = vmatpush3.bf16.msra.mxu0 %v6738_v12 }
  0x8b   :  { %4810 = vmatpush3.bf16.msra.mxu1 %v6744_v13  ;;  %4789 = vmatprep.subr.bf16.mxu0 %v6749_v14 }
  0x8c   :  { %4811 = vmatprep.subr.bf16.mxu1 %v6756_v15 }
  0x8e   :  { %4790 = vmatpush3.bf16.msra.mxu0 %v6762_v16 }
  0x8f   :  { %4812 = vmatpush3.bf16.msra.mxu1 %v6768_v17  ;;  %4819 = vmatprep.subr.bf16.mxu0 %v6781_v23 }
  0x90   :  { %4841 = vmatprep.subr.bf16.mxu1 %v6786_v25 }
  0x91   :  { %1943 = vmatmul.mubr.bf16.vlgmr.msra.gmra.mrb[12].mxu0 %v4252_v20  ;;  %v7062_v20 = vld [vmem:[%s9669_s1 + $0x518] sm:$0xff]  }
  0x92   :  { %1983 = vmatmul.mubr.bf16.vlgmr.msra.gmra.mrb[12].mxu1 %v4254_v22  ;;  %4820 = vmatpush3.bf16.msra.mxu0 %v6792_v26  ;;  %9849 = vst [vmem:[#allocation12_spill] sm:$0xff] %v7062_v20  ;;  %v7074_v22 = vld [vmem:[%s9669_s1 + $0x560] sm:$0xff]  }
  0x93   :  { %4842 = vmatpush3.bf16.msra.mxu1 %v6797_v27  ;;  %4821 = vmatprep.subr.bf16.mxu0 %v6803_v28  ;;  %9851 = vst [vmem:[#allocation14_spill] sm:$0xff] %v7074_v22 }
  0x94   :  { %4843 = vmatprep.subr.bf16.mxu1 %v6810_v29  ;;  %2022 = vmatprep.mubr.bf16.mxu0 %v4257_v58  ;;  %v7098_v58 = vld [vmem:[%s9669_s1 + $0x568] sm:$0xff]  }
  0x95   :  { %2062 = vmatprep.mubr.bf16.mxu1 %v4259_v61  ;;  %9855 = vst [vmem:[#allocation18_spill] sm:$0xff] %v7098_v58  ;;  %v7116_v61 = vld [vmem:[%s9669_s1 + $0x5a8] sm:$0xff]  }
  0x96   :  { %4822 = vmatpush3.bf16.msra.mxu0 %v6816_v30  ;;  %9858 = vst [vmem:[#allocation21_spill] sm:$0xff] %v7116_v61 }
  0x97   :  { %4844 = vmatpush3.bf16.msra.mxu1 %v6822_v31  ;;  %4823 = vmatprep.subr.bf16.mxu0 %v6827_v32 }
  0x98   :  { %4845 = vmatprep.subr.bf16.mxu1 %v6834_v33 }
  0x9a   :  { %4824 = vmatpush3.bf16.msra.mxu0 %v6840_v34 }
  0x9b   :  { %4846 = vmatpush3.bf16.msra.mxu1 %v6846_v35  ;;  %4825 = vmatprep.subr.bf16.mxu0 %v6851_v36 }
  0x9c   :  { %4847 = vmatprep.subr.bf16.mxu1 %v6858_v37 }
  0x9e   :  { %4826 = vmatpush3.bf16.msra.mxu0 %v6864_v38 }
  0x9f   :  { %4848 = vmatpush3.bf16.msra.mxu1 %v6870_v39  ;;  %4827 = vmatprep.subr.bf16.mxu0 %v6875_v40 }
  0xa0   :  { %4849 = vmatprep.subr.bf16.mxu1 %v6882_v41 }
  0xa2   :  { %4828 = vmatpush3.bf16.msra.mxu0 %v6888_v42 }
  0xa3   :  { %4850 = vmatpush3.bf16.msra.mxu1 %v6894_v43  ;;  %4829 = vmatprep.subr.bf16.mxu0 %v6899_v44 }
  0xa4   :  { %4851 = vmatprep.subr.bf16.mxu1 %v6906_v45 }
  0xa6   :  { %4830 = vmatpush3.bf16.msra.mxu0 %v6912_v46 }
  0xa7   :  { %4852 = vmatpush3.bf16.msra.mxu1 %v6918_v47  ;;  %4831 = vmatprep.subr.bf16.mxu0 %v6923_v48 }
  0xa8   :  { %4853 = vmatprep.subr.bf16.mxu1 %v6930_v49 }
  0xaa   :  { %4832 = vmatpush3.bf16.msra.mxu0 %v6936_v50 }
  0xab   :  { %4854 = vmatpush3.bf16.msra.mxu1 %v6942_v51  ;;  %4833 = vmatprep.subr.bf16.mxu0 %v6947_v52 }
  0xac   :  { %4855 = vmatprep.subr.bf16.mxu1 %v6954_v53 }
  0xae   :  { %4834 = vmatpush3.bf16.msra.mxu0 %v6960_v54 }
  0xaf   :  { %4856 = vmatpush3.bf16.msra.mxu1 %v6966_v55  ;;  %4863 = vmatprep.subr.bf16.mxu0 %v6979_v62 }
  0xb0   :  { %4885 = vmatprep.subr.bf16.mxu1 %v6984_v63 }
  0xb1   :  { %2023 = vmatmul.mubr.bf16.vlgmr.msra.gmra.mrb[16].mxu0 %v4256_v57  ;;  %v7092_v57 = vld [vmem:[%s9669_s1 + $0x5a0] sm:$0xff]  }
  0xb2   :  { %2063 = vmatmul.mubr.bf16.vlgmr.msra.gmra.mrb[16].mxu1 %v4258_v60  ;;  %4864 = vmatpush3.bf16.msra.mxu0 %v6990_v0  ;;  %9854 = vst [vmem:[#allocation17_spill] sm:$0xff] %v7092_v57  ;;  %v7110_v60 = vld [vmem:[%s9669_s1 + $0x528] sm:$0xff]  }
  0xb3   :  { %4886 = vmatpush3.bf16.msra.mxu1 %v6995_v1  ;;  %4865 = vmatprep.subr.bf16.mxu0 %v7002_v2  ;;  %9857 = vst [vmem:[#allocation20_spill] sm:$0xff] %v7110_v60 }
  0xb4   :  { %4887 = vmatprep.subr.bf16.mxu1 %v7008_v3 }
  0xb6   :  { %4866 = vmatpush3.bf16.msra.mxu0 %v7014_v4 }
  0xb7   :  { %4888 = vmatpush3.bf16.msra.mxu1 %v7020_v5  ;;  %4867 = vmatprep.subr.bf16.mxu0 %v7026_v6  ;;  %v7752_v5 = vld [vmem:[%s9669_s1 + $0x228] sm:$0xff]  }
  0xb8   :  { %4889 = vmatprep.subr.bf16.mxu1 %v7032_v7  ;;  %9953 = vst [vmem:[#allocation116_spill] sm:$0xff] %v7752_v5 }
  0xba   :  { %4868 = vmatpush3.bf16.msra.mxu0 %v7038_v8  ;;  %v7532_v8 = vld [vmem:[%s9669_s1 + $0x1e8] sm:$0xff]  }
  0xbb   :  { %4890 = vmatpush3.bf16.msra.mxu1 %v7044_v9  ;;  %4869 = vmatprep.subr.bf16.mxu0 %v7050_v18  ;;  %9921 = vst [vmem:[#allocation84_spill] sm:$0xff] %v7532_v8 }
  0xbc   :  { %4891 = vmatprep.subr.bf16.mxu1 %v7056_v19 }
  0xbe   :  { %4870 = vmatpush3.bf16.msra.mxu0 %v7062_v20  ;;  %v7181_v20 = vld [vmem:[%s9668_s0 + $0x68] sm:$0xff] }
  0xbf   :  { %4892 = vmatpush3.bf16.msra.mxu1 %v7068_v21  ;;  %4871 = vmatprep.subr.bf16.mxu0 %v7074_v22 }
  0xc0   :  { %4893 = vmatprep.subr.bf16.mxu1 %v7080_v24 }
  0xc2   :  { %4872 = vmatpush3.bf16.msra.mxu0 %v7086_v56 }
  0xc3   :  { %4894 = vmatpush3.bf16.msra.mxu1 %v7092_v57  ;;  %4873 = vmatprep.subr.bf16.mxu0 %v7098_v58  ;;  %v7122_v57 = vld [vmem:[%s9669_s1 + $0x570] sm:$0xff]  }
  0xc4   :  { %4895 = vmatprep.subr.bf16.mxu1 %v7104_v59  ;;  %9859 = vst [vmem:[#allocation22_spill] sm:$0xff] %v7122_v57  ;;  %v7128_v58 = vld [vmem:[%s9669_s1 + $0x5f0] sm:$0xff]  }
  0xc5   :  { %9860 = vst [vmem:[#allocation23_spill] sm:$0xff] %v7128_v58  ;;  %v7134_v59 = vld [vmem:[%s9669_s1 + $0x530] sm:$0xff]  }
  0xc6   :  { %4874 = vmatpush3.bf16.msra.mxu0 %v7110_v60  ;;  %9861 = vst [vmem:[#allocation24_spill] sm:$0xff] %v7134_v59  ;;  %v7140_v60 = vld [vmem:[%s9669_s1 + $0x5b0] sm:$0xff]  }
  0xc7   :  { %4896 = vmatpush3.bf16.msra.mxu1 %v7116_v61  ;;  %4875 = vmatprep.subr.bf16.mxu0 %v7122_v57  ;;  %9862 = vst [vmem:[#allocation25_spill] sm:$0xff] %v7140_v60  ;;  %v7146_v61 = vld [vmem:[%s9669_s1 + $0x578] sm:$0xff]  }
  0xc8   :  { %4897 = vmatprep.subr.bf16.mxu1 %v7128_v58  ;;  %9863 = vst [vmem:[#allocation26_spill] sm:$0xff] %v7146_v61  ;;  %v7152_v57 = vld [vmem:[%s9669_s1 + $0x5f8] sm:$0xff]  }
  0xc9   :  { %9864 = vst [vmem:[#allocation27_spill] sm:$0xff] %v7152_v57  ;;  %v7158_v58 = vld [vmem:[%s9669_s1 + $0x538] sm:$0xff]  }
  0xca   :  { %4876 = vmatpush3.bf16.msra.mxu0 %v7134_v59  ;;  %9865 = vst [vmem:[#allocation28_spill] sm:$0xff] %v7158_v58  ;;  %v7164_v59 = vld [vmem:[%s9669_s1 + $0x5b8] sm:$0xff]  }
  0xcb   :  { %4898 = vmatpush3.bf16.msra.mxu1 %v7140_v60  ;;  %4877 = vmatprep.subr.bf16.mxu0 %v7146_v61  ;;  %9866 = vst [vmem:[#allocation29_spill] sm:$0xff] %v7164_v59  ;;  %v432_v60 = vld [vmem:[%s9668_s0 + $0x50] sm:$0xff]  ;;  %v433_v61 = vld [vmem:[%s9668_s0 + $0x58] sm:$0xff] }
  0xcc   :  { %4899 = vmatprep.subr.bf16.mxu1 %v7152_v57  ;;  %v4260_v56 = vcombine.low %v432_v60, %v432_v60  ;;  %v4261_v24 = vcombine.high %v432_v60, %v432_v60  ;;  %v4262_v22 = vcombine.low %v433_v61, %v433_v61  ;;  %v4263_v21 = vcombine.high %v433_v61, %v433_v61  ;;  %v7176_v57 = vld [vmem:[%s9668_s0 + $0x60] sm:$0xff] }
  0xcd   :  { %v4469_v60 = vcombine.high %v7176_v57, %v7176_v57  ;;  %v7195_v61 = vld [vmem:[%s9669_s1 + $0xc0] sm:$0xff]  }
  0xce   :  { %4878 = vmatpush3.bf16.msra.mxu0 %v7158_v58  ;;  %v7187_v58 = vld [vmem:[%s9669_s1 + $0x40] sm:$0xff]   ;;  %2102 = vmatprep.mubr.bf16.mxu0 %v4261_v24  ;;  %9868 = vst [vmem:[#allocation31_spill] sm:$0xff] %v7195_v61 }
  0xcf   :  { %4900 = vmatpush3.bf16.msra.mxu1 %v7164_v59  ;;  %9867 = vst [vmem:[#allocation30_spill] sm:$0xff] %v7187_v58  ;;  %4907 = vmatprep.subr.bf16.mxu0 %v7187_v58  ;;  %v4471_v59 = vcombine.high %v7181_v20, %v7181_v20  ;;  %v7203_v24 = vld [vmem:[%s9669_s1] sm:$0xff]  }
  0xd0   :  { %2142 = vmatprep.mubr.bf16.mxu1 %v4263_v21  ;;  %4929 = vmatprep.subr.bf16.mxu1 %v7195_v61  ;;  %9869 = vst [vmem:[#allocation32_spill] sm:$0xff] %v7203_v24  ;;  %v7209_v21 = vld [vmem:[%s9669_s1 + $0x80] sm:$0xff]  }
  0xd1   :  { %2103 = vmatmul.mubr.bf16.vlgmr.msra.gmra.mrb[20].mxu0 %v4260_v56  ;;  %9870 = vst [vmem:[#allocation33_spill] sm:$0xff] %v7209_v21  ;;  %v7215_v56 = vld [vmem:[%s9669_s1 + $0x48] sm:$0xff]   ;;  %v7413_v61 = vld [vmem:[%s9669_s1 + $0x100] sm:$0xff]  }
  0xd2   :  { %2143 = vmatmul.mubr.bf16.vlgmr.msra.gmra.mrb[20].mxu1 %v4262_v22  ;;  %4908 = vmatpush3.bf16.msra.mxu0 %v7203_v24  ;;  %9871 = vst [vmem:[#allocation34_spill] sm:$0xff] %v7215_v56  ;;  %v7221_v22 = vld [vmem:[%s9669_s1 + $0xc8] sm:$0xff]   ;;  %v7397_v24 = vld [vmem:[%s9669_s1 + $0x140] sm:$0xff]   ;;  %9901 = vst [vmem:[#allocation64_spill] sm:$0xff] %v7413_v61 }
  0xd3   :  { %4930 = vmatpush3.bf16.msra.mxu1 %v7209_v21  ;;  %4909 = vmatprep.subr.bf16.mxu0 %v7215_v56  ;;  %9872 = vst [vmem:[#allocation35_spill] sm:$0xff] %v7221_v22  ;;  %v7227_v21 = vld [vmem:[%s9669_s1 + $0x8] sm:$0xff]   ;;  %9899 = vst [vmem:[#allocation62_spill] sm:$0xff] %v7397_v24 }
  0xd4   :  { %4931 = vmatprep.subr.bf16.mxu1 %v7221_v22  ;;  %2282 = vmatprep.mubr.bf16.mxu0 %v4469_v60  ;;  %9873 = vst [vmem:[#allocation36_spill] sm:$0xff] %v7227_v21  ;;  %v7233_v56 = vld [vmem:[%s9669_s1 + $0x88] sm:$0xff]   ;;  %v7239_v22 = vld [vmem:[%s9669_s1 + $0x50] sm:$0xff]  }
  0xd5   :  { %2322 = vmatprep.mubr.bf16.mxu1 %v4471_v59  ;;  %9874 = vst [vmem:[#allocation37_spill] sm:$0xff] %v7233_v56  ;;  %9875 = vst [vmem:[#allocation38_spill] sm:$0xff] %v7239_v22  ;;  %v7245_v59 = vld [vmem:[%s9669_s1 + $0xd0] sm:$0xff]  }
  0xd6   :  { %4910 = vmatpush3.bf16.msra.mxu0 %v7227_v21  ;;  %9876 = vst [vmem:[#allocation39_spill] sm:$0xff] %v7245_v59  ;;  %v7251_v60 = vld [vmem:[%s9669_s1 + $0x10] sm:$0xff]   ;;  %v7378_v21 = vld [vmem:[%s9669_s1 + $0x38] sm:$0xff]  }
  0xd7   :  { %4932 = vmatpush3.bf16.msra.mxu1 %v7233_v56  ;;  %4911 = vmatprep.subr.bf16.mxu0 %v7239_v22  ;;  %9877 = vst [vmem:[#allocation40_spill] sm:$0xff] %v7251_v60  ;;  %v7257_v56 = vld [vmem:[%s9669_s1 + $0x90] sm:$0xff]   ;;  %v7263_v22 = vld [vmem:[%s9669_s1 + $0x58] sm:$0xff]   ;;  %9897 = vst [vmem:[#allocation60_spill] sm:$0xff] %v7378_v21 }
  0xd8   :  { %4933 = vmatprep.subr.bf16.mxu1 %v7245_v59  ;;  %9878 = vst [vmem:[#allocation41_spill] sm:$0xff] %v7257_v56  ;;  %9879 = vst [vmem:[#allocation42_spill] sm:$0xff] %v7263_v22  ;;  %v7269_v59 = vld [vmem:[%s9669_s1 + $0xd8] sm:$0xff]  }
  0xd9   :  { %9880 = vst [vmem:[#allocation43_spill] sm:$0xff] %v7269_v59 }
  0xda   :  { %4912 = vmatpush3.bf16.msra.mxu0 %v7251_v60  ;;  %v7275_v60 = vld [vmem:[%s9669_s1 + $0x18] sm:$0xff]  }
  0xdb   :  { %4934 = vmatpush3.bf16.msra.mxu1 %v7257_v56  ;;  %4913 = vmatprep.subr.bf16.mxu0 %v7263_v22  ;;  %9881 = vst [vmem:[#allocation44_spill] sm:$0xff] %v7275_v60  ;;  %v7281_v56 = vld [vmem:[%s9669_s1 + $0x98] sm:$0xff]   ;;  %v7287_v22 = vld [vmem:[%s9669_s1 + $0x60] sm:$0xff]  }
  0xdc   :  { %4935 = vmatprep.subr.bf16.mxu1 %v7269_v59  ;;  %9882 = vst [vmem:[#allocation45_spill] sm:$0xff] %v7281_v56  ;;  %9883 = vst [vmem:[#allocation46_spill] sm:$0xff] %v7287_v22  ;;  %v7293_v59 = vld [vmem:[%s9669_s1 + $0xe0] sm:$0xff]  }
  0xdd   :  { %9884 = vst [vmem:[#allocation47_spill] sm:$0xff] %v7293_v59 }
  0xde   :  { %4914 = vmatpush3.bf16.msra.mxu0 %v7275_v60  ;;  %v7299_v60 = vld [vmem:[%s9669_s1 + $0x20] sm:$0xff]  }
  0xdf   :  { %4936 = vmatpush3.bf16.msra.mxu1 %v7281_v56  ;;  %4915 = vmatprep.subr.bf16.mxu0 %v7287_v22  ;;  %9885 = vst [vmem:[#allocation48_spill] sm:$0xff] %v7299_v60  ;;  %v7305_v56 = vld [vmem:[%s9669_s1 + $0xa0] sm:$0xff]   ;;  %v7311_v22 = vld [vmem:[%s9669_s1 + $0x68] sm:$0xff]  }
  0xe0   :  { %4937 = vmatprep.subr.bf16.mxu1 %v7293_v59  ;;  %9886 = vst [vmem:[#allocation49_spill] sm:$0xff] %v7305_v56  ;;  %9887 = vst [vmem:[#allocation50_spill] sm:$0xff] %v7311_v22  ;;  %v7317_v59 = vld [vmem:[%s9669_s1 + $0xe8] sm:$0xff]  }
  0xe1   :  { %9888 = vst [vmem:[#allocation51_spill] sm:$0xff] %v7317_v59 }
  0xe2   :  { %4916 = vmatpush3.bf16.msra.mxu0 %v7299_v60  ;;  %v7323_v60 = vld [vmem:[%s9669_s1 + $0x28] sm:$0xff]  }
  0xe3   :  { %4938 = vmatpush3.bf16.msra.mxu1 %v7305_v56  ;;  %4917 = vmatprep.subr.bf16.mxu0 %v7311_v22  ;;  %9889 = vst [vmem:[#allocation52_spill] sm:$0xff] %v7323_v60  ;;  %v7329_v56 = vld [vmem:[%s9669_s1 + $0xa8] sm:$0xff]   ;;  %v7335_v22 = vld [vmem:[%s9669_s1 + $0x70] sm:$0xff]  }
  0xe4   :  { %4939 = vmatprep.subr.bf16.mxu1 %v7317_v59  ;;  %9890 = vst [vmem:[#allocation53_spill] sm:$0xff] %v7329_v56  ;;  %9891 = vst [vmem:[#allocation54_spill] sm:$0xff] %v7335_v22  ;;  %v7341_v59 = vld [vmem:[%s9669_s1 + $0xf0] sm:$0xff]  }
  0xe5   :  { %9892 = vst [vmem:[#allocation55_spill] sm:$0xff] %v7341_v59 }
  0xe6   :  { %4918 = vmatpush3.bf16.msra.mxu0 %v7323_v60  ;;  %v7347_v60 = vld [vmem:[%s9669_s1 + $0x30] sm:$0xff]  }
  0xe7   :  { %4940 = vmatpush3.bf16.msra.mxu1 %v7329_v56  ;;  %4919 = vmatprep.subr.bf16.mxu0 %v7335_v22  ;;  %9893 = vst [vmem:[#allocation56_spill] sm:$0xff] %v7347_v60  ;;  %v7353_v56 = vld [vmem:[%s9669_s1 + $0xb0] sm:$0xff]   ;;  %v7359_v22 = vld [vmem:[%s9669_s1 + $0x78] sm:$0xff]  }
  0xe8   :  { %4941 = vmatprep.subr.bf16.mxu1 %v7341_v59  ;;  %9894 = vst [vmem:[#allocation57_spill] sm:$0xff] %v7353_v56  ;;  %9895 = vst [vmem:[#allocation58_spill] sm:$0xff] %v7359_v22  ;;  %v7365_v59 = vld [vmem:[%s9669_s1 + $0xf8] sm:$0xff]  }
  0xe9   :  { %9896 = vst [vmem:[#allocation59_spill] sm:$0xff] %v7365_v59 }
  0xea   :  { %4920 = vmatpush3.bf16.msra.mxu0 %v7347_v60  ;;  %v4468_v60 = vcombine.low %v7176_v57, %v7176_v57  ;;  %v7391_v57 = vld [vmem:[%s9669_s1 + $0xb8] sm:$0xff]  }
  0xeb   :  { %4942 = vmatpush3.bf16.msra.mxu1 %v7353_v56  ;;  %4921 = vmatprep.subr.bf16.mxu0 %v7359_v22  ;;  %v7373_v56 = vld [vmem:[%s9668_s0 + $0x70] sm:$0xff]  ;;  %v4470_v22 = vcombine.low %v7181_v20, %v7181_v20  ;;  %9898 = vst [vmem:[#allocation61_spill] sm:$0xff] %v7391_v57  ;;  %v7403_v20 = vld [vmem:[%s9669_s1 + $0x1c0] sm:$0xff]  }
  0xec   :  { %4943 = vmatprep.subr.bf16.mxu1 %v7365_v59  ;;  %v7386_v59 = vld [vmem:[%s9668_s0 + $0x78] sm:$0xff]  ;;  %9900 = vst [vmem:[#allocation63_spill] sm:$0xff] %v7403_v20 }
  0xee   :  { %4922 = vmatpush3.bf16.msra.mxu0 %v7378_v21  ;;  %v4473_v21 = vcombine.high %v7373_v56, %v7373_v56 }
  0xef   :  { %4944 = vmatpush3.bf16.msra.mxu1 %v7391_v57  ;;  %4951 = vmatprep.subr.bf16.mxu0 %v7397_v24  ;;  %v4475_v57 = vcombine.high %v7386_v59, %v7386_v59  ;;  %v7419_v24 = vld [vmem:[%s9669_s1 + $0x180] sm:$0xff]  }
  0xf0   :  { %4973 = vmatprep.subr.bf16.mxu1 %v7403_v20  ;;  %9902 = vst [vmem:[#allocation65_spill] sm:$0xff] %v7419_v24 }
  0xf1   :  { %2283 = vmatmul.mubr.bf16.vlgmr.msra.gmra.mrb[24].mxu0 %v4468_v60  ;;  %v7425_v60 = vld [vmem:[%s9669_s1 + $0x148] sm:$0xff]  }
  0xf2   :  { %2323 = vmatmul.mubr.bf16.vlgmr.msra.gmra.mrb[24].mxu1 %v4470_v22  ;;  %4952 = vmatpush3.bf16.msra.mxu0 %v7413_v61  ;;  %9903 = vst [vmem:[#allocation66_spill] sm:$0xff] %v7425_v60  ;;  %v7431_v22 = vld [vmem:[%s9669_s1 + $0x1c8] sm:$0xff]  }
  0xf3   :  { %4974 = vmatpush3.bf16.msra.mxu1 %v7419_v24  ;;  %4953 = vmatprep.subr.bf16.mxu0 %v7425_v60  ;;  %9904 = vst [vmem:[#allocation67_spill] sm:$0xff] %v7431_v22  ;;  %v7437_v24 = vld [vmem:[%s9669_s1 + $0x108] sm:$0xff]  }
  0xf4   :  { %4975 = vmatprep.subr.bf16.mxu1 %v7431_v22  ;;  %2362 = vmatprep.mubr.bf16.mxu0 %v4473_v21  ;;  %9905 = vst [vmem:[#allocation68_spill] sm:$0xff] %v7437_v24  ;;  %v7443_v60 = vld [vmem:[%s9669_s1 + $0x188] sm:$0xff]   ;;  %v7449_v22 = vld [vmem:[%s9669_s1 + $0x150] sm:$0xff]  }
  0xf5   :  { %2402 = vmatprep.mubr.bf16.mxu1 %v4475_v57  ;;  %9906 = vst [vmem:[#allocation69_spill] sm:$0xff] %v7443_v60  ;;  %9907 = vst [vmem:[#allocation70_spill] sm:$0xff] %v7449_v22  ;;  %v7455_v21 = vld [vmem:[%s9669_s1 + $0x1d0] sm:$0xff]  }
  0xf6   :  { %4954 = vmatpush3.bf16.msra.mxu0 %v7437_v24  ;;  %9908 = vst [vmem:[#allocation71_spill] sm:$0xff] %v7455_v21  ;;  %v7461_v57 = vld [vmem:[%s9669_s1 + $0x110] sm:$0xff]  }
  0xf7   :  { %4976 = vmatpush3.bf16.msra.mxu1 %v7443_v60  ;;  %4955 = vmatprep.subr.bf16.mxu0 %v7449_v22  ;;  %9909 = vst [vmem:[#allocation72_spill] sm:$0xff] %v7461_v57  ;;  %v7467_v60 = vld [vmem:[%s9669_s1 + $0x190] sm:$0xff]   ;;  %v7473_v22 = vld [vmem:[%s9669_s1 + $0x158] sm:$0xff]  }
  0xf8   :  { %4977 = vmatprep.subr.bf16.mxu1 %v7455_v21  ;;  %9910 = vst [vmem:[#allocation73_spill] sm:$0xff] %v7467_v60  ;;  %9911 = vst [vmem:[#allocation74_spill] sm:$0xff] %v7473_v22  ;;  %v7479_v21 = vld [vmem:[%s9669_s1 + $0x1d8] sm:$0xff]  }
  0xf9   :  { %9912 = vst [vmem:[#allocation75_spill] sm:$0xff] %v7479_v21 }
  0xfa   :  { %4956 = vmatpush3.bf16.msra.mxu0 %v7461_v57  ;;  %v7485_v57 = vld [vmem:[%s9669_s1 + $0x118] sm:$0xff]  }
  0xfb   :  { %4978 = vmatpush3.bf16.msra.mxu1 %v7467_v60  ;;  %4957 = vmatprep.subr.bf16.mxu0 %v7473_v22  ;;  %9913 = vst [vmem:[#allocation76_spill] sm:$0xff] %v7485_v57  ;;  %v7491_v60 = vld [vmem:[%s9669_s1 + $0x198] sm:$0xff]   ;;  %v7497_v22 = vld [vmem:[%s9669_s1 + $0x160] sm:$0xff]  }
  0xfc   :  { %4979 = vmatprep.subr.bf16.mxu1 %v7479_v21  ;;  %9914 = vst [vmem:[#allocation77_spill] sm:$0xff] %v7491_v60  ;;  %9915 = vst [vmem:[#allocation78_spill] sm:$0xff] %v7497_v22  ;;  %v7503_v21 = vld [vmem:[%s9669_s1 + $0x1e0] sm:$0xff]  }
  0xfd   :  { %9916 = vst [vmem:[#allocation79_spill] sm:$0xff] %v7503_v21 }
  0xfe   :  { %4958 = vmatpush3.bf16.msra.mxu0 %v7485_v57 }
  0xff   :  { %4980 = vmatpush3.bf16.msra.mxu1 %v7491_v60  ;;  %4959 = vmatprep.subr.bf16.mxu0 %v7497_v22  ;;  %v7509_v60 = vld [vmem:[%s9669_s1 + $0x120] sm:$0xff]  }
 0x100   :  { %4981 = vmatprep.subr.bf16.mxu1 %v7503_v21  ;;  %9917 = vst [vmem:[#allocation80_spill] sm:$0xff] %v7509_v60  ;;  %v7515_v22 = vld [vmem:[%s9670_s2] ss:$0 sm:$0xff] }
 0x101   :  { %9918 = vst [vmem:[#allocation81_spill] sm:$0xff] %v7515_v22  ;;  %v7520_v21 = vld [vmem:[%s9669_s1 + $0x1a0] sm:$0xff]  }
 0x102   :  { %4960 = vmatpush3.bf16.msra.mxu0 %v7509_v60  ;;  %9919 = vst [vmem:[#allocation82_spill] sm:$0xff] %v7520_v21  ;;  %v7526_v60 = vld [vmem:[%s9669_s1 + $0x168] sm:$0xff]  }
 0x103   :  { %4982 = vmatpush3.bf16.msra.mxu1 %v7520_v21  ;;  %9920 = vst [vmem:[#allocation83_spill] sm:$0xff] %v7526_v60  ;;  %4961 = vmatprep.subr.bf16.mxu0 %v7526_v60 }
 0x104   :  { %v4659_v57 = vpop.f32.mrb[0].mxu0  ;;  %4983 = vmatprep.subr.bf16.mxu1 %v7532_v8 }
 0x105   :  { %v4681_v24 = vpop.f32.mrb[0].mxu1  ;;  %v4660_v61 = vpop.f32.mrb[1].mxu0 }
 0x106   :  { %v4682_v20 = vpop.f32.mrb[1].mxu1  ;;  %v4661_v58 = vadd.f32 %v4660_v61, %v4659_v57  ;;  %v4662_v18 = vpop.f32.mrb[2].mxu0  ;;  %v7583_v57 = vld [vmem:[%s9669_s1 + $0x1f8] sm:$0xff]  }
 0x107   :  { %v4683_v19 = vadd.f32 %v4682_v20, %v4681_v24  ;;  %v4684_v9 = vpop.f32.mrb[2].mxu1  ;;  %v4663_v7 = vpop.f32.mrb[3].mxu0  ;;  %v7539_v24 = vld [vmem:[%s9669_s1 + $0x128] sm:$0xff]   ;;  %v7571_v20 = vld [vmem:[%s9669_s1 + $0x1b0] sm:$0xff]   ;;  %9929 = vst [vmem:[#allocation92_spill] sm:$0xff] %v7583_v57 }
 0x108   :  { %v4685_v21 = vpop.f32.mrb[3].mxu1  ;;  %v1705_v61 = vadd.f32 %v4661_v58, %v7515_v22  ;;  %9922 = vst [vmem:[#allocation85_spill] sm:$0xff] %v7539_v24  ;;  %4962 = vmatpush3.bf16.msra.mxu0 %v7539_v24  ;;  %v7547_v9 = vld [vmem:[%s9669_s1 + $0x1a8] sm:$0xff]   ;;  %v7553_v7 = vld [vmem:[%s9669_s1 + $0x170] sm:$0xff]   ;;  %9927 = vst [vmem:[#allocation90_spill] sm:$0xff] %v7571_v20 }
 0x109   :  { %9923 = vst [vmem:[#allocation86_spill] sm:$0xff] %v7547_v9  ;;  %4984 = vmatpush3.bf16.msra.mxu1 %v7547_v9  ;;  %9924 = vst [vmem:[#allocation87_spill] sm:$0xff] %v7553_v7  ;;  %4963 = vmatprep.subr.bf16.mxu0 %v7553_v7  ;;  %v7559_v58 = vld [vmem:[%s9669_s1 + $0x1f0] sm:$0xff]   ;;  %v7577_v21 = vld [vmem:[%s9669_s1 + $0x178] sm:$0xff]  }
 0x10a   :  { %v7542_v18 = vadd.f32 %v4683_v19, %v1705_v61  ;;  %9925 = vst [vmem:[#allocation88_spill] sm:$0xff] %v7559_v58  ;;  %4985 = vmatprep.subr.bf16.mxu1 %v7559_v58  ;;  %v7565_v19 = vld [vmem:[%s9669_s1 + $0x130] sm:$0xff]   ;;  %9928 = vst [vmem:[#allocation91_spill] sm:$0xff] %v7577_v21  ;;  %v4472_v61 = vcombine.low %v7373_v56, %v7373_v56  ;;  %v7609_v56 = vld [vmem:[%s9669_s1 + $0x1b8] sm:$0xff]  }
 0x10b   :  { %9926 = vst [vmem:[#allocation89_spill] sm:$0xff] %v7565_v19  ;;  %9931 = vst [vmem:[#allocation94_spill] sm:$0xff] %v7609_v56  ;;  %v7615_v58 = vld [vmem:[%s9669_s1 + $0x240] sm:$0xff]   ;;  %v7745_v9 = vld [vmem:[%s9669_s1 + $0x2e8] sm:$0xff]  }
 0x10c   :  { %4964 = vmatpush3.bf16.msra.mxu0 %v7565_v19  ;;  %v7596_v19 = vld [vmem:[%s9669_s1 + $0x138] sm:$0xff]   ;;  %9932 = vst [vmem:[#allocation95_spill] sm:$0xff] %v7615_v58  ;;  %v7631_v22 = vld [vmem:[%s9669_s1 + $0x200] sm:$0xff]   ;;  %9952 = vst [vmem:[#allocation115_spill] sm:$0xff] %v7745_v9 }
 0x10d   :  { %4986 = vmatpush3.bf16.msra.mxu1 %v7571_v20  ;;  %4965 = vmatprep.subr.bf16.mxu0 %v7577_v21  ;;  %v7591_v20 = vld [vmem:[%s9668_s0 + $0x80] sm:$0xff]  ;;  %9930 = vst [vmem:[#allocation93_spill] sm:$0xff] %v7596_v19  ;;  %v4474_v21 = vcombine.low %v7386_v59, %v7386_v59  ;;  %9934 = vst [vmem:[#allocation97_spill] sm:$0xff] %v7631_v22 }
 0x10e   :  { %4987 = vmatprep.subr.bf16.mxu1 %v7583_v57  ;;  %v7604_v57 = vld [vmem:[%s9668_s0 + $0x88] sm:$0xff]  ;;  %v7621_v59 = vld [vmem:[%s9669_s1 + $0x2c0] sm:$0xff]  }
 0x10f   :  { %9933 = vst [vmem:[#allocation96_spill] sm:$0xff] %v7621_v59 }
 0x110   :  { %4966 = vmatpush3.bf16.msra.mxu0 %v7596_v19  ;;  %v4477_v19 = vcombine.high %v7591_v20, %v7591_v20 }
 0x111   :  { %4988 = vmatpush3.bf16.msra.mxu1 %v7609_v56  ;;  %4995 = vmatprep.subr.bf16.mxu0 %v7615_v58  ;;  %v4479_v56 = vcombine.high %v7604_v57, %v7604_v57  ;;  %v7637_v58 = vld [vmem:[%s9669_s1 + $0x280] sm:$0xff]  }
 0x112   :  { %5017 = vmatprep.subr.bf16.mxu1 %v7621_v59  ;;  %9935 = vst [vmem:[#allocation98_spill] sm:$0xff] %v7637_v58 }
 0x113   :  { %2363 = vmatmul.mubr.bf16.vlgmr.msra.gmra.mrb[28].mxu0 %v4472_v61  ;;  %v7643_v61 = vld [vmem:[%s9669_s1 + $0x248] sm:$0xff]  }
 0x114   :  { %2403 = vmatmul.mubr.bf16.vlgmr.msra.gmra.mrb[28].mxu1 %v4474_v21  ;;  %4996 = vmatpush3.bf16.msra.mxu0 %v7631_v22  ;;  %9936 = vst [vmem:[#allocation99_spill] sm:$0xff] %v7643_v61  ;;  %v7649_v21 = vld [vmem:[%s9669_s1 + $0x2c8] sm:$0xff]  }
 0x115   :  { %5018 = vmatpush3.bf16.msra.mxu1 %v7637_v58  ;;  %4997 = vmatprep.subr.bf16.mxu0 %v7643_v61  ;;  %9937 = vst [vmem:[#allocation100_spill] sm:$0xff] %v7649_v21  ;;  %v7655_v58 = vld [vmem:[%s9669_s1 + $0x208] sm:$0xff]  }
 0x116   :  { %5019 = vmatprep.subr.bf16.mxu1 %v7649_v21  ;;  %2442 = vmatprep.mubr.bf16.mxu0 %v4477_v19  ;;  %9938 = vst [vmem:[#allocation101_spill] sm:$0xff] %v7655_v58  ;;  %v7661_v61 = vld [vmem:[%s9669_s1 + $0x288] sm:$0xff]   ;;  %v7667_v21 = vld [vmem:[%s9669_s1 + $0x250] sm:$0xff]  }
 0x117   :  { %2482 = vmatprep.mubr.bf16.mxu1 %v4479_v56  ;;  %9939 = vst [vmem:[#allocation102_spill] sm:$0xff] %v7661_v61  ;;  %9940 = vst [vmem:[#allocation103_spill] sm:$0xff] %v7667_v21  ;;  %v7673_v19 = vld [vmem:[%s9669_s1 + $0x2d0] sm:$0xff]  }
 0x118   :  { %4998 = vmatpush3.bf16.msra.mxu0 %v7655_v58  ;;  %9941 = vst [vmem:[#allocation104_spill] sm:$0xff] %v7673_v19  ;;  %v7679_v56 = vld [vmem:[%s9669_s1 + $0x210] sm:$0xff]  }
 0x119   :  { %5020 = vmatpush3.bf16.msra.mxu1 %v7661_v61  ;;  %4999 = vmatprep.subr.bf16.mxu0 %v7667_v21  ;;  %9942 = vst [vmem:[#allocation105_spill] sm:$0xff] %v7679_v56  ;;  %v7685_v61 = vld [vmem:[%s9669_s1 + $0x290] sm:$0xff]   ;;  %v7691_v21 = vld [vmem:[%s9669_s1 + $0x258] sm:$0xff]  }
 0x11a   :  { %5021 = vmatprep.subr.bf16.mxu1 %v7673_v19  ;;  %9943 = vst [vmem:[#allocation106_spill] sm:$0xff] %v7685_v61  ;;  %9944 = vst [vmem:[#allocation107_spill] sm:$0xff] %v7691_v21  ;;  %v7697_v19 = vld [vmem:[%s9669_s1 + $0x2d8] sm:$0xff]  }
 0x11b   :  { %9945 = vst [vmem:[#allocation108_spill] sm:$0xff] %v7697_v19 }
 0x11c   :  { %5000 = vmatpush3.bf16.msra.mxu0 %v7679_v56  ;;  %v7703_v56 = vld [vmem:[%s9669_s1 + $0x218] sm:$0xff]  }
 0x11d   :  { %5022 = vmatpush3.bf16.msra.mxu1 %v7685_v61  ;;  %5001 = vmatprep.subr.bf16.mxu0 %v7691_v21  ;;  %9946 = vst [vmem:[#allocation109_spill] sm:$0xff] %v7703_v56  ;;  %v7709_v61 = vld [vmem:[%s9669_s1 + $0x298] sm:$0xff]   ;;  %v7715_v21 = vld [vmem:[%s9669_s1 + $0x260] sm:$0xff]  }
 0x11e   :  { %5023 = vmatprep.subr.bf16.mxu1 %v7697_v19  ;;  %9947 = vst [vmem:[#allocation110_spill] sm:$0xff] %v7709_v61  ;;  %9948 = vst [vmem:[#allocation111_spill] sm:$0xff] %v7715_v21  ;;  %v7721_v19 = vld [vmem:[%s9669_s1 + $0x2e0] sm:$0xff]  }
 0x11f   :  { %9949 = vst [vmem:[#allocation112_spill] sm:$0xff] %v7721_v19 }
 0x120   :  { %5002 = vmatpush3.bf16.msra.mxu0 %v7703_v56  ;;  %v7727_v56 = vld [vmem:[%s9669_s1 + $0x220] sm:$0xff]  }
 0x121   :  { %5024 = vmatpush3.bf16.msra.mxu1 %v7709_v61  ;;  %5003 = vmatprep.subr.bf16.mxu0 %v7715_v21  ;;  %9950 = vst [vmem:[#allocation113_spill] sm:$0xff] %v7727_v56  ;;  %v7733_v21 = vld [vmem:[%s9669_s1 + $0x2a0] sm:$0xff]  }
 0x122   :  { %5025 = vmatprep.subr.bf16.mxu1 %v7721_v19  ;;  %9951 = vst [vmem:[#allocation114_spill] sm:$0xff] %v7733_v21  ;;  %v7739_v19 = vld [vmem:[%s9669_s1 + $0x268] sm:$0xff]  }
 0x124   :  { %5004 = vmatpush3.bf16.msra.mxu0 %v7727_v56  ;;  %v4703_v61 = vpop.f32.mrb[4].mxu0 }
 0x125   :  { %v4725_v58 = vpop.f32.mrb[4].mxu1  ;;  %5026 = vmatpush3.bf16.msra.mxu1 %v7733_v21  ;;  %v4704_v22 = vpop.f32.mrb[5].mxu0  ;;  %5005 = vmatprep.subr.bf16.mxu0 %v7739_v19 }
 0x126   :  { %v4726_v59 = vpop.f32.mrb[5].mxu1  ;;  %v4705_v7 = vadd.f32 %v4704_v22, %v4703_v61  ;;  %5027 = vmatprep.subr.bf16.mxu1 %v7745_v9  ;;  %v4706_v24 = vpop.f32.mrb[6].mxu0  ;;  %v7758_v22 = vld [vmem:[%s9669_s1 + $0x2a8] sm:$0xff]   ;;  %v7804_v61 = vld [vmem:[%s9668_s0 + $0x90] sm:$0xff] }
 0x127   :  { %v4727_v56 = vadd.f32 %v4726_v59, %v4725_v58  ;;  %v4728_v21 = vpop.f32.mrb[6].mxu1  ;;  %v4707_v8 = vpop.f32.mrb[7].mxu0  ;;  %9954 = vst [vmem:[#allocation117_spill] sm:$0xff] %v7758_v22  ;;  %v7772_v24 = vld [vmem:[%s9669_s1 + $0x2f0] sm:$0xff]   ;;  %v7796_v58 = vld [vmem:[%s9669_s1 + $0x2f8] sm:$0xff]   ;;  %v4476_v59 = vcombine.low %v7591_v20, %v7591_v20  ;;  %v7965_v9 = vld [vmem:[%s9669_s1 + $0x328] sm:$0xff]  }
 0x128   :  { %v4729_v60 = vpop.f32.mrb[7].mxu1  ;;  %v1785_v6 = vadd.f32 %v4705_v7, %v7542_v18  ;;  %5006 = vmatpush3.bf16.msra.mxu0 %v7752_v5  ;;  %v7764_v8 = vld [vmem:[%s9669_s1 + $0x270] sm:$0xff]   ;;  %9956 = vst [vmem:[#allocation119_spill] sm:$0xff] %v7772_v24  ;;  %9960 = vst [vmem:[#allocation123_spill] sm:$0xff] %v7796_v58  ;;  %v7809_v21 = vld [vmem:[%s9669_s1 + $0x238] sm:$0xff]  }
 0x129   :  { %5028 = vmatpush3.bf16.msra.mxu1 %v7758_v22  ;;  %9955 = vst [vmem:[#allocation118_spill] sm:$0xff] %v7764_v8  ;;  %5007 = vmatprep.subr.bf16.mxu0 %v7764_v8  ;;  %v7778_v18 = vld [vmem:[%s9669_s1 + $0x230] sm:$0xff]   ;;  %9961 = vst [vmem:[#allocation124_spill] sm:$0xff] %v7809_v21  ;;  %v7822_v20 = vld [vmem:[%s9669_s1 + $0x2b8] sm:$0xff]  }
 0x12a   :  { %v7767_v60 = vadd.f32 %v4727_v56, %v1785_v6  ;;  %5029 = vmatprep.subr.bf16.mxu1 %v7772_v24  ;;  %9957 = vst [vmem:[#allocation120_spill] sm:$0xff] %v7778_v18  ;;  %v7784_v7 = vld [vmem:[%s9669_s1 + $0x2b0] sm:$0xff]   ;;  %v7790_v6 = vld [vmem:[%s9669_s1 + $0x278] sm:$0xff]   ;;  %v4478_v56 = vcombine.low %v7604_v57, %v7604_v57  ;;  %9962 = vst [vmem:[#allocation125_spill] sm:$0xff] %v7822_v20 }
 0x12b   :  { %9958 = vst [vmem:[#allocation121_spill] sm:$0xff] %v7784_v7  ;;  %9959 = vst [vmem:[#allocation122_spill] sm:$0xff] %v7790_v6  ;;  %v7834_v57 = vld [vmem:[%s9669_s1 + $0x3c0] sm:$0xff]  }
 0x12c   :  { %5008 = vmatpush3.bf16.msra.mxu0 %v7778_v18  ;;  %9964 = vst [vmem:[#allocation127_spill] sm:$0xff] %v7834_v57 }
 0x12d   :  { %5030 = vmatpush3.bf16.msra.mxu1 %v7784_v7  ;;  %5009 = vmatprep.subr.bf16.mxu0 %v7790_v6  ;;  %v7828_v6 = vld [vmem:[%s9669_s1 + $0x340] sm:$0xff]  }
 0x12e   :  { %5031 = vmatprep.subr.bf16.mxu1 %v7796_v58  ;;  %v7817_v58 = vld [vmem:[%s9668_s0 + $0x98] sm:$0xff]  ;;  %9963 = vst [vmem:[#allocation126_spill] sm:$0xff] %v7828_v6  ;;  %v7844_v7 = vld [vmem:[%s9669_s1 + $0x300] sm:$0xff]  }
 0x12f   :  { %9965 = vst [vmem:[#allocation128_spill] sm:$0xff] %v7844_v7 }
 0x130   :  { %5010 = vmatpush3.bf16.msra.mxu0 %v7809_v21  ;;  %v4481_v21 = vcombine.high %v7804_v61, %v7804_v61 }
 0x131   :  { %5032 = vmatpush3.bf16.msra.mxu1 %v7822_v20  ;;  %5039 = vmatprep.subr.bf16.mxu0 %v7828_v6  ;;  %v4483_v20 = vcombine.high %v7817_v58, %v7817_v58  ;;  %v7850_v6 = vld [vmem:[%s9669_s1 + $0x380] sm:$0xff]  }
 0x132   :  { %5061 = vmatprep.subr.bf16.mxu1 %v7834_v57  ;;  %9966 = vst [vmem:[#allocation129_spill] sm:$0xff] %v7850_v6 }
 0x133   :  { %2443 = vmatmul.mubr.bf16.vlgmr.msra.gmra.mrb[32].mxu0 %v4476_v59  ;;  %v7856_v59 = vld [vmem:[%s9669_s1 + $0x348] sm:$0xff]  }
 0x134   :  { %2483 = vmatmul.mubr.bf16.vlgmr.msra.gmra.mrb[32].mxu1 %v4478_v56  ;;  %5040 = vmatpush3.bf16.msra.mxu0 %v7844_v7  ;;  %9967 = vst [vmem:[#allocation130_spill] sm:$0xff] %v7856_v59  ;;  %v7862_v56 = vld [vmem:[%s9669_s1 + $0x3c8] sm:$0xff]  }
 0x135   :  { %5062 = vmatpush3.bf16.msra.mxu1 %v7850_v6  ;;  %5041 = vmatprep.subr.bf16.mxu0 %v7856_v59  ;;  %9968 = vst [vmem:[#allocation131_spill] sm:$0xff] %v7862_v56  ;;  %v7868_v6 = vld [vmem:[%s9669_s1 + $0x308] sm:$0xff]  }
 0x136   :  { %5063 = vmatprep.subr.bf16.mxu1 %v7862_v56  ;;  %2522 = vmatprep.mubr.bf16.mxu0 %v4481_v21  ;;  %9969 = vst [vmem:[#allocation132_spill] sm:$0xff] %v7868_v6  ;;  %v7874_v59 = vld [vmem:[%s9669_s1 + $0x388] sm:$0xff]   ;;  %v7880_v56 = vld [vmem:[%s9669_s1 + $0x350] sm:$0xff]  }
 0x137   :  { %2562 = vmatprep.mubr.bf16.mxu1 %v4483_v20  ;;  %9970 = vst [vmem:[#allocation133_spill] sm:$0xff] %v7874_v59  ;;  %9971 = vst [vmem:[#allocation134_spill] sm:$0xff] %v7880_v56  ;;  %v7886_v21 = vld [vmem:[%s9669_s1 + $0x3d0] sm:$0xff]  }
 0x138   :  { %5042 = vmatpush3.bf16.msra.mxu0 %v7868_v6  ;;  %9972 = vst [vmem:[#allocation135_spill] sm:$0xff] %v7886_v21  ;;  %v7892_v20 = vld [vmem:[%s9669_s1 + $0x310] sm:$0xff]   ;;  %v7946_v6 = vld [vmem:[%s9669_s1 + $0x3a0] sm:$0xff]  }
 0x139   :  { %5064 = vmatpush3.bf16.msra.mxu1 %v7874_v59  ;;  %5043 = vmatprep.subr.bf16.mxu0 %v7880_v56  ;;  %9973 = vst [vmem:[#allocation136_spill] sm:$0xff] %v7892_v20  ;;  %v7898_v59 = vld [vmem:[%s9669_s1 + $0x390] sm:$0xff]   ;;  %v7904_v56 = vld [vmem:[%s9669_s1 + $0x358] sm:$0xff]   ;;  %9982 = vst [vmem:[#allocation145_spill] sm:$0xff] %v7946_v6 }
 0x13a   :  { %5065 = vmatprep.subr.bf16.mxu1 %v7886_v21  ;;  %9974 = vst [vmem:[#allocation137_spill] sm:$0xff] %v7898_v59  ;;  %9975 = vst [vmem:[#allocation138_spill] sm:$0xff] %v7904_v56  ;;  %v7910_v21 = vld [vmem:[%s9669_s1 + $0x3d8] sm:$0xff]  }
 0x13b   :  { %9976 = vst [vmem:[#allocation139_spill] sm:$0xff] %v7910_v21 }
 0x13c   :  { %5044 = vmatpush3.bf16.msra.mxu0 %v7892_v20  ;;  %v7916_v20 = vld [vmem:[%s9669_s1 + $0x318] sm:$0xff]  }
 0x13d   :  { %5066 = vmatpush3.bf16.msra.mxu1 %v7898_v59  ;;  %5045 = vmatprep.subr.bf16.mxu0 %v7904_v56  ;;  %9977 = vst [vmem:[#allocation140_spill] sm:$0xff] %v7916_v20  ;;  %v7922_v59 = vld [vmem:[%s9669_s1 + $0x398] sm:$0xff]   ;;  %v7928_v56 = vld [vmem:[%s9669_s1 + $0x360] sm:$0xff]  }
 0x13e   :  { %5067 = vmatprep.subr.bf16.mxu1 %v7910_v21  ;;  %9978 = vst [vmem:[#allocation141_spill] sm:$0xff] %v7922_v59  ;;  %9979 = vst [vmem:[#allocation142_spill] sm:$0xff] %v7928_v56  ;;  %v7934_v21 = vld [vmem:[%s9669_s1 + $0x3e0] sm:$0xff]  }
 0x13f   :  { %9980 = vst [vmem:[#allocation143_spill] sm:$0xff] %v7934_v21 }
 0x140   :  { %5046 = vmatpush3.bf16.msra.mxu0 %v7916_v20  ;;  %v7940_v20 = vld [vmem:[%s9669_s1 + $0x320] sm:$0xff]  }
 0x141   :  { %5068 = vmatpush3.bf16.msra.mxu1 %v7922_v59  ;;  %5047 = vmatprep.subr.bf16.mxu0 %v7928_v56  ;;  %9981 = vst [vmem:[#allocation144_spill] sm:$0xff] %v7940_v20 }
 0x142   :  { %5069 = vmatprep.subr.bf16.mxu1 %v7934_v21  ;;  %v7952_v21 = vld [vmem:[%s9669_s1 + $0x368] sm:$0xff]  }
 0x144   :  { %5048 = vmatpush3.bf16.msra.mxu0 %v7940_v20  ;;  %v4747_v59 = vpop.f32.mrb[8].mxu0  ;;  %v7958_v20 = vld [vmem:[%s9669_s1 + $0x3e8] sm:$0xff]  }
 0x145   :  { %5070 = vmatpush3.bf16.msra.mxu1 %v7946_v6  ;;  %v4769_v56 = vpop.f32.mrb[8].mxu1  ;;  %v4748_v7 = vpop.f32.mrb[9].mxu0  ;;  %5049 = vmatprep.subr.bf16.mxu0 %v7952_v21 }
 0x146   :  { %v4749_v57 = vadd.f32 %v4748_v7, %v4747_v59  ;;  %v4770_v18 = vpop.f32.mrb[9].mxu1  ;;  %5071 = vmatprep.subr.bf16.mxu1 %v7958_v20  ;;  %v4750_v24 = vpop.f32.mrb[10].mxu0  ;;  %v7971_v59 = vld [vmem:[%s9669_s1 + $0x3a8] sm:$0xff]  }
 0x147   :  { %v4771_v6 = vadd.f32 %v4770_v18, %v4769_v56  ;;  %v4772_v8 = vpop.f32.mrb[10].mxu1  ;;  %v4751_v22 = vpop.f32.mrb[11].mxu0  ;;  %v10000_v18 = vld [vmem:[#allocation22_spill] sm:$0xff]  ;;  %v10003_v56 = vld [vmem:[#allocation25_spill] sm:$0xff] }
 0x148   :  { %v1865_v5 = vadd.f32 %v4749_v57, %v7767_v60  ;;  %5050 = vmatpush3.bf16.msra.mxu0 %v7965_v9  ;;  %v4773_v7 = vpop.f32.mrb[11].mxu1  ;;  %v4480_v8 = vcombine.low %v7804_v61, %v7804_v61  ;;  %v4464_v60 = vld [vmem:[%s9668_s0 + $0xa0] sm:$0xff]  ;;  %v10002_v57 = vld [vmem:[#allocation24_spill] sm:$0xff] }
 0x149   :  { %5072 = vmatpush3.bf16.msra.mxu1 %v7971_v59  ;;  %5051 = vmatprep.subr.bf16.mxu0 %v6727_v10  ;;  %v4482_v10 = vcombine.low %v7817_v58, %v7817_v58  ;;  %v10001_v58 = vld [vmem:[#allocation23_spill] sm:$0xff]  ;;  %v10004_v7 = vld [vmem:[#allocation26_spill] sm:$0xff] }
 0x14a   :  { %v1905_v22 = vadd.f32 %v4771_v6, %v1865_v5  ;;  %5073 = vmatprep.subr.bf16.mxu1 %v6732_v11  ;;  %v4465_v11 = vld [vmem:[%s9668_s0 + $0xa8] sm:$0xff] }
 0x14c   :  { %5052 = vmatpush3.bf16.msra.mxu0 %v6738_v12  ;;  %v4485_v12 = vcombine.high %v4464_v60, %v4464_v60 }
 0x14d   :  { %5074 = vmatpush3.bf16.msra.mxu1 %v6744_v13  ;;  %5053 = vmatprep.subr.bf16.mxu0 %v6749_v14  ;;  %v4487_v13 = vcombine.high %v4465_v11, %v4465_v11 }
 0x14e   :  { %5075 = vmatprep.subr.bf16.mxu1 %v6756_v15 }
 0x150   :  { %5054 = vmatpush3.bf16.msra.mxu0 %v6762_v16 }
 0x151   :  { %5076 = vmatpush3.bf16.msra.mxu1 %v6768_v17  ;;  %5083 = vmatprep.subr.bf16.mxu0 %v6781_v23 }
 0x152   :  { %5105 = vmatprep.subr.bf16.mxu1 %v6786_v25 }
 0x153   :  { %2523 = vmatmul.mubr.bf16.vlgmr.msra.gmra.mrb[36].mxu0 %v4480_v8 }
 0x154   :  { %2563 = vmatmul.mubr.bf16.vlgmr.msra.gmra.mrb[36].mxu1 %v4482_v10  ;;  %5084 = vmatpush3.bf16.msra.mxu0 %v6792_v26  ;;  %v10006_v10 = vld [vmem:[#allocation28_spill] sm:$0xff] }
 0x155   :  { %5106 = vmatpush3.bf16.msra.mxu1 %v6797_v27  ;;  %5085 = vmatprep.subr.bf16.mxu0 %v6803_v28 }
 0x156   :  { %5107 = vmatprep.subr.bf16.mxu1 %v6810_v29  ;;  %2602 = vmatprep.mubr.bf16.mxu0 %v4485_v12  ;;  %v8069_v12 = vld [vmem:[%s9668_s0 + $0xc8] sm:$0xff] }
 0x157   :  { %2642 = vmatprep.mubr.bf16.mxu1 %v4487_v13  ;;  %v10007_v13 = vld [vmem:[#allocation29_spill] sm:$0xff] }
 0x158   :  { %5086 = vmatpush3.bf16.msra.mxu0 %v6816_v30 }
 0x159   :  { %5108 = vmatpush3.bf16.msra.mxu1 %v6822_v31  ;;  %5087 = vmatprep.subr.bf16.mxu0 %v6827_v32  ;;  %v4484_v32 = vcombine.low %v4464_v60, %v4464_v60  ;;  %v8063_v60 = vld [vmem:[%s9668_s0 + $0xc0] sm:$0xff] }
 0x15a   :  { %5109 = vmatprep.subr.bf16.mxu1 %v6834_v33  ;;  %v4466_v33 = vld [vmem:[%s9668_s0 + $0xb0] sm:$0xff] }
 0x15b   :  { %v4488_v8 = vcombine.low %v4466_v33, %v4466_v33 }
 0x15c   :  { %5088 = vmatpush3.bf16.msra.mxu0 %v6840_v34  ;;  %v4486_v34 = vcombine.low %v4465_v11, %v4465_v11 }
 0x15d   :  { %5110 = vmatpush3.bf16.msra.mxu1 %v6846_v35  ;;  %5089 = vmatprep.subr.bf16.mxu0 %v6851_v36  ;;  %v4467_v35 = vld [vmem:[%s9668_s0 + $0xb8] sm:$0xff]  ;;  %v4489_v36 = vcombine.high %v4466_v33, %v4466_v33  ;;  %v10019_v33 = vld [vmem:[#allocation41_spill] sm:$0xff] }
 0x15e   :  { %5111 = vmatprep.subr.bf16.mxu1 %v6858_v37  ;;  %v4491_v37 = vcombine.high %v4467_v35, %v4467_v35  ;;  %v4490_v11 = vcombine.low %v4467_v35, %v4467_v35  ;;  %v10021_v35 = vld [vmem:[#allocation43_spill] sm:$0xff] }
 0x160   :  { %5090 = vmatpush3.bf16.msra.mxu0 %v6864_v38  ;;  %v9983_v38 = vld [vmem:[#allocation5_spill] sm:$0xff] }
 0x161   :  { %5112 = vmatpush3.bf16.msra.mxu1 %v6870_v39  ;;  %5091 = vmatprep.subr.bf16.mxu0 %v6875_v40  ;;  %v9984_v39 = vld [vmem:[#allocation6_spill] sm:$0xff]  ;;  %v9985_v40 = vld [vmem:[#allocation7_spill] sm:$0xff] }
 0x162   :  { %5113 = vmatprep.subr.bf16.mxu1 %v6882_v41  ;;  %v9986_v41 = vld [vmem:[#allocation8_spill] sm:$0xff] }
 0x164   :  { %5092 = vmatpush3.bf16.msra.mxu0 %v6888_v42  ;;  %v4791_v14 = vpop.f32.mrb[12].mxu0  ;;  %v9987_v42 = vld [vmem:[#allocation9_spill] sm:$0xff] }
 0x165   :  { %5114 = vmatpush3.bf16.msra.mxu1 %v6894_v43  ;;  %5093 = vmatprep.subr.bf16.mxu0 %v6899_v44  ;;  %v4813_v15 = vpop.f32.mrb[12].mxu1  ;;  %v4792_v16 = vpop.f32.mrb[13].mxu0  ;;  %v9988_v43 = vld [vmem:[#allocation10_spill] sm:$0xff]  ;;  %v9989_v44 = vld [vmem:[#allocation11_spill] sm:$0xff] }
 0x166   :  { %5115 = vmatprep.subr.bf16.mxu1 %v6906_v45  ;;  %v4793_v17 = vadd.f32 %v4792_v16, %v4791_v14  ;;  %v4814_v23 = vpop.f32.mrb[13].mxu1  ;;  %v4794_v25 = vpop.f32.mrb[14].mxu0  ;;  %v9990_v45 = vld [vmem:[#allocation12_spill] sm:$0xff]  ;;  %v10008_v14 = vld [vmem:[#allocation30_spill] sm:$0xff]  ;;  %v4505_v16 = vcombine.high %v8063_v60, %v8063_v60 }
 0x167   :  { %v4815_v26 = vadd.f32 %v4814_v23, %v4813_v15  ;;  %v4816_v27 = vpop.f32.mrb[14].mxu1  ;;  %v4795_v28 = vpop.f32.mrb[15].mxu0  ;;  %v10009_v15 = vld [vmem:[#allocation31_spill] sm:$0xff]  ;;  %v10010_v23 = vld [vmem:[#allocation32_spill] sm:$0xff]  ;;  %v10011_v25 = vld [vmem:[#allocation33_spill] sm:$0xff] }
 0x168   :  { %5094 = vmatpush3.bf16.msra.mxu0 %v6912_v46  ;;  %v1945_v29 = vadd.f32 %v4793_v17, %v1905_v22  ;;  %v4817_v30 = vpop.f32.mrb[15].mxu1  ;;  %v9991_v46 = vld [vmem:[#allocation13_spill] sm:$0xff]  ;;  %v10005_v22 = vld [vmem:[#allocation27_spill] sm:$0xff]  ;;  %v4507_v17 = vcombine.high %v8069_v12, %v8069_v12  ;;  %v10014_v28 = vld [vmem:[#allocation36_spill] sm:$0xff] }
 0x169   :  { %5116 = vmatpush3.bf16.msra.mxu1 %v6918_v47  ;;  %5095 = vmatprep.subr.bf16.mxu0 %v6923_v48  ;;  %v9992_v47 = vld [vmem:[#allocation14_spill] sm:$0xff]  ;;  %v9993_v48 = vld [vmem:[#allocation15_spill] sm:$0xff] }
 0x16a   :  { %5117 = vmatprep.subr.bf16.mxu1 %v6930_v49  ;;  %v1985_v31 = vadd.f32 %v4815_v26, %v1945_v29  ;;  %v9994_v49 = vld [vmem:[#allocation16_spill] sm:$0xff]  ;;  %v10012_v26 = vld [vmem:[#allocation34_spill] sm:$0xff]  ;;  %v10013_v27 = vld [vmem:[#allocation35_spill] sm:$0xff] }
 0x16b   :  { %v10015_v29 = vld [vmem:[#allocation37_spill] sm:$0xff]  ;;  %v10016_v30 = vld [vmem:[#allocation38_spill] sm:$0xff] }
 0x16c   :  { %5096 = vmatpush3.bf16.msra.mxu0 %v6936_v50  ;;  %v9995_v50 = vld [vmem:[#allocation17_spill] sm:$0xff] }
 0x16d   :  { %5118 = vmatpush3.bf16.msra.mxu1 %v6942_v51  ;;  %5097 = vmatprep.subr.bf16.mxu0 %v6947_v52  ;;  %v9996_v51 = vld [vmem:[#allocation18_spill] sm:$0xff] }
 0x16e   :  { %5119 = vmatprep.subr.bf16.mxu1 %v6954_v53 }
 0x170   :  { %5098 = vmatpush3.bf16.msra.mxu0 %v6960_v54  ;;  %v9997_v54 = vld [vmem:[#allocation19_spill] sm:$0xff] }
 0x171   :  { %5120 = vmatpush3.bf16.msra.mxu1 %v6966_v55  ;;  %5127 = vmatprep.subr.bf16.mxu0 %v6979_v62 }
 0x172   :  { %5149 = vmatprep.subr.bf16.mxu1 %v6984_v63 }
 0x173   :  { %2603 = vmatmul.mubr.bf16.vlgmr.msra.gmra.mrb[40].mxu0 %v4484_v32  ;;  %v10018_v32 = vld [vmem:[#allocation40_spill] sm:$0xff] }
 0x174   :  { %2643 = vmatmul.mubr.bf16.vlgmr.msra.gmra.mrb[40].mxu1 %v4486_v34  ;;  %5128 = vmatpush3.bf16.msra.mxu0 %v6990_v0  ;;  %v10020_v34 = vld [vmem:[#allocation42_spill] sm:$0xff] }
 0x175   :  { %5150 = vmatpush3.bf16.msra.mxu1 %v6995_v1  ;;  %5129 = vmatprep.subr.bf16.mxu0 %v7002_v2 }
 0x176   :  { %5151 = vmatprep.subr.bf16.mxu1 %v7008_v3  ;;  %2682 = vmatprep.mubr.bf16.mxu0 %v4489_v36  ;;  %v9998_v3 = vld [vmem:[#allocation20_spill] sm:$0xff] }
 0x177   :  { %2722 = vmatprep.mubr.bf16.mxu1 %v4491_v37  ;;  %v10022_v36 = vld [vmem:[#allocation44_spill] sm:$0xff]  ;;  %v10023_v37 = vld [vmem:[#allocation45_spill] sm:$0xff] }
 0x178   :  { %5130 = vmatpush3.bf16.msra.mxu0 %v7014_v4  ;;  %v9999_v4 = vld [vmem:[#allocation21_spill] sm:$0xff] }
 0x179   :  { %5152 = vmatpush3.bf16.msra.mxu1 %v9983_v38  ;;  %5131 = vmatprep.subr.bf16.mxu0 %v9984_v39  ;;  %v10024_v38 = vld [vmem:[#allocation46_spill] sm:$0xff]  ;;  %v10025_v39 = vld [vmem:[#allocation47_spill] sm:$0xff] }
 0x17a   :  { %5153 = vmatprep.subr.bf16.mxu1 %v9985_v40  ;;  %v10026_v40 = vld [vmem:[#allocation48_spill] sm:$0xff] }
 0x17c   :  { %5132 = vmatpush3.bf16.msra.mxu0 %v9986_v41  ;;  %v10027_v41 = vld [vmem:[#allocation49_spill] sm:$0xff] }
 0x17d   :  { %5154 = vmatpush3.bf16.msra.mxu1 %v9987_v42  ;;  %5133 = vmatprep.subr.bf16.mxu0 %v9988_v43  ;;  %v10028_v42 = vld [vmem:[#allocation50_spill] sm:$0xff] }
 0x17e   :  { %5155 = vmatprep.subr.bf16.mxu1 %v9989_v44  ;;  %v10029_v44 = vld [vmem:[#allocation51_spill] sm:$0xff] }
 0x180   :  { %5134 = vmatpush3.bf16.msra.mxu0 %v9990_v45 }
 0x181   :  { %5156 = vmatpush3.bf16.msra.mxu1 %v9991_v46  ;;  %5135 = vmatprep.subr.bf16.mxu0 %v9992_v47 }
 0x182   :  { %5157 = vmatprep.subr.bf16.mxu1 %v9993_v48 }
 0x184   :  { %5136 = vmatpush3.bf16.msra.mxu0 %v9994_v49  ;;  %v4835_v52 = vpop.f32.mrb[16].mxu0 }
 0x185   :  { %5158 = vmatpush3.bf16.msra.mxu1 %v9995_v50  ;;  %5137 = vmatprep.subr.bf16.mxu0 %v9996_v51  ;;  %v4857_v53 = vpop.f32.mrb[16].mxu1  ;;  %v4836_v55 = vpop.f32.mrb[17].mxu0  ;;  %v10030_v50 = vld [vmem:[#allocation52_spill] sm:$0xff] }
 0x186   :  { %5159 = vmatprep.subr.bf16.mxu1 %v9997_v54  ;;  %v4858_v62 = vpop.f32.mrb[17].mxu1  ;;  %v4837_v63 = vadd.f32 %v4836_v55, %v4835_v52  ;;  %v4838_v1 = vpop.f32.mrb[18].mxu0  ;;  %v10032_v55 = vld [vmem:[#allocation54_spill] sm:$0xff] }
 0x187   :  { %v4859_v0 = vadd.f32 %v4858_v62, %v4857_v53  ;;  %v4860_v2 = vpop.f32.mrb[18].mxu1  ;;  %v4839_v5 = vpop.f32.mrb[19].mxu0  ;;  %v10031_v53 = vld [vmem:[#allocation53_spill] sm:$0xff] }
 0x188   :  { %5138 = vmatpush3.bf16.msra.mxu0 %v9998_v3  ;;  %v4861_v24 = vpop.f32.mrb[19].mxu1  ;;  %v2025_v6 = vadd.f32 %v4837_v63, %v1985_v31  ;;  %v10017_v31 = vld [vmem:[#allocation39_spill] sm:$0xff]  ;;  %v10034_v2 = vld [vmem:[#allocation56_spill] sm:$0xff]  ;;  %v10035_v3 = vld [vmem:[#allocation57_spill] sm:$0xff] }
 0x189   :  { %5160 = vmatpush3.bf16.msra.mxu1 %v9999_v4  ;;  %5139 = vmatprep.subr.bf16.mxu0 %v10000_v18  ;;  %v10036_v4 = vld [vmem:[#allocation58_spill] sm:$0xff]  ;;  %v10038_v24 = vld [vmem:[#allocation59_spill] sm:$0xff]  ;;  %v4504_v18 = vcombine.low %v8063_v60, %v8063_v60 }
 0x18a   :  { %5161 = vmatprep.subr.bf16.mxu1 %v10001_v58  ;;  %v2065_v61 = vadd.f32 %v4859_v0, %v2025_v6  ;;  %v10033_v0 = vld [vmem:[#allocation55_spill] sm:$0xff]  ;;  %v10039_v58 = vld [vmem:[#allocation60_spill] sm:$0xff] }
 0x18b   :  { %v8113_v6 = vld [vmem:[%s9668_s0 + $0xd0] sm:$0xff] }
 0x18c   :  { %5140 = vmatpush3.bf16.msra.mxu0 %v10002_v57  ;;  %v4495_v57 = vld [vmem:[%s9668_s0 + $0xd8] sm:$0xff] }
 0x18d   :  { %5162 = vmatpush3.bf16.msra.mxu1 %v10003_v56  ;;  %5141 = vmatprep.subr.bf16.mxu0 %v10004_v7  ;;  %v10040_v56 = vld [vmem:[#allocation61_spill] sm:$0xff]  ;;  %v10041_v7 = vld [vmem:[#allocation62_spill] sm:$0xff]  ;;  %v4511_v60 = vcombine.high %v4495_v57, %v4495_v57 }
 0x18e   :  { %5163 = vmatprep.subr.bf16.mxu1 %v10005_v22  ;;  %v10042_v22 = vld [vmem:[#allocation63_spill] sm:$0xff] }
 0x190   :  { %5142 = vmatpush3.bf16.msra.mxu0 %v10006_v10  ;;  %v10043_v10 = vld [vmem:[#allocation64_spill] sm:$0xff] }
 0x191   :  { %5164 = vmatpush3.bf16.msra.mxu1 %v10007_v13  ;;  %5171 = vmatprep.subr.bf16.mxu0 %v10008_v14  ;;  %v10046_v13 = vld [vmem:[#allocation67_spill] sm:$0xff]  ;;  %v10047_v14 = vld [vmem:[#allocation68_spill] sm:$0xff] }
 0x192   :  { %5193 = vmatprep.subr.bf16.mxu1 %v10009_v15  ;;  %v10048_v15 = vld [vmem:[#allocation69_spill] sm:$0xff] }
 0x193   :  { %2683 = vmatmul.mubr.bf16.vlgmr.msra.gmra.mrb[44].mxu0 %v4488_v8  ;;  %v4509_v8 = vcombine.high %v8113_v6, %v8113_v6 }
 0x194   :  { %2723 = vmatmul.mubr.bf16.vlgmr.msra.gmra.mrb[44].mxu1 %v4490_v11  ;;  %5172 = vmatpush3.bf16.msra.mxu0 %v10010_v23  ;;  %v10044_v11 = vld [vmem:[#allocation65_spill] sm:$0xff]  ;;  %v10051_v23 = vld [vmem:[#allocation72_spill] sm:$0xff] }
 0x195   :  { %5194 = vmatpush3.bf16.msra.mxu1 %v10011_v25  ;;  %5173 = vmatprep.subr.bf16.mxu0 %v10012_v26  ;;  %v10052_v25 = vld [vmem:[#allocation73_spill] sm:$0xff]  ;;  %v10053_v26 = vld [vmem:[#allocation74_spill] sm:$0xff] }
 0x196   :  { %5195 = vmatprep.subr.bf16.mxu1 %v10013_v27  ;;  %2862 = vmatprep.mubr.bf16.mxu0 %v4505_v16  ;;  %v10049_v16 = vld [vmem:[#allocation70_spill] sm:$0xff]  ;;  %v10054_v27 = vld [vmem:[#allocation75_spill] sm:$0xff] }
 0x197   :  { %2902 = vmatprep.mubr.bf16.mxu1 %v4507_v17  ;;  %v10050_v17 = vld [vmem:[#allocation71_spill] sm:$0xff] }
 0x198   :  { %5174 = vmatpush3.bf16.msra.mxu0 %v10014_v28  ;;  %v10055_v28 = vld [vmem:[#allocation76_spill] sm:$0xff] }
 0x199   :  { %5196 = vmatpush3.bf16.msra.mxu1 %v10015_v29  ;;  %5175 = vmatprep.subr.bf16.mxu0 %v10016_v30  ;;  %v10056_v29 = vld [vmem:[#allocation77_spill] sm:$0xff]  ;;  %v10057_v30 = vld [vmem:[#allocation78_spill] sm:$0xff] }
 0x19a   :  { %5197 = vmatprep.subr.bf16.mxu1 %v10017_v31  ;;  %v10058_v31 = vld [vmem:[#allocation79_spill] sm:$0xff] }
 0x19c   :  { %5176 = vmatpush3.bf16.msra.mxu0 %v10018_v32  ;;  %v10059_v32 = vld [vmem:[#allocation80_spill] sm:$0xff] }
 0x19d   :  { %5198 = vmatpush3.bf16.msra.mxu1 %v10019_v33  ;;  %5177 = vmatprep.subr.bf16.mxu0 %v10020_v34  ;;  %v10060_v33 = vld [vmem:[#allocation82_spill] sm:$0xff]  ;;  %v10061_v34 = vld [vmem:[#allocation83_spill] sm:$0xff] }
 0x19e   :  { %5199 = vmatprep.subr.bf16.mxu1 %v10021_v35 }
 0x1a0   :  { %5178 = vmatpush3.bf16.msra.mxu0 %v10022_v36  ;;  %v10062_v36 = vld [vmem:[#allocation84_spill] sm:$0xff] }
 0x1a1   :  { %5200 = vmatpush3.bf16.msra.mxu1 %v10023_v37  ;;  %5179 = vmatprep.subr.bf16.mxu0 %v10024_v38 }
 0x1a2   :  { %5201 = vmatprep.subr.bf16.mxu1 %v10025_v39 }
 0x1a4   :  { %5180 = vmatpush3.bf16.msra.mxu0 %v10026_v40  ;;  %v4879_v43 = vpop.f32.mrb[20].mxu0 }
 0x1a5   :  { %5202 = vmatpush3.bf16.msra.mxu1 %v10027_v41  ;;  %5181 = vmatprep.subr.bf16.mxu0 %v10028_v42  ;;  %v4901_v45 = vpop.f32.mrb[20].mxu1  ;;  %v4880_v46 = vpop.f32.mrb[21].mxu0  ;;  %v10063_v42 = vld [vmem:[#allocation85_spill] sm:$0xff] }
 0x1a6   :  { %5203 = vmatprep.subr.bf16.mxu1 %v10029_v44  ;;  %v4881_v47 = vadd.f32 %v4880_v46, %v4879_v43  ;;  %v4902_v48 = vpop.f32.mrb[21].mxu1  ;;  %v4882_v49 = vpop.f32.mrb[22].mxu0 }
 0x1a7   :  { %v4903_v51 = vadd.f32 %v4902_v48, %v4901_v45  ;;  %v4904_v52 = vpop.f32.mrb[22].mxu1  ;;  %v4883_v54 = vpop.f32.mrb[23].mxu0  ;;  %v10064_v45 = vld [vmem:[#allocation86_spill] sm:$0xff]  ;;  %v10066_v48 = vld [vmem:[#allocation81_spill] sm:$0xff] }
 0x1a8   :  { %5182 = vmatpush3.bf16.msra.mxu0 %v10030_v50  ;;  %v2105_v62 = vadd.f32 %v4881_v47, %v2065_v61  ;;  %v4905_v63 = vpop.f32.mrb[23].mxu1  ;;  %v4506_v61 = vcombine.low %v8069_v12, %v8069_v12  ;;  %v10045_v12 = vld [vmem:[#allocation66_spill] sm:$0xff]  ;;  %v10065_v47 = vld [vmem:[#allocation87_spill] sm:$0xff] }
 0x1a9   :  { %5204 = vmatpush3.bf16.msra.mxu1 %v10031_v53  ;;  %5183 = vmatprep.subr.bf16.mxu0 %v10032_v55  ;;  %v10068_v53 = vld [vmem:[#allocation89_spill] sm:$0xff]  ;;  %v10069_v54 = vld [vmem:[#allocation90_spill] sm:$0xff]  ;;  %v10070_v55 = vld [vmem:[#allocation91_spill] sm:$0xff]  ;;  %v4508_v63 = vcombine.low %v8113_v6, %v8113_v6 }
 0x1aa   :  { %5205 = vmatprep.subr.bf16.mxu1 %v10033_v0  ;;  %v2145_v1 = vadd.f32 %v4903_v51, %v2105_v62  ;;  %v10067_v51 = vld [vmem:[#allocation88_spill] sm:$0xff]  ;;  %v4496_v0 = vld [vmem:[%s9668_s0 + $0xe0] sm:$0xff] }
 0x1ab   :  { %v10071_v62 = vld [vmem:[#allocation92_spill] sm:$0xff] }
 0x1ac   :  { %5184 = vmatpush3.bf16.msra.mxu0 %v10034_v2  ;;  %v8105_v5 = vmax.f32 %v2145_v1, 0.0  ;;  %v10072_v1 = vld [vmem:[#allocation93_spill] sm:$0xff]  ;;  %v4510_v2 = vcombine.low %v4495_v57, %v4495_v57  ;;  %v10079_v57 = vld [vmem:[#allocation100_spill] sm:$0xff] }
 0x1ad   :  { %5206 = vmatpush3.bf16.msra.mxu1 %v10035_v3  ;;  %5185 = vmatprep.subr.bf16.mxu0 %v10036_v4  ;;  %v4497_v3 = vld [vmem:[%s9668_s0 + $0xe8] sm:$0xff] }
 0x1ae   :  { %10037 = vst [vmem:[#allocation5_spill] sm:$0xff] %v8105_v5  ;;  %5207 = vmatprep.subr.bf16.mxu1 %v10038_v24  ;;  %2151 = vmax.xlane.f32.xlu0 %v8105_v5  ;;  %v10073_v4 = vld [vmem:[#allocation94_spill] sm:$0xff]  ;;  %v10074_v24 = vld [vmem:[#allocation95_spill] sm:$0xff]  ;;  %v4515_v6 = vcombine.high %v4497_v3, %v4497_v3 }
 0x1af   :  { %v8640_v5 = vld [vmem:[%s9669_s1 + $0x568] sm:$0xff]  }
 0x1b0   :  { %5186 = vmatpush3.bf16.msra.mxu0 %v10039_v58  ;;  %v4513_v58 = vcombine.high %v4496_v0, %v4496_v0  ;;  %10136 = vst [vmem:[#allocation17_spill] sm:$0xff] %v8640_v5 }
 0x1b1   :  { %5208 = vmatpush3.bf16.msra.mxu1 %v10040_v56  ;;  %5215 = vmatprep.subr.bf16.mxu0 %v10041_v7  ;;  %v10077_v56 = vld [vmem:[#allocation98_spill] sm:$0xff]  ;;  %v10078_v7 = vld [vmem:[#allocation99_spill] sm:$0xff] }
 0x1b2   :  { %5237 = vmatprep.subr.bf16.mxu1 %v10042_v22  ;;  %v10080_v22 = vld [vmem:[#allocation101_spill] sm:$0xff] }
 0x1b3   :  { %2863 = vmatmul.mubr.bf16.vlgmr.msra.gmra.mrb[48].mxu0 %v4504_v18  ;;  %v10075_v18 = vld [vmem:[#allocation96_spill] sm:$0xff] }
 0x1b4   :  { %2903 = vmatmul.mubr.bf16.vlgmr.msra.gmra.mrb[48].mxu1 %v4506_v61  ;;  %5216 = vmatpush3.bf16.msra.mxu0 %v10043_v10  ;;  %v10076_v61 = vld [vmem:[#allocation97_spill] sm:$0xff]  ;;  %v10083_v10 = vld [vmem:[#allocation104_spill] sm:$0xff] }
 0x1b5   :  { %5238 = vmatpush3.bf16.msra.mxu1 %v10044_v11  ;;  %5217 = vmatprep.subr.bf16.mxu0 %v10045_v12  ;;  %v10084_v11 = vld [vmem:[#allocation105_spill] sm:$0xff]  ;;  %v10085_v12 = vld [vmem:[#allocation106_spill] sm:$0xff] }
 0x1b6   :  { %5239 = vmatprep.subr.bf16.mxu1 %v10046_v13  ;;  %2942 = vmatprep.mubr.bf16.mxu0 %v4509_v8  ;;  %v10081_v8 = vld [vmem:[#allocation102_spill] sm:$0xff]  ;;  %v10086_v13 = vld [vmem:[#allocation107_spill] sm:$0xff] }
 0x1b7   :  { %2982 = vmatprep.mubr.bf16.mxu1 %v4511_v60  ;;  %v10082_v60 = vld [vmem:[#allocation103_spill] sm:$0xff] }
 0x1b8   :  { %5218 = vmatpush3.bf16.msra.mxu0 %v10047_v14  ;;  %v10087_v14 = vld [vmem:[#allocation108_spill] sm:$0xff] }
 0x1b9   :  { %5240 = vmatpush3.bf16.msra.mxu1 %v10048_v15  ;;  %5219 = vmatprep.subr.bf16.mxu0 %v10049_v16  ;;  %v10088_v15 = vld [vmem:[#allocation109_spill] sm:$0xff]  ;;  %v10089_v16 = vld [vmem:[#allocation110_spill] sm:$0xff] }
 0x1ba   :  { %5241 = vmatprep.subr.bf16.mxu1 %v10050_v17  ;;  %v10090_v17 = vld [vmem:[#allocation111_spill] sm:$0xff] }
 0x1bc   :  { %5220 = vmatpush3.bf16.msra.mxu0 %v10051_v23  ;;  %v10091_v23 = vld [vmem:[#allocation112_spill] sm:$0xff] }
 0x1bd   :  { %5242 = vmatpush3.bf16.msra.mxu1 %v10052_v25  ;;  %5221 = vmatprep.subr.bf16.mxu0 %v10053_v26  ;;  %v10092_v25 = vld [vmem:[#allocation113_spill] sm:$0xff]  ;;  %v10093_v26 = vld [vmem:[#allocation114_spill] sm:$0xff] }
 0x1be   :  { %5243 = vmatprep.subr.bf16.mxu1 %v10054_v27 }
 0x1c0   :  { %5222 = vmatpush3.bf16.msra.mxu0 %v10055_v28  ;;  %v10094_v28 = vld [vmem:[#allocation115_spill] sm:$0xff] }
 0x1c1   :  { %5244 = vmatpush3.bf16.msra.mxu1 %v10056_v29  ;;  %5223 = vmatprep.subr.bf16.mxu0 %v10057_v30 }
 0x1c2   :  { %5245 = vmatprep.subr.bf16.mxu1 %v10058_v31 }
 0x1c4   :  { %5224 = vmatpush3.bf16.msra.mxu0 %v10059_v32  ;;  %v4923_v35 = vpop.f32.mrb[24].mxu0 }
 0x1c5   :  { %5246 = vmatpush3.bf16.msra.mxu1 %v10060_v33  ;;  %5225 = vmatprep.subr.bf16.mxu0 %v10061_v34  ;;  %v4945_v37 = vpop.f32.mrb[24].mxu1  ;;  %v4924_v38 = vpop.f32.mrb[25].mxu0  ;;  %v10095_v34 = vld [vmem:[#allocation116_spill] sm:$0xff] }
 0x1c6   :  { %5247 = vmatprep.subr.bf16.mxu1 %v10062_v36  ;;  %v4925_v39 = vadd.f32 %v4924_v38, %v4923_v35  ;;  %v4946_v40 = vpop.f32.mrb[25].mxu1  ;;  %v4926_v41 = vpop.f32.mrb[26].mxu0 }
 0x1c7   :  { %v4947_v43 = vadd.f32 %v4946_v40, %v4945_v37  ;;  %v4948_v44 = vpop.f32.mrb[26].mxu1  ;;  %v4927_v46 = vpop.f32.mrb[27].mxu0  ;;  %v10096_v37 = vld [vmem:[#allocation117_spill] sm:$0xff] }
 0x1c8   :  { %5226 = vmatpush3.bf16.msra.mxu0 %v10063_v42  ;;  %v2285_v49 = vadd.f32 %v4925_v39, %v10066_v48  ;;  %v4949_v50 = vpop.f32.mrb[27].mxu1  ;;  %v10097_v39 = vld [vmem:[#allocation118_spill] sm:$0xff]  ;;  %v10100_v44 = vld [vmem:[#allocation121_spill] sm:$0xff]  ;;  %v10102_v46 = vld [vmem:[#allocation123_spill] sm:$0xff] }
 0x1c9   :  { %5248 = vmatpush3.bf16.msra.mxu1 %v10064_v45  ;;  %5227 = vmatprep.subr.bf16.mxu0 %v10065_v47  ;;  %v10101_v45 = vld [vmem:[#allocation122_spill] sm:$0xff]  ;;  %v4512_v47 = vcombine.low %v4496_v0, %v4496_v0  ;;  %v8199_v48 = vld [vmem:[%s9668_s0 + $0xf0] sm:$0xff]  ;;  %v4514_v50 = vcombine.low %v4497_v3, %v4497_v3  ;;  %v10108_v0 = vld [vmem:[#allocation129_spill] sm:$0xff] }
 0x1ca   :  { %5249 = vmatprep.subr.bf16.mxu1 %v10067_v51  ;;  %v2325_v52 = vadd.f32 %v4947_v43, %v2285_v49  ;;  %v10099_v43 = vld [vmem:[#allocation120_spill] sm:$0xff] }
 0x1cb   :  { %v10103_v49 = vld [vmem:[#allocation124_spill] sm:$0xff] }
 0x1cc   :  { %5228 = vmatpush3.bf16.msra.mxu0 %v10068_v53  ;;  %v8205_v51 = vld [vmem:[%s9668_s0 + $0xf8] sm:$0xff]  ;;  %v10105_v53 = vld [vmem:[#allocation126_spill] sm:$0xff] }
 0x1cd   :  { %5250 = vmatpush3.bf16.msra.mxu1 %v10069_v54  ;;  %5229 = vmatprep.subr.bf16.mxu0 %v10070_v55  ;;  %v10106_v54 = vld [vmem:[#allocation127_spill] sm:$0xff]  ;;  %v4517_v55 = vcombine.high %v8199_v48, %v8199_v48  ;;  %v10111_v3 = vld [vmem:[#allocation132_spill] sm:$0xff] }
 0x1ce   :  { %5251 = vmatprep.subr.bf16.mxu1 %v10071_v62  ;;  %v4519_v62 = vcombine.high %v8205_v51, %v8205_v51 }
 0x1d0   :  { %5230 = vmatpush3.bf16.msra.mxu0 %v10072_v1  ;;  %v10109_v1 = vld [vmem:[#allocation130_spill] sm:$0xff] }
 0x1d1   :  { %5252 = vmatpush3.bf16.msra.mxu1 %v10073_v4  ;;  %5259 = vmatprep.subr.bf16.mxu0 %v10074_v24  ;;  %v10112_v4 = vld [vmem:[#allocation133_spill] sm:$0xff]  ;;  %v10113_v24 = vld [vmem:[#allocation134_spill] sm:$0xff] }
 0x1d2   :  { %5281 = vmatprep.subr.bf16.mxu1 %v10075_v18  ;;  %v10114_v18 = vld [vmem:[#allocation135_spill] sm:$0xff] }
 0x1d3   :  { %2943 = vmatmul.mubr.bf16.vlgmr.msra.gmra.mrb[52].mxu0 %v4508_v63  ;;  %v10107_v63 = vld [vmem:[#allocation128_spill] sm:$0xff] }
 0x1d4   :  { %2983 = vmatmul.mubr.bf16.vlgmr.msra.gmra.mrb[52].mxu1 %v4510_v2  ;;  %5260 = vmatpush3.bf16.msra.mxu0 %v10076_v61  ;;  %v10110_v2 = vld [vmem:[#allocation131_spill] sm:$0xff]  ;;  %v10117_v61 = vld [vmem:[#allocation138_spill] sm:$0xff] }
 0x1d5   :  { %5282 = vmatpush3.bf16.msra.mxu1 %v10077_v56  ;;  %5261 = vmatprep.subr.bf16.mxu0 %v10078_v7  ;;  %v10118_v56 = vld [vmem:[#allocation139_spill] sm:$0xff]  ;;  %v10119_v7 = vld [vmem:[#allocation140_spill] sm:$0xff] }
 0x1d6   :  { %5283 = vmatprep.subr.bf16.mxu1 %v10079_v57  ;;  %3022 = vmatprep.mubr.bf16.mxu0 %v4513_v58  ;;  %v10115_v58 = vld [vmem:[#allocation136_spill] sm:$0xff]  ;;  %v10120_v57 = vld [vmem:[#allocation141_spill] sm:$0xff] }
 0x1d7   :  { %3062 = vmatprep.mubr.bf16.mxu1 %v4515_v6  ;;  %v10116_v6 = vld [vmem:[#allocation137_spill] sm:$0xff] }
 0x1d8   :  { %5262 = vmatpush3.bf16.msra.mxu0 %v10080_v22  ;;  %v10121_v22 = vld [vmem:[#allocation142_spill] sm:$0xff] }
 0x1d9   :  { %5284 = vmatpush3.bf16.msra.mxu1 %v10081_v8  ;;  %5263 = vmatprep.subr.bf16.mxu0 %v10082_v60  ;;  %v10122_v8 = vld [vmem:[#allocation143_spill] sm:$0xff]  ;;  %v10123_v60 = vld [vmem:[#allocation144_spill] sm:$0xff] }
 0x1da   :  { %5285 = vmatprep.subr.bf16.mxu1 %v10083_v10  ;;  %v10124_v10 = vld [vmem:[#allocation145_spill] sm:$0xff] }
 0x1dc   :  { %5264 = vmatpush3.bf16.msra.mxu0 %v10084_v11 }
 0x1dd   :  { %5286 = vmatpush3.bf16.msra.mxu1 %v10085_v12  ;;  %5265 = vmatprep.subr.bf16.mxu0 %v10086_v13 }
 0x1de   :  { %5287 = vmatprep.subr.bf16.mxu1 %v10087_v14 }
 0x1e0   :  { %5266 = vmatpush3.bf16.msra.mxu0 %v10088_v15 }
 0x1e1   :  { %5288 = vmatpush3.bf16.msra.mxu1 %v10089_v16  ;;  %5267 = vmatprep.subr.bf16.mxu0 %v10090_v17 }
 0x1e2   :  { %5289 = vmatprep.subr.bf16.mxu1 %v10091_v23 }
 0x1e4   :  { %5268 = vmatpush3.bf16.msra.mxu0 %v10092_v25 }
 0x1e5   :  { %5290 = vmatpush3.bf16.msra.mxu1 %v10093_v26  ;;  %5269 = vmatprep.subr.bf16.mxu0 %v7739_v19  ;;  %v10098_v19 = vld [vmem:[#allocation119_spill] sm:$0xff] }
 0x1e6   :  { %v4967_v27 = vpop.f32.mrb[28].mxu0  ;;  %5291 = vmatprep.subr.bf16.mxu1 %v10094_v28  ;;  %v8239_v26 = vld [vmem:[%s9669_s1 + $0x370] sm:$0xff]  }
 0x1e7   :  { %v4989_v29 = vpop.f32.mrb[28].mxu1  ;;  %v4968_v30 = vpop.f32.mrb[29].mxu0  ;;  %v8259_v28 = vld [vmem:[%s9669_s1 + $0x3b0] sm:$0xff]  }
 0x1e8   :  { %v4969_v31 = vadd.f32 %v4968_v30, %v4967_v27  ;;  %v4990_v32 = vpop.f32.mrb[29].mxu1  ;;  %v4970_v33 = vpop.f32.mrb[30].mxu0  ;;  %5270 = vmatpush3.bf16.msra.mxu0 %v10095_v34  ;;  %v8245_v27 = vld [vmem:[%s9669_s1 + $0x3f0] sm:$0xff]   ;;  %v8271_v30 = vld [vmem:[%s9669_s1 + $0x3f8] sm:$0xff]   ;;  %v4518_v34 = vcombine.low %v8205_v51, %v8205_v51 }
 0x1e9   :  { %v4991_v35 = vadd.f32 %v4990_v32, %v4989_v29  ;;  %v4992_v36 = vpop.f32.mrb[30].mxu1  ;;  %5292 = vmatpush3.bf16.msra.mxu1 %v10096_v37  ;;  %v4971_v38 = vpop.f32.mrb[31].mxu0  ;;  %5271 = vmatprep.subr.bf16.mxu0 %v10097_v39  ;;  %v8265_v29 = vld [vmem:[%s9669_s1 + $0x378] sm:$0xff]   ;;  %v8279_v32 = vld [vmem:[%s9668_s0 + $0x100] sm:$0xff] }
 0x1ea   :  { %v2365_v40 = vadd.f32 %v4969_v31, %v2325_v52  ;;  %v4993_v41 = vpop.f32.mrb[31].mxu1  ;;  %5293 = vmatprep.subr.bf16.mxu1 %v10098_v19  ;;  %v10104_v52 = vld [vmem:[#allocation125_spill] sm:$0xff]  ;;  %v4516_v31 = vcombine.low %v8199_v48, %v8199_v48  ;;  %v8284_v33 = vld [vmem:[%s9669_s1 + $0x338] sm:$0xff]   ;;  %v4521_v39 = vcombine.high %v8279_v32, %v8279_v32  ;;  %v8367_v48 = vld [vmem:[%s9669_s1 + $0x410] sm:$0xff]  }
 0x1eb   :  { %v8297_v36 = vld [vmem:[%s9669_s1 + $0x3b8] sm:$0xff]   ;;  %v8303_v37 = vld [vmem:[%s9669_s1 + $0x440] sm:$0xff]  }
 0x1ec   :  { %v2405_v42 = vadd.f32 %v4991_v35, %v2365_v40  ;;  %5272 = vmatpush3.bf16.msra.mxu0 %v10099_v43  ;;  %v8292_v35 = vld [vmem:[%s9668_s0 + $0x108] sm:$0xff]  ;;  %v8309_v38 = vld [vmem:[%s9669_s1 + $0x4c0] sm:$0xff]   ;;  %v8385_v51 = vld [vmem:[%s9669_s1 + $0x4d8] sm:$0xff]  }
 0x1ed   :  { %5294 = vmatpush3.bf16.msra.mxu1 %v10100_v44  ;;  %5273 = vmatprep.subr.bf16.mxu0 %v10101_v45  ;;  %v4523_v40 = vcombine.high %v8292_v35, %v8292_v35  ;;  %v8319_v41 = vld [vmem:[%s9669_s1 + $0x400] sm:$0xff]   ;;  %v8337_v43 = vld [vmem:[%s9669_s1 + $0x4c8] sm:$0xff]  }
 0x1ee   :  { %5295 = vmatprep.subr.bf16.mxu1 %v10102_v46  ;;  %v8325_v19 = vld [vmem:[%s9669_s1 + $0x480] sm:$0xff]   ;;  %v8343_v44 = vld [vmem:[%s9669_s1 + $0x408] sm:$0xff]   ;;  %v8355_v46 = vld [vmem:[%s9669_s1 + $0x450] sm:$0xff]  }
 0x1ef   :  { %v8349_v45 = vld [vmem:[%s9669_s1 + $0x488] sm:$0xff]  }
 0x1f0   :  { %5274 = vmatpush3.bf16.msra.mxu0 %v10103_v49  ;;  %v8373_v49 = vld [vmem:[%s9669_s1 + $0x490] sm:$0xff]  }
 0x1f1   :  { %5296 = vmatpush3.bf16.msra.mxu1 %v10104_v52  ;;  %5303 = vmatprep.subr.bf16.mxu0 %v10105_v53  ;;  %v8391_v52 = vld [vmem:[%s9669_s1 + $0x418] sm:$0xff]  }
 0x1f2   :  { %5325 = vmatprep.subr.bf16.mxu1 %v10106_v54  ;;  %v8397_v53 = vld [vmem:[%s9669_s1 + $0x498] sm:$0xff]   ;;  %v8403_v54 = vld [vmem:[%s9669_s1 + $0x460] sm:$0xff]  }
 0x1f3   :  { %3023 = vmatmul.mubr.bf16.vlgmr.msra.gmra.mrb[56].mxu0 %v4512_v47  ;;  %v8361_v47 = vld [vmem:[%s9669_s1 + $0x4d0] sm:$0xff]  }
 0x1f4   :  { %3063 = vmatmul.mubr.bf16.vlgmr.msra.gmra.mrb[56].mxu1 %v4514_v50  ;;  %5304 = vmatpush3.bf16.msra.mxu0 %v10107_v63  ;;  %v8379_v50 = vld [vmem:[%s9669_s1 + $0x458] sm:$0xff]   ;;  %v8421_v63 = vld [vmem:[%s9669_s1 + $0x4a0] sm:$0xff]  }
 0x1f5   :  { %5326 = vmatpush3.bf16.msra.mxu1 %v10108_v0  ;;  %5305 = vmatprep.subr.bf16.mxu0 %v10109_v1  ;;  %v8427_v0 = vld [vmem:[%s9669_s1 + $0x468] sm:$0xff]  }
 0x1f6   :  { %5327 = vmatprep.subr.bf16.mxu1 %v10110_v2  ;;  %3102 = vmatprep.mubr.bf16.mxu0 %v4517_v55  ;;  %v8409_v55 = vld [vmem:[%s9669_s1 + $0x4e0] sm:$0xff]   ;;  %v8433_v2 = vld [vmem:[%s9669_s1 + $0x4e8] sm:$0xff]  }
 0x1f7   :  { %3142 = vmatprep.mubr.bf16.mxu1 %v4519_v62  ;;  %v8415_v62 = vld [vmem:[%s9669_s1 + $0x420] sm:$0xff]  }
 0x1f8   :  { %5306 = vmatpush3.bf16.msra.mxu0 %v10111_v3 }
 0x1f9   :  { %5328 = vmatpush3.bf16.msra.mxu1 %v10112_v4  ;;  %5307 = vmatprep.subr.bf16.mxu0 %v10113_v24 }
 0x1fa   :  { %5329 = vmatprep.subr.bf16.mxu1 %v10114_v18 }
 0x1fc   :  { %5308 = vmatpush3.bf16.msra.mxu0 %v10115_v58 }
 0x1fd   :  { %5330 = vmatpush3.bf16.msra.mxu1 %v10116_v6  ;;  %5309 = vmatprep.subr.bf16.mxu0 %v10117_v61  ;;  %v8439_v6 = vld [vmem:[%s9669_s1 + $0x428] sm:$0xff]  }
 0x1fe   :  { %5331 = vmatprep.subr.bf16.mxu1 %v10118_v56 }
 0x200   :  { %5310 = vmatpush3.bf16.msra.mxu0 %v10119_v7  ;;  %v8445_v7 = vld [vmem:[%s9669_s1 + $0x4a8] sm:$0xff]  }
 0x201   :  { %5332 = vmatpush3.bf16.msra.mxu1 %v10120_v57  ;;  %5311 = vmatprep.subr.bf16.mxu0 %v10121_v22  ;;  %v8451_v22 = vld [vmem:[%s9669_s1 + $0x470] sm:$0xff]  }
 0x202   :  { %5333 = vmatprep.subr.bf16.mxu1 %v10122_v8 }
 0x204   :  { %5312 = vmatpush3.bf16.msra.mxu0 %v10123_v60 }
 0x205   :  { %5334 = vmatpush3.bf16.msra.mxu1 %v10124_v10  ;;  %5313 = vmatprep.subr.bf16.mxu0 %v7952_v21  ;;  %v8458_v10 = vld [vmem:[%s9669_s1 + $0x4f0] sm:$0xff]  }
 0x206   :  { %v5011_v11 = vpop.f32.mrb[32].mxu0  ;;  %5335 = vmatprep.subr.bf16.mxu1 %v7958_v20 }
 0x207   :  { %v5033_v12 = vpop.f32.mrb[32].mxu1  ;;  %v5012_v13 = vpop.f32.mrb[33].mxu0 }
 0x208   :  { %v5013_v14 = vadd.f32 %v5012_v13, %v5011_v11  ;;  %v5034_v15 = vpop.f32.mrb[33].mxu1  ;;  %v5014_v16 = vpop.f32.mrb[34].mxu0  ;;  %5314 = vmatpush3.bf16.msra.mxu0 %v7965_v9  ;;  %v8472_v13 = vld [vmem:[%s9669_s1 + $0x4b0] sm:$0xff]  }
 0x209   :  { %v5035_v17 = vadd.f32 %v5034_v15, %v5033_v12  ;;  %v5036_v23 = vpop.f32.mrb[34].mxu1  ;;  %5336 = vmatpush3.bf16.msra.mxu1 %v7971_v59  ;;  %v5015_v25 = vpop.f32.mrb[35].mxu0  ;;  %5315 = vmatprep.subr.bf16.mxu0 %v8239_v26  ;;  %v8253_v59 = vld [vmem:[%s9669_s1 + $0x330] sm:$0xff]   ;;  %v8484_v15 = vld [vmem:[%s9669_s1 + $0x4f8] sm:$0xff]   ;;  %v4520_v16 = vcombine.low %v8279_v32, %v8279_v32 }
 0x20a   :  { %v2445_v21 = vadd.f32 %v5013_v14, %v2405_v42  ;;  %v5037_v20 = vpop.f32.mrb[35].mxu1  ;;  %5337 = vmatprep.subr.bf16.mxu1 %v8245_v27  ;;  %v8331_v42 = vld [vmem:[%s9669_s1 + $0x448] sm:$0xff]   ;;  %v8466_v12 = vld [vmem:[%s9669_s1 + $0x430] sm:$0xff]   ;;  %v8478_v14 = vld [vmem:[%s9669_s1 + $0x478] sm:$0xff]   ;;  %v4522_v25 = vcombine.low %v8292_v35, %v8292_v35 }
 0x20b   :  { %v8497_v23 = vld [vmem:[%s9669_s1 + $0x438] sm:$0xff]   ;;  %v8532_v35 = vld [vmem:[%s9669_s1 + $0x500] sm:$0xff]  }
 0x20c   :  { %v8248_v9 = vadd.f32 %v5035_v17, %v2445_v21  ;;  %5316 = vmatpush3.bf16.msra.mxu0 %v8253_v59  ;;  %v8492_v17 = vld [vmem:[%s9668_s0 + $0x110] sm:$0xff]  ;;  %v8505_v21 = vld [vmem:[%s9668_s0 + $0x118] sm:$0xff] }
 0x20d   :  { %5338 = vmatpush3.bf16.msra.mxu1 %v8259_v28  ;;  %5317 = vmatprep.subr.bf16.mxu0 %v8265_v29  ;;  %v8510_v20 = vld [vmem:[%s9669_s1 + $0x4b8] sm:$0xff]   ;;  %v4525_v32 = vcombine.high %v8492_v17, %v8492_v17 }
 0x20e   :  { %5339 = vmatprep.subr.bf16.mxu1 %v8271_v30 }
 0x210   :  { %5318 = vmatpush3.bf16.msra.mxu0 %v8284_v33 }
 0x211   :  { %5340 = vmatpush3.bf16.msra.mxu1 %v8297_v36  ;;  %5347 = vmatprep.subr.bf16.mxu0 %v8303_v37 }
 0x212   :  { %5369 = vmatprep.subr.bf16.mxu1 %v8309_v38 }
 0x213   :  { %3103 = vmatmul.mubr.bf16.vlgmr.msra.gmra.mrb[60].mxu0 %v4516_v31  ;;  %v8522_v31 = vld [vmem:[%s9669_s1 + $0x5c0] sm:$0xff]  }
 0x214   :  { %3143 = vmatmul.mubr.bf16.vlgmr.msra.gmra.mrb[60].mxu1 %v4518_v34  ;;  %5348 = vmatpush3.bf16.msra.mxu0 %v8319_v41  ;;  %v4527_v34 = vcombine.high %v8505_v21, %v8505_v21 }
 0x215   :  { %5370 = vmatpush3.bf16.msra.mxu1 %v8325_v19  ;;  %5349 = vmatprep.subr.bf16.mxu0 %v8331_v42 }
 0x216   :  { %5371 = vmatprep.subr.bf16.mxu1 %v8337_v43  ;;  %3182 = vmatprep.mubr.bf16.mxu0 %v4521_v39  ;;  %v8538_v39 = vld [vmem:[%s9669_s1 + $0x580] sm:$0xff]  }
 0x217   :  { %3222 = vmatprep.mubr.bf16.mxu1 %v4523_v40  ;;  %v8544_v40 = vld [vmem:[%s9669_s1 + $0x548] sm:$0xff]  }
 0x218   :  { %5350 = vmatpush3.bf16.msra.mxu0 %v8343_v44 }
 0x219   :  { %5372 = vmatpush3.bf16.msra.mxu1 %v8349_v45  ;;  %5351 = vmatprep.subr.bf16.mxu0 %v8355_v46 }
 0x21a   :  { %5373 = vmatprep.subr.bf16.mxu1 %v8361_v47 }
 0x21c   :  { %5352 = vmatpush3.bf16.msra.mxu0 %v8367_v48 }
 0x21d   :  { %5374 = vmatpush3.bf16.msra.mxu1 %v8373_v49  ;;  %5353 = vmatprep.subr.bf16.mxu0 %v8379_v50 }
 0x21e   :  { %5375 = vmatprep.subr.bf16.mxu1 %v8385_v51 }
 0x220   :  { %5354 = vmatpush3.bf16.msra.mxu0 %v8391_v52 }
 0x221   :  { %5376 = vmatpush3.bf16.msra.mxu1 %v8397_v53  ;;  %5355 = vmatprep.subr.bf16.mxu0 %v8403_v54 }
 0x222   :  { %5377 = vmatprep.subr.bf16.mxu1 %v8409_v55 }
 0x224   :  { %5356 = vmatpush3.bf16.msra.mxu0 %v8415_v62 }
 0x225   :  { %5378 = vmatpush3.bf16.msra.mxu1 %v8421_v63  ;;  %5357 = vmatprep.subr.bf16.mxu0 %v8427_v0 }
 0x226   :  { %v5055_v1 = vpop.f32.mrb[36].mxu0  ;;  %5379 = vmatprep.subr.bf16.mxu1 %v8433_v2 }
 0x227   :  { %v5077_v3 = vpop.f32.mrb[36].mxu1  ;;  %v5056_v4 = vpop.f32.mrb[37].mxu0 }
 0x228   :  { %v5057_v24 = vadd.f32 %v5056_v4, %v5055_v1  ;;  %v5078_v18 = vpop.f32.mrb[37].mxu1  ;;  %v5058_v58 = vpop.f32.mrb[38].mxu0  ;;  %5358 = vmatpush3.bf16.msra.mxu0 %v8439_v6  ;;  %v8550_v1 = vld [vmem:[%s9669_s1 + $0x5c8] sm:$0xff]  }
 0x229   :  { %v5079_v61 = vadd.f32 %v5078_v18, %v5077_v3  ;;  %v5080_v56 = vpop.f32.mrb[38].mxu1  ;;  %5380 = vmatpush3.bf16.msra.mxu1 %v8445_v7  ;;  %v5059_v57 = vpop.f32.mrb[39].mxu0  ;;  %5359 = vmatprep.subr.bf16.mxu0 %v8451_v22  ;;  %v8556_v3 = vld [vmem:[%s9669_s1 + $0x508] sm:$0xff]   ;;  %v8574_v18 = vld [vmem:[%s9669_s1 + $0x5d0] sm:$0xff]  }
 0x22a   :  { %v2525_v8 = vadd.f32 %v5057_v24, %v8248_v9  ;;  %v5081_v60 = vpop.f32.mrb[39].mxu1  ;;  %5381 = vmatprep.subr.bf16.mxu1 %v8458_v10  ;;  %v8516_v9 = vld [vmem:[%s9669_s1 + $0x540] sm:$0xff]   ;;  %v8562_v4 = vld [vmem:[%s9669_s1 + $0x588] sm:$0xff]   ;;  %v8568_v24 = vld [vmem:[%s9669_s1 + $0x550] sm:$0xff]   ;;  %10125 = vst [vmem:[#allocation6_spill] sm:$0xff] %v8574_v18 }
 0x22b   :  { %v8580_v58 = vld [vmem:[%s9669_s1 + $0x510] sm:$0xff]   ;;  %v8592_v56 = vld [vmem:[%s9669_s1 + $0x558] sm:$0xff]  }
 0x22c   :  { %v8461_v11 = vadd.f32 %v5079_v61, %v2525_v8  ;;  %5360 = vmatpush3.bf16.msra.mxu0 %v8466_v12  ;;  %10126 = vst [vmem:[#allocation7_spill] sm:$0xff] %v8580_v58  ;;  %v8586_v61 = vld [vmem:[%s9669_s1 + $0x590] sm:$0xff]   ;;  %10128 = vst [vmem:[#allocation9_spill] sm:$0xff] %v8592_v56  ;;  %v8598_v57 = vld [vmem:[%s9669_s1 + $0x5d8] sm:$0xff]  }
 0x22d   :  { %5382 = vmatpush3.bf16.msra.mxu1 %v8472_v13  ;;  %5361 = vmatprep.subr.bf16.mxu0 %v8478_v14  ;;  %10127 = vst [vmem:[#allocation8_spill] sm:$0xff] %v8586_v61  ;;  %10129 = vst [vmem:[#allocation10_spill] sm:$0xff] %v8598_v57  ;;  %v8604_v8 = vld [vmem:[%s9669_s1 + $0x518] sm:$0xff]  }
 0x22e   :  { %5383 = vmatprep.subr.bf16.mxu1 %v8484_v15  ;;  %10130 = vst [vmem:[#allocation11_spill] sm:$0xff] %v8604_v8  ;;  %v8610_v60 = vld [vmem:[%s9669_s1 + $0x598] sm:$0xff]  }
 0x22f   :  { %10131 = vst [vmem:[#allocation12_spill] sm:$0xff] %v8610_v60 }
 0x230   :  { %5362 = vmatpush3.bf16.msra.mxu0 %v8497_v23 }
 0x231   :  { %5384 = vmatpush3.bf16.msra.mxu1 %v8510_v20  ;;  %5391 = vmatprep.subr.bf16.mxu0 %v8516_v9 }
 0x232   :  { %5413 = vmatprep.subr.bf16.mxu1 %v8522_v31 }
 0x233   :  { %3183 = vmatmul.mubr.bf16.vlgmr.msra.gmra.mrb[64].mxu0 %v4520_v16  ;;  %v8616_v16 = vld [vmem:[%s9669_s1 + $0x560] sm:$0xff]  }
 0x234   :  { %3223 = vmatmul.mubr.bf16.vlgmr.msra.gmra.mrb[64].mxu1 %v4522_v25  ;;  %5392 = vmatpush3.bf16.msra.mxu0 %v8532_v35  ;;  %10132 = vst [vmem:[#allocation13_spill] sm:$0xff] %v8616_v16  ;;  %v8622_v25 = vld [vmem:[%s9669_s1 + $0x5e0] sm:$0xff]  }
 0x235   :  { %5414 = vmatpush3.bf16.msra.mxu1 %v8538_v39  ;;  %5393 = vmatprep.subr.bf16.mxu0 %v8544_v40  ;;  %10133 = vst [vmem:[#allocation14_spill] sm:$0xff] %v8622_v25 }
 0x236   :  { %5415 = vmatprep.subr.bf16.mxu1 %v8550_v1  ;;  %3262 = vmatprep.mubr.bf16.mxu0 %v4525_v32  ;;  %v8628_v32 = vld [vmem:[%s9669_s1 + $0x520] sm:$0xff]  }
 0x237   :  { %3302 = vmatprep.mubr.bf16.mxu1 %v4527_v34  ;;  %10134 = vst [vmem:[#allocation15_spill] sm:$0xff] %v8628_v32  ;;  %v8634_v34 = vld [vmem:[%s9669_s1 + $0x5a0] sm:$0xff]  }
 0x238   :  { %5394 = vmatpush3.bf16.msra.mxu0 %v8556_v3  ;;  %10135 = vst [vmem:[#allocation16_spill] sm:$0xff] %v8634_v34 }
 0x239   :  { %5416 = vmatpush3.bf16.msra.mxu1 %v8562_v4  ;;  %5395 = vmatprep.subr.bf16.mxu0 %v8568_v24 }
 0x23a   :  { %5417 = vmatprep.subr.bf16.mxu1 %v8574_v18 }
 0x23c   :  { %5396 = vmatpush3.bf16.msra.mxu0 %v8580_v58  ;;  %v8658_v58 = vld [vmem:[%s9669_s1 + $0x5a8] sm:$0xff]  }
 0x23d   :  { %5418 = vmatpush3.bf16.msra.mxu1 %v8586_v61  ;;  %5397 = vmatprep.subr.bf16.mxu0 %v8592_v56  ;;  %v8652_v56 = vld [vmem:[%s9669_s1 + $0x528] sm:$0xff]   ;;  %10139 = vst [vmem:[#allocation20_spill] sm:$0xff] %v8658_v58 }
 0x23e   :  { %5419 = vmatprep.subr.bf16.mxu1 %v8598_v57  ;;  %10138 = vst [vmem:[#allocation19_spill] sm:$0xff] %v8652_v56 }
 0x240   :  { %5398 = vmatpush3.bf16.msra.mxu0 %v8604_v8 }
 0x241   :  { %5420 = vmatpush3.bf16.msra.mxu1 %v8610_v60  ;;  %5399 = vmatprep.subr.bf16.mxu0 %v8616_v16  ;;  %v8646_v16 = vld [vmem:[%s9669_s1 + $0x5e8] sm:$0xff]  }
 0x242   :  { %5421 = vmatprep.subr.bf16.mxu1 %v8622_v25  ;;  %10137 = vst [vmem:[#allocation18_spill] sm:$0xff] %v8646_v16 }
 0x244   :  { %5400 = vmatpush3.bf16.msra.mxu0 %v8628_v32 }
 0x245   :  { %5422 = vmatpush3.bf16.msra.mxu1 %v8634_v34  ;;  %5401 = vmatprep.subr.bf16.mxu0 %v8640_v5 }
 0x246   :  { %v5099_v25 = vpop.f32.mrb[40].mxu0  ;;  %5423 = vmatprep.subr.bf16.mxu1 %v8646_v16 }
 0x247   :  { %v5121_v32 = vpop.f32.mrb[40].mxu1  ;;  %v5100_v60 = vpop.f32.mrb[41].mxu0 }
 0x248   :  { %v5101_v8 = vadd.f32 %v5100_v60, %v5099_v25  ;;  %v5122_v57 = vpop.f32.mrb[41].mxu1  ;;  %v5102_v34 = vpop.f32.mrb[42].mxu0  ;;  %5402 = vmatpush3.bf16.msra.mxu0 %v8652_v56  ;;  %v8664_v60 = vld [vmem:[%s9669_s1 + $0x570] sm:$0xff]  }
 0x249   :  { %v5123_v5 = vadd.f32 %v5122_v57, %v5121_v32  ;;  %v5124_v61 = vpop.f32.mrb[42].mxu1  ;;  %5424 = vmatpush3.bf16.msra.mxu1 %v8658_v58  ;;  %v5103_v16 = vpop.f32.mrb[43].mxu0  ;;  %10140 = vst [vmem:[#allocation21_spill] sm:$0xff] %v8664_v60  ;;  %5403 = vmatprep.subr.bf16.mxu0 %v8664_v60  ;;  %v4524_v32 = vcombine.low %v8492_v17, %v8492_v17  ;;  %v8723_v17 = vld [vmem:[%s9669_s1 + $0x5b8] sm:$0xff]  }
 0x24a   :  { %v2605_v25 = vadd.f32 %v5101_v8, %v8461_v11  ;;  %v5125_v34 = vpop.f32.mrb[43].mxu1  ;;  %v8671_v61 = vld [vmem:[%s9669_s1 + $0x5f0] sm:$0xff]   ;;  %v8691_v8 = vld [vmem:[%s9669_s1 + $0x578] sm:$0xff]   ;;  %10147 = vst [vmem:[#allocation28_spill] sm:$0xff] %v8723_v17 }
 0x24b   :  { %10141 = vst [vmem:[#allocation22_spill] sm:$0xff] %v8671_v61  ;;  %5425 = vmatprep.subr.bf16.mxu1 %v8671_v61  ;;  %v8679_v16 = vld [vmem:[%s9669_s1 + $0x530] sm:$0xff]   ;;  %10144 = vst [vmem:[#allocation25_spill] sm:$0xff] %v8691_v8  ;;  %v8710_v34 = vld [vmem:[%s9669_s1 + $0x538] sm:$0xff]  }
 0x24c   :  { %v8674_v57 = vadd.f32 %v5123_v5, %v2605_v25  ;;  %10142 = vst [vmem:[#allocation23_spill] sm:$0xff] %v8679_v16  ;;  %5404 = vmatpush3.bf16.msra.mxu0 %v8679_v16  ;;  %v8685_v11 = vld [vmem:[%s9669_s1 + $0x5b0] sm:$0xff]   ;;  %v8697_v5 = vld [vmem:[%s9669_s1 + $0x5f8] sm:$0xff]   ;;  %v8705_v25 = vld [vmem:[%s9668_s0 + $0x120] sm:$0xff] }
 0x24d   :  { %10143 = vst [vmem:[#allocation24_spill] sm:$0xff] %v8685_v11  ;;  %5426 = vmatpush3.bf16.msra.mxu1 %v8685_v11  ;;  %5405 = vmatprep.subr.bf16.mxu0 %v8691_v8  ;;  %10145 = vst [vmem:[#allocation26_spill] sm:$0xff] %v8697_v5  ;;  %v4526_v8 = vcombine.low %v8505_v21, %v8505_v21  ;;  %v6182_v11 = vld [vmem:[%s9669_s1 + $0x40] sm:$0xff]  }
 0x24e   :  { %5427 = vmatprep.subr.bf16.mxu1 %v8697_v5  ;;  %10146 = vst [vmem:[#allocation27_spill] sm:$0xff] %v8710_v34  ;;  %v8718_v5 = vld [vmem:[%s9668_s0 + $0x128] sm:$0xff]  ;;  %v6183_v21 = vld [vmem:[%s9669_s1 + $0xc0] sm:$0xff]  }
 0x24f   :  { %v4543_v16 = vcombine.high %v8718_v5, %v8718_v5 }
 0x250   :  { %5406 = vmatpush3.bf16.msra.mxu0 %v8710_v34  ;;  %v4541_v34 = vcombine.high %v8705_v25, %v8705_v25 }
 0x251   :  { %5428 = vmatpush3.bf16.msra.mxu1 %v8723_v17  ;;  %5435 = vmatprep.subr.bf16.mxu0 %v6182_v11  ;;  %v6184_v17 = vld [vmem:[%s9669_s1] sm:$0xff]  }
 0x252   :  { %5457 = vmatprep.subr.bf16.mxu1 %v6183_v21  ;;  %v6185_v11 = vld [vmem:[%s9669_s1 + $0x80] sm:$0xff]   ;;  %v6186_v21 = vld [vmem:[%s9669_s1 + $0x48] sm:$0xff]  }
 0x253   :  { %3263 = vmatmul.mubr.bf16.vlgmr.msra.gmra.mrb[68].mxu0 %v4524_v32  ;;  %v6187_v32 = vld [vmem:[%s9669_s1 + $0xc8] sm:$0xff]  }
 0x254   :  { %3303 = vmatmul.mubr.bf16.vlgmr.msra.gmra.mrb[68].mxu1 %v4526_v8  ;;  %5436 = vmatpush3.bf16.msra.mxu0 %v6184_v17  ;;  %v6188_v8 = vld [vmem:[%s9669_s1 + $0x8] sm:$0xff]  }
 0x255   :  { %5458 = vmatpush3.bf16.msra.mxu1 %v6185_v11  ;;  %5437 = vmatprep.subr.bf16.mxu0 %v6186_v21  ;;  %v6189_v17 = vld [vmem:[%s9669_s1 + $0x88] sm:$0xff]   ;;  %v6190_v11 = vld [vmem:[%s9669_s1 + $0x50] sm:$0xff]  }
 0x256   :  { %5459 = vmatprep.subr.bf16.mxu1 %v6187_v32  ;;  %3442 = vmatprep.mubr.bf16.mxu0 %v4541_v34  ;;  %v6191_v34 = vld [vmem:[%s9669_s1 + $0xd0] sm:$0xff]   ;;  %v6194_v32 = vld [vmem:[%s9669_s1 + $0x58] sm:$0xff]  }
 0x257   :  { %3482 = vmatprep.mubr.bf16.mxu1 %v4543_v16  ;;  %v6192_v16 = vld [vmem:[%s9669_s1 + $0x10] sm:$0xff]  }
 0x258   :  { %5438 = vmatpush3.bf16.msra.mxu0 %v6188_v8  ;;  %v6193_v21 = vld [vmem:[%s9669_s1 + $0x90] sm:$0xff]   ;;  %v6195_v8 = vld [vmem:[%s9669_s1 + $0xd8] sm:$0xff]  }
 0x259   :  { %5460 = vmatpush3.bf16.msra.mxu1 %v6189_v17  ;;  %5439 = vmatprep.subr.bf16.mxu0 %v6190_v11  ;;  %v6196_v17 = vld [vmem:[%s9669_s1 + $0x18] sm:$0xff]  }
 0x25a   :  { %5461 = vmatprep.subr.bf16.mxu1 %v6191_v34  ;;  %v6197_v11 = vld [vmem:[%s9669_s1 + $0x98] sm:$0xff]   ;;  %v6198_v34 = vld [vmem:[%s9669_s1 + $0x60] sm:$0xff]  }
 0x25c   :  { %5440 = vmatpush3.bf16.msra.mxu0 %v6192_v16  ;;  %v6199_v16 = vld [vmem:[%s9669_s1 + $0xe0] sm:$0xff]  }
 0x25d   :  { %5462 = vmatpush3.bf16.msra.mxu1 %v6193_v21  ;;  %5441 = vmatprep.subr.bf16.mxu0 %v6194_v32  ;;  %v6200_v21 = vld [vmem:[%s9669_s1 + $0x20] sm:$0xff]  }
 0x25e   :  { %5463 = vmatprep.subr.bf16.mxu1 %v6195_v8  ;;  %v6201_v32 = vld [vmem:[%s9669_s1 + $0xa0] sm:$0xff]   ;;  %v6202_v8 = vld [vmem:[%s9669_s1 + $0x68] sm:$0xff]  }
 0x260   :  { %5442 = vmatpush3.bf16.msra.mxu0 %v6196_v17 }
 0x261   :  { %5464 = vmatpush3.bf16.msra.mxu1 %v6197_v11  ;;  %5443 = vmatprep.subr.bf16.mxu0 %v6198_v34  ;;  %v6203_v11 = vld [vmem:[%s9669_s1 + $0xe8] sm:$0xff]  }
 0x262   :  { %5465 = vmatprep.subr.bf16.mxu1 %v6199_v16 }
 0x264   :  { %5444 = vmatpush3.bf16.msra.mxu0 %v6200_v21 }
 0x265   :  { %5466 = vmatpush3.bf16.msra.mxu1 %v6201_v32  ;;  %5445 = vmatprep.subr.bf16.mxu0 %v6202_v8  ;;  %v6204_v32 = vld [vmem:[%s9669_s1 + $0x28] sm:$0xff]  }
 0x266   :  { %v5143_v17 = vpop.f32.mrb[44].mxu0  ;;  %5467 = vmatprep.subr.bf16.mxu1 %v6203_v11  ;;  %v6205_v8 = vld [vmem:[%s9669_s1 + $0xa8] sm:$0xff]   ;;  %v6206_v11 = vld [vmem:[%s9669_s1 + $0x70] sm:$0xff]  }
 0x267   :  { %v5165_v34 = vpop.f32.mrb[44].mxu1  ;;  %v5144_v16 = vpop.f32.mrb[45].mxu0 }
 0x268   :  { %v5145_v61 = vadd.f32 %v5144_v16, %v5143_v17  ;;  %v5166_v21 = vpop.f32.mrb[45].mxu1  ;;  %v5146_v60 = vpop.f32.mrb[46].mxu0  ;;  %5446 = vmatpush3.bf16.msra.mxu0 %v6204_v32  ;;  %v6207_v16 = vld [vmem:[%s9669_s1 + $0xf0] sm:$0xff]  }
 0x269   :  { %v5167_v58 = vadd.f32 %v5166_v21, %v5165_v34  ;;  %v5168_v56 = vpop.f32.mrb[46].mxu1  ;;  %5468 = vmatpush3.bf16.msra.mxu1 %v6205_v8  ;;  %v5147_v18 = vpop.f32.mrb[47].mxu0  ;;  %5447 = vmatprep.subr.bf16.mxu0 %v6206_v11  ;;  %v6208_v34 = vld [vmem:[%s9669_s1 + $0x30] sm:$0xff]   ;;  %v4540_v21 = vcombine.low %v8705_v25, %v8705_v25  ;;  %v6212_v8 = vld [vmem:[%s9669_s1 + $0x38] sm:$0xff]   ;;  %v4542_v11 = vcombine.low %v8718_v5, %v8718_v5 }
 0x26a   :  { %v2685_v60 = vadd.f32 %v5145_v61, %v8674_v57  ;;  %v5169_v17 = vpop.f32.mrb[47].mxu1  ;;  %5469 = vmatprep.subr.bf16.mxu1 %v6207_v16  ;;  %v6209_v18 = vld [vmem:[%s9669_s1 + $0xb0] sm:$0xff]   ;;  %v6210_v61 = vld [vmem:[%s9669_s1 + $0x78] sm:$0xff]   ;;  %v6215_v16 = vld [vmem:[%s9669_s1 + $0x1c0] sm:$0xff]  }
 0x26b   :  { %v8828_v32 = vld [vmem:[%s9668_s0 + $0x130] sm:$0xff]  ;;  %v6213_v25 = vld [vmem:[%s9669_s1 + $0xb8] sm:$0xff]   ;;  %v6214_v17 = vld [vmem:[%s9669_s1 + $0x140] sm:$0xff]  }
 0x26c   :  { %v2725_v56 = vadd.f32 %v5167_v58, %v2685_v60  ;;  %5448 = vmatpush3.bf16.msra.mxu0 %v6208_v34  ;;  %v6211_v58 = vld [vmem:[%s9669_s1 + $0xf8] sm:$0xff]   ;;  %v4545_v5 = vcombine.high %v8828_v32, %v8828_v32  ;;  %v6216_v34 = vld [vmem:[%s9669_s1 + $0x100] sm:$0xff]  }
 0x26d   :  { %5470 = vmatpush3.bf16.msra.mxu1 %v6209_v18  ;;  %5449 = vmatprep.subr.bf16.mxu0 %v6210_v61  ;;  %v8839_v60 = vld [vmem:[%s9668_s0 + $0x138] sm:$0xff]  ;;  %v6217_v18 = vld [vmem:[%s9669_s1 + $0x180] sm:$0xff]   ;;  %v6218_v61 = vld [vmem:[%s9669_s1 + $0x148] sm:$0xff]  }
 0x26e   :  { %v8818_v57 = vmax.f32 %v2725_v56, 0.0  ;;  %5471 = vmatprep.subr.bf16.mxu1 %v6211_v58  ;;  %v4547_v56 = vcombine.high %v8839_v60, %v8839_v60  ;;  %v6219_v58 = vld [vmem:[%s9669_s1 + $0x1c8] sm:$0xff]  }
 0x270   :  { %10148 = vst [vmem:[#allocation29_spill] sm:$0xff] %v8818_v57  ;;  %5450 = vmatpush3.bf16.msra.mxu0 %v6212_v8  ;;  %2731 = vmax.xlane.f32.xlu0 %v8818_v57  ;;  %v6221_v8 = vld [vmem:[%s9669_s1 + $0x188] sm:$0xff]  }
 0x271   :  { %5472 = vmatpush3.bf16.msra.mxu1 %v6213_v25  ;;  %5479 = vmatprep.subr.bf16.mxu0 %v6214_v17  ;;  %v6223_v25 = vld [vmem:[%s9669_s1 + $0x1d0] sm:$0xff]  }
 0x272   :  { %5501 = vmatprep.subr.bf16.mxu1 %v6215_v16  ;;  %v6224_v17 = vld [vmem:[%s9669_s1 + $0x110] sm:$0xff]  }
 0x273   :  { %3443 = vmatmul.mubr.bf16.vlgmr.msra.gmra.mrb[72].mxu0 %v4540_v21  ;;  %v6220_v21 = vld [vmem:[%s9669_s1 + $0x108] sm:$0xff]   ;;  %v6225_v16 = vld [vmem:[%s9669_s1 + $0x190] sm:$0xff]  }
 0x274   :  { %3483 = vmatmul.mubr.bf16.vlgmr.msra.gmra.mrb[72].mxu1 %v4542_v11  ;;  %5480 = vmatpush3.bf16.msra.mxu0 %v6216_v34  ;;  %v6222_v11 = vld [vmem:[%s9669_s1 + $0x150] sm:$0xff]   ;;  %v6228_v34 = vld [vmem:[%s9669_s1 + $0x118] sm:$0xff]  }
 0x275   :  { %5502 = vmatpush3.bf16.msra.mxu1 %v6217_v18  ;;  %5481 = vmatprep.subr.bf16.mxu0 %v6218_v61  ;;  %v6229_v18 = vld [vmem:[%s9669_s1 + $0x198] sm:$0xff]   ;;  %v6230_v61 = vld [vmem:[%s9669_s1 + $0x160] sm:$0xff]  }
 0x276   :  { %5503 = vmatprep.subr.bf16.mxu1 %v6219_v58  ;;  %3522 = vmatprep.mubr.bf16.mxu0 %v4545_v5  ;;  %v6226_v5 = vld [vmem:[%s9669_s1 + $0x158] sm:$0xff]   ;;  %v6231_v58 = vld [vmem:[%s9669_s1 + $0x1e0] sm:$0xff]  }
 0x277   :  { %3562 = vmatprep.mubr.bf16.mxu1 %v4547_v56  ;;  %v6227_v56 = vld [vmem:[%s9669_s1 + $0x1d8] sm:$0xff]  }
 0x278   :  { %5482 = vmatpush3.bf16.msra.mxu0 %v6220_v21  ;;  %v6232_v21 = vld [vmem:[%s9669_s1 + $0x120] sm:$0xff]  }
 0x279   :  { %5504 = vmatpush3.bf16.msra.mxu1 %v6221_v8  ;;  %5483 = vmatprep.subr.bf16.mxu0 %v6222_v11  ;;  %v6233_v8 = vld [vmem:[%s9669_s1 + $0x1a0] sm:$0xff]   ;;  %v6234_v11 = vld [vmem:[%s9669_s1 + $0x168] sm:$0xff]  }
 0x27a   :  { %5505 = vmatprep.subr.bf16.mxu1 %v6223_v25 }
 0x27c   :  { %5484 = vmatpush3.bf16.msra.mxu0 %v6224_v17  ;;  %v6235_v17 = vld [vmem:[%s9669_s1 + $0x1e8] sm:$0xff]  }
 0x27d   :  { %5506 = vmatpush3.bf16.msra.mxu1 %v6225_v16  ;;  %5485 = vmatprep.subr.bf16.mxu0 %v6226_v5 }
 0x27e   :  { %5507 = vmatprep.subr.bf16.mxu1 %v6227_v56 }
 0x280   :  { %5486 = vmatpush3.bf16.msra.mxu0 %v6228_v34 }
 0x281   :  { %5508 = vmatpush3.bf16.msra.mxu1 %v6229_v18  ;;  %5487 = vmatprep.subr.bf16.mxu0 %v6230_v61  ;;  %v6236_v61 = vld [vmem:[%s9669_s1 + $0x128] sm:$0xff]  }
 0x282   :  { %5509 = vmatprep.subr.bf16.mxu1 %v6231_v58 }
 0x284   :  { %5488 = vmatpush3.bf16.msra.mxu0 %v6232_v21 }
 0x285   :  { %5510 = vmatpush3.bf16.msra.mxu1 %v6233_v8  ;;  %5489 = vmatprep.subr.bf16.mxu0 %v6234_v11  ;;  %v6237_v8 = vld [vmem:[%s9669_s1 + $0x1a8] sm:$0xff]  }
 0x286   :  { %v5187_v25 = vpop.f32.mrb[48].mxu0  ;;  %5511 = vmatprep.subr.bf16.mxu1 %v6235_v17  ;;  %v6238_v17 = vld [vmem:[%s9669_s1 + $0x170] sm:$0xff]  }
 0x287   :  { %v5209_v16 = vpop.f32.mrb[48].mxu1  ;;  %v5188_v5 = vpop.f32.mrb[49].mxu0 }
 0x288   :  { %v5189_v56 = vadd.f32 %v5188_v5, %v5187_v25  ;;  %v5210_v34 = vpop.f32.mrb[49].mxu1  ;;  %v5190_v18 = vpop.f32.mrb[50].mxu0  ;;  %5490 = vmatpush3.bf16.msra.mxu0 %v6236_v61  ;;  %v8926_v25 = vld [vmem:[%s9670_s2] ss:$0 sm:$0xff]  ;;  %v6241_v61 = vld [vmem:[%s9669_s1 + $0x130] sm:$0xff]   ;;  %s9267_s2 = sld [smem:[#allocation2 + $0x2]] }
 0x289   :  { %v5211_v58 = vadd.f32 %v5210_v34, %v5209_v16  ;;  %v5212_v21 = vpop.f32.mrb[50].mxu1  ;;  %5512 = vmatpush3.bf16.msra.mxu1 %v6237_v8  ;;  %v5191_v11 = vpop.f32.mrb[51].mxu0  ;;  %5491 = vmatprep.subr.bf16.mxu0 %v6238_v17  ;;  %10149 = vst [vmem:[#allocation30_spill] sm:$0xff] %v8926_v25  ;;  %v6240_v34 = vld [vmem:[%s9669_s1 + $0x1f0] sm:$0xff]   ;;  %v4544_v8 = vcombine.low %v8828_v32, %v8828_v32  ;;  %v6245_v17 = vld [vmem:[%s9669_s1 + $0x138] sm:$0xff]  }
 0x28a   :  { %v2865_v5 = vadd.f32 %v8926_v25, %v5189_v56  ;;  %v5213_v16 = vpop.f32.mrb[51].mxu1  ;;  %5513 = vmatprep.subr.bf16.mxu1 %v6240_v34  ;;  %v6242_v21 = vld [vmem:[%s9669_s1 + $0x1b0] sm:$0xff]   ;;  %v6243_v56 = vld [vmem:[%s9669_s1 + $0x178] sm:$0xff]   ;;  %v8951_v11 = vld [vmem:[%s9668_s0 + $0x140] sm:$0xff] }
 0x28b   :  { %v8961_v16 = vld [vmem:[%s9668_s0 + $0x148] sm:$0xff]  ;;  %v6246_v32 = vld [vmem:[%s9669_s1 + $0x1b8] sm:$0xff]   ;;  %v6247_v34 = vld [vmem:[%s9669_s1 + $0x240] sm:$0xff]  }
 0x28c   :  { %v8932_v18 = vadd.f32 %v5211_v58, %v2865_v5  ;;  %5492 = vmatpush3.bf16.msra.mxu0 %v6241_v61  ;;  %v6244_v58 = vld [vmem:[%s9669_s1 + $0x1f8] sm:$0xff]   ;;  %v4546_v5 = vcombine.low %v8839_v60, %v8839_v60  ;;  %v6248_v61 = vld [vmem:[%s9669_s1 + $0x2c0] sm:$0xff]   ;;  %v4549_v60 = vcombine.high %v8951_v11, %v8951_v11 }
 0x28d   :  { %5514 = vmatpush3.bf16.msra.mxu1 %v6242_v21  ;;  %5493 = vmatprep.subr.bf16.mxu0 %v6243_v56  ;;  %v4551_v21 = vcombine.high %v8961_v16, %v8961_v16  ;;  %v6249_v56 = vld [vmem:[%s9669_s1 + $0x200] sm:$0xff]  }
 0x28e   :  { %5515 = vmatprep.subr.bf16.mxu1 %v6244_v58  ;;  %v6250_v58 = vld [vmem:[%s9669_s1 + $0x280] sm:$0xff]  }
 0x290   :  { %5494 = vmatpush3.bf16.msra.mxu0 %v6245_v17  ;;  %v6251_v17 = vld [vmem:[%s9669_s1 + $0x248] sm:$0xff]  }
 0x291   :  { %5516 = vmatpush3.bf16.msra.mxu1 %v6246_v32  ;;  %5523 = vmatprep.subr.bf16.mxu0 %v6247_v34  ;;  %v6254_v32 = vld [vmem:[%s9669_s1 + $0x288] sm:$0xff]   ;;  %v6255_v34 = vld [vmem:[%s9669_s1 + $0x250] sm:$0xff]  }
 0x292   :  { %5545 = vmatprep.subr.bf16.mxu1 %v6248_v61  ;;  %v6256_v61 = vld [vmem:[%s9669_s1 + $0x2d0] sm:$0xff]  }
 0x293   :  { %3523 = vmatmul.mubr.bf16.vlgmr.msra.gmra.mrb[76].mxu0 %v4544_v8  ;;  %v6252_v8 = vld [vmem:[%s9669_s1 + $0x2c8] sm:$0xff]  }
 0x294   :  { %3563 = vmatmul.mubr.bf16.vlgmr.msra.gmra.mrb[76].mxu1 %v4546_v5  ;;  %5524 = vmatpush3.bf16.msra.mxu0 %v6249_v56  ;;  %v6253_v5 = vld [vmem:[%s9669_s1 + $0x208] sm:$0xff]   ;;  %v6259_v56 = vld [vmem:[%s9669_s1 + $0x258] sm:$0xff]  }
 0x295   :  { %5546 = vmatpush3.bf16.msra.mxu1 %v6250_v58  ;;  %5525 = vmatprep.subr.bf16.mxu0 %v6251_v17  ;;  %v6260_v58 = vld [vmem:[%s9669_s1 + $0x2d8] sm:$0xff]  }
 0x296   :  { %5547 = vmatprep.subr.bf16.mxu1 %v6252_v8  ;;  %3602 = vmatprep.mubr.bf16.mxu0 %v4549_v60  ;;  %v6257_v60 = vld [vmem:[%s9669_s1 + $0x210] sm:$0xff]   ;;  %v6261_v17 = vld [vmem:[%s9669_s1 + $0x218] sm:$0xff]  }
 0x297   :  { %3642 = vmatprep.mubr.bf16.mxu1 %v4551_v21  ;;  %v6258_v21 = vld [vmem:[%s9669_s1 + $0x290] sm:$0xff]   ;;  %v6262_v8 = vld [vmem:[%s9669_s1 + $0x298] sm:$0xff]  }
 0x298   :  { %5526 = vmatpush3.bf16.msra.mxu0 %v6253_v5  ;;  %v6263_v5 = vld [vmem:[%s9669_s1 + $0x260] sm:$0xff]  }
 0x299   :  { %5548 = vmatpush3.bf16.msra.mxu1 %v6254_v32  ;;  %5527 = vmatprep.subr.bf16.mxu0 %v6255_v34  ;;  %v6264_v32 = vld [vmem:[%s9669_s1 + $0x2e0] sm:$0xff]  }
 0x29a   :  { %5549 = vmatprep.subr.bf16.mxu1 %v6256_v61  ;;  %v6265_v34 = vld [vmem:[%s9669_s1 + $0x220] sm:$0xff]  }
 0x29b   :  { %v6266_v61 = vld [vmem:[%s9669_s1 + $0x2a0] sm:$0xff]  }
 0x29c   :  { %5528 = vmatpush3.bf16.msra.mxu0 %v6257_v60  ;;  %v6267_v60 = vld [vmem:[%s9669_s1 + $0x268] sm:$0xff]  }
 0x29d   :  { %5550 = vmatpush3.bf16.msra.mxu1 %v6258_v21  ;;  %5529 = vmatprep.subr.bf16.mxu0 %v6259_v56  ;;  %v6268_v56 = vld [vmem:[%s9669_s1 + $0x2e8] sm:$0xff]  }
 0x29e   :  { %5551 = vmatprep.subr.bf16.mxu1 %v6260_v58 }
 0x2a0   :  { %5530 = vmatpush3.bf16.msra.mxu0 %v6261_v17 }
 0x2a1   :  { %5552 = vmatpush3.bf16.msra.mxu1 %v6262_v8  ;;  %5531 = vmatprep.subr.bf16.mxu0 %v6263_v5 }
 0x2a2   :  { %5553 = vmatprep.subr.bf16.mxu1 %v6264_v32 }
 0x2a4   :  { %5532 = vmatpush3.bf16.msra.mxu0 %v6265_v34  ;;  %v6269_v34 = vld [vmem:[%s9669_s1 + $0x228] sm:$0xff]  }
 0x2a5   :  { %5554 = vmatpush3.bf16.msra.mxu1 %v6266_v61  ;;  %5533 = vmatprep.subr.bf16.mxu0 %v6267_v60  ;;  %v6270_v60 = vld [vmem:[%s9669_s1 + $0x2a8] sm:$0xff]  }
 0x2a6   :  { %v5231_v21 = vpop.f32.mrb[52].mxu0  ;;  %5555 = vmatprep.subr.bf16.mxu1 %v6268_v56  ;;  %v6271_v56 = vld [vmem:[%s9669_s1 + $0x270] sm:$0xff]  }
 0x2a7   :  { %v5253_v58 = vpop.f32.mrb[52].mxu1  ;;  %v5232_v17 = vpop.f32.mrb[53].mxu0 }
 0x2a8   :  { %v5233_v8 = vadd.f32 %v5232_v17, %v5231_v21  ;;  %v5254_v5 = vpop.f32.mrb[53].mxu1  ;;  %v5234_v32 = vpop.f32.mrb[54].mxu0  ;;  %5534 = vmatpush3.bf16.msra.mxu0 %v6269_v34  ;;  %v9068_v34 = vld [vmem:[%s9668_s0 + $0x150] sm:$0xff] }
 0x2a9   :  { %v5255_v61 = vadd.f32 %v5254_v5, %v5253_v58  ;;  %v5256_v57 = vpop.f32.mrb[54].mxu1  ;;  %5556 = vmatpush3.bf16.msra.mxu1 %v6270_v60  ;;  %v5235_v25 = vpop.f32.mrb[55].mxu0  ;;  %5535 = vmatprep.subr.bf16.mxu0 %v6271_v56  ;;  %v6272_v32 = vld [vmem:[%s9669_s1 + $0x2f0] sm:$0xff]   ;;  %v4548_v5 = vcombine.low %v8951_v11, %v8951_v11  ;;  %v4550_v60 = vcombine.low %v8961_v16, %v8961_v16  ;;  %v9078_v56 = vld [vmem:[%s9668_s0 + $0x158] sm:$0xff] }
 0x2aa   :  { %v2945_v21 = vadd.f32 %v5233_v8, %v8932_v18  ;;  %v5257_v17 = vpop.f32.mrb[55].mxu1  ;;  %5557 = vmatprep.subr.bf16.mxu1 %v6272_v32  ;;  %v6273_v58 = vld [vmem:[%s9669_s1 + $0x230] sm:$0xff]   ;;  %v6275_v18 = vld [vmem:[%s9669_s1 + $0x278] sm:$0xff]   ;;  %v4553_v16 = vcombine.high %v9068_v34, %v9068_v34  ;;  %v4555_v32 = vcombine.high %v9078_v56, %v9078_v56 }
 0x2ab   :  { %v6274_v25 = vld [vmem:[%s9669_s1 + $0x2b0] sm:$0xff]   ;;  %v6276_v8 = vld [vmem:[%s9669_s1 + $0x2f8] sm:$0xff]   ;;  %v6280_v17 = vld [vmem:[%s9669_s1 + $0x3c0] sm:$0xff]  }
 0x2ac   :  { %v9049_v57 = vadd.f32 %v5255_v61, %v2945_v21  ;;  %5536 = vmatpush3.bf16.msra.mxu0 %v6273_v58  ;;  %v6277_v61 = vld [vmem:[%s9669_s1 + $0x238] sm:$0xff]   ;;  %v6279_v21 = vld [vmem:[%s9669_s1 + $0x340] sm:$0xff]  }
 0x2ad   :  { %5558 = vmatpush3.bf16.msra.mxu1 %v6274_v25  ;;  %5537 = vmatprep.subr.bf16.mxu0 %v6275_v18  ;;  %v6278_v11 = vld [vmem:[%s9669_s1 + $0x2b8] sm:$0xff]   ;;  %v6281_v58 = vld [vmem:[%s9669_s1 + $0x300] sm:$0xff]   ;;  %v6283_v18 = vld [vmem:[%s9669_s1 + $0x348] sm:$0xff]  }
 0x2ae   :  { %5559 = vmatprep.subr.bf16.mxu1 %v6276_v8  ;;  %v6282_v25 = vld [vmem:[%s9669_s1 + $0x380] sm:$0xff]   ;;  %v6284_v8 = vld [vmem:[%s9669_s1 + $0x3c8] sm:$0xff]  }
 0x2b0   :  { %5538 = vmatpush3.bf16.msra.mxu0 %v6277_v61  ;;  %v6286_v61 = vld [vmem:[%s9669_s1 + $0x388] sm:$0xff]  }
 0x2b1   :  { %5560 = vmatpush3.bf16.msra.mxu1 %v6278_v11  ;;  %5567 = vmatprep.subr.bf16.mxu0 %v6279_v21  ;;  %v6288_v11 = vld [vmem:[%s9669_s1 + $0x3d0] sm:$0xff]  }
 0x2b2   :  { %5589 = vmatprep.subr.bf16.mxu1 %v6280_v17  ;;  %v6289_v21 = vld [vmem:[%s9669_s1 + $0x310] sm:$0xff]  }
 0x2b3   :  { %3603 = vmatmul.mubr.bf16.vlgmr.msra.gmra.mrb[80].mxu0 %v4548_v5  ;;  %v6285_v5 = vld [vmem:[%s9669_s1 + $0x308] sm:$0xff]   ;;  %v6290_v17 = vld [vmem:[%s9669_s1 + $0x390] sm:$0xff]  }
 0x2b4   :  { %3643 = vmatmul.mubr.bf16.vlgmr.msra.gmra.mrb[80].mxu1 %v4550_v60  ;;  %5568 = vmatpush3.bf16.msra.mxu0 %v6281_v58  ;;  %v6287_v60 = vld [vmem:[%s9669_s1 + $0x350] sm:$0xff]   ;;  %v6293_v58 = vld [vmem:[%s9669_s1 + $0x318] sm:$0xff]  }
 0x2b5   :  { %5590 = vmatpush3.bf16.msra.mxu1 %v6282_v25  ;;  %5569 = vmatprep.subr.bf16.mxu0 %v6283_v18  ;;  %v6294_v25 = vld [vmem:[%s9669_s1 + $0x398] sm:$0xff]   ;;  %v6295_v18 = vld [vmem:[%s9669_s1 + $0x360] sm:$0xff]  }
 0x2b6   :  { %5591 = vmatprep.subr.bf16.mxu1 %v6284_v8  ;;  %3682 = vmatprep.mubr.bf16.mxu0 %v4553_v16  ;;  %v6291_v16 = vld [vmem:[%s9669_s1 + $0x358] sm:$0xff]   ;;  %v6296_v8 = vld [vmem:[%s9669_s1 + $0x3e0] sm:$0xff]  }
 0x2b7   :  { %3722 = vmatprep.mubr.bf16.mxu1 %v4555_v32  ;;  %v6292_v32 = vld [vmem:[%s9669_s1 + $0x3d8] sm:$0xff]  }
 0x2b8   :  { %5570 = vmatpush3.bf16.msra.mxu0 %v6285_v5  ;;  %v6297_v5 = vld [vmem:[%s9669_s1 + $0x320] sm:$0xff]  }
 0x2b9   :  { %5592 = vmatpush3.bf16.msra.mxu1 %v6286_v61  ;;  %5571 = vmatprep.subr.bf16.mxu0 %v6287_v60  ;;  %v6298_v61 = vld [vmem:[%s9669_s1 + $0x3a0] sm:$0xff]   ;;  %v6299_v60 = vld [vmem:[%s9669_s1 + $0x368] sm:$0xff]  }
 0x2ba   :  { %5593 = vmatprep.subr.bf16.mxu1 %v6288_v11 }
 0x2bc   :  { %5572 = vmatpush3.bf16.msra.mxu0 %v6289_v21  ;;  %v6300_v21 = vld [vmem:[%s9669_s1 + $0x3e8] sm:$0xff]  }
 0x2bd   :  { %5594 = vmatpush3.bf16.msra.mxu1 %v6290_v17  ;;  %5573 = vmatprep.subr.bf16.mxu0 %v6291_v16 }
 0x2be   :  { %5595 = vmatprep.subr.bf16.mxu1 %v6292_v32 }
 0x2c0   :  { %5574 = vmatpush3.bf16.msra.mxu0 %v6293_v58 }
 0x2c1   :  { %5596 = vmatpush3.bf16.msra.mxu1 %v6294_v25  ;;  %5575 = vmatprep.subr.bf16.mxu0 %v6295_v18  ;;  %v6301_v18 = vld [vmem:[%s9669_s1 + $0x328] sm:$0xff]  }
 0x2c2   :  { %5597 = vmatprep.subr.bf16.mxu1 %v6296_v8 }
 0x2c4   :  { %5576 = vmatpush3.bf16.msra.mxu0 %v6297_v5 }
 0x2c5   :  { %5598 = vmatpush3.bf16.msra.mxu1 %v6298_v61  ;;  %5577 = vmatprep.subr.bf16.mxu0 %v6299_v60  ;;  %v6302_v61 = vld [vmem:[%s9669_s1 + $0x3a8] sm:$0xff]   ;;  %s9299_s1 = sld [smem:[#allocation2 + $0x6]] }
 0x2c6   :  { %v5275_v11 = vpop.f32.mrb[56].mxu0  ;;  %5599 = vmatprep.subr.bf16.mxu1 %v6300_v21 }
 0x2c7   :  { %v5297_v17 = vpop.f32.mrb[56].mxu1  ;;  %v5276_v16 = vpop.f32.mrb[57].mxu0 }
 0x2c8   :  { %v5277_v32 = vadd.f32 %v5276_v16, %v5275_v11  ;;  %v5298_v58 = vpop.f32.mrb[57].mxu1  ;;  %v5278_v25 = vpop.f32.mrb[58].mxu0  ;;  %5578 = vmatpush3.bf16.msra.mxu0 %v6301_v18  ;;  %v10170_v18 = vld [vmem:[#allocation26_spill] sm:$0xff] }
 0x2c9   :  { %v5299_v8 = vadd.f32 %v5298_v58, %v5297_v17  ;;  %v5300_v5 = vpop.f32.mrb[58].mxu1  ;;  %5600 = vmatpush3.bf16.msra.mxu1 %v6302_v61  ;;  %v5279_v60 = vpop.f32.mrb[59].mxu0  ;;  %5579 = vmatprep.subr.bf16.mxu0 %v8239_v26  ;;  %v4552_v17 = vcombine.low %v9068_v34, %v9068_v34  ;;  %v4536_v26 = vld [vmem:[%s9668_s0 + $0x160] sm:$0xff]  ;;  %v10166_v34 = vld [vmem:[#allocation22_spill] sm:$0xff]  ;;  %v10168_v58 = vld [vmem:[#allocation24_spill] sm:$0xff] }
 0x2ca   :  { %v3025_v21 = vadd.f32 %v5277_v32, %v9049_v57  ;;  %v5301_v11 = vpop.f32.mrb[59].mxu1  ;;  %5601 = vmatprep.subr.bf16.mxu1 %v8245_v27  ;;  %v4554_v27 = vcombine.low %v9078_v56, %v9078_v56  ;;  %v10167_v32 = vld [vmem:[#allocation23_spill] sm:$0xff]  ;;  %v10169_v25 = vld [vmem:[#allocation25_spill] sm:$0xff]  ;;  %v10172_v60 = vld [vmem:[#allocation28_spill] sm:$0xff] }
 0x2cb   :  { %v10171_v5 = vld [vmem:[#allocation27_spill] sm:$0xff] }
 0x2cc   :  { %v3065_v16 = vadd.f32 %v5299_v8, %v3025_v21  ;;  %5580 = vmatpush3.bf16.msra.mxu0 %v8253_v59  ;;  %v4537_v59 = vld [vmem:[%s9668_s0 + $0x168] sm:$0xff] }
 0x2cd   :  { %5602 = vmatpush3.bf16.msra.mxu1 %v8259_v28  ;;  %5581 = vmatprep.subr.bf16.mxu0 %v8265_v29  ;;  %v4557_v28 = vcombine.high %v4536_v26, %v4536_v26  ;;  %v4559_v29 = vcombine.high %v4537_v59, %v4537_v59 }
 0x2ce   :  { %5603 = vmatprep.subr.bf16.mxu1 %v8271_v30 }
 0x2d0   :  { %5582 = vmatpush3.bf16.msra.mxu0 %v8284_v33 }
 0x2d1   :  { %5604 = vmatpush3.bf16.msra.mxu1 %v8297_v36  ;;  %5611 = vmatprep.subr.bf16.mxu0 %v8303_v37 }
 0x2d2   :  { %5633 = vmatprep.subr.bf16.mxu1 %v8309_v38 }
 0x2d3   :  { %3683 = vmatmul.mubr.bf16.vlgmr.msra.gmra.mrb[84].mxu0 %v4552_v17 }
 0x2d4   :  { %3723 = vmatmul.mubr.bf16.vlgmr.msra.gmra.mrb[84].mxu1 %v4554_v27  ;;  %5612 = vmatpush3.bf16.msra.mxu0 %v8319_v41 }
 0x2d5   :  { %5634 = vmatpush3.bf16.msra.mxu1 %v8325_v19  ;;  %5613 = vmatprep.subr.bf16.mxu0 %v8331_v42 }
 0x2d6   :  { %5635 = vmatprep.subr.bf16.mxu1 %v8337_v43  ;;  %3762 = vmatprep.mubr.bf16.mxu0 %v4557_v28 }
 0x2d7   :  { %3802 = vmatprep.mubr.bf16.mxu1 %v4559_v29 }
 0x2d8   :  { %5614 = vmatpush3.bf16.msra.mxu0 %v8343_v44 }
 0x2d9   :  { %5636 = vmatpush3.bf16.msra.mxu1 %v8349_v45  ;;  %5615 = vmatprep.subr.bf16.mxu0 %v8355_v46 }
 0x2da   :  { %5637 = vmatprep.subr.bf16.mxu1 %v8361_v47  ;;  %v4556_v47 = vcombine.low %v4536_v26, %v4536_v26 }
 0x2dc   :  { %5616 = vmatpush3.bf16.msra.mxu0 %v8367_v48  ;;  %v4538_v48 = vld [vmem:[%s9668_s0 + $0x170] sm:$0xff] }
 0x2dd   :  { %5638 = vmatpush3.bf16.msra.mxu1 %v8373_v49  ;;  %5617 = vmatprep.subr.bf16.mxu0 %v8379_v50  ;;  %v4558_v49 = vcombine.low %v4537_v59, %v4537_v59  ;;  %v4539_v50 = vld [vmem:[%s9668_s0 + $0x178] sm:$0xff]  ;;  %v4560_v8 = vcombine.low %v4538_v48, %v4538_v48  ;;  %s9255_s0 = sld [smem:[#allocation2 + $0x10]] }
 0x2de   :  { %5639 = vmatprep.subr.bf16.mxu1 %v8385_v51  ;;  %v4561_v51 = vcombine.high %v4538_v48, %v4538_v48  ;;  %v4562_v61 = vcombine.low %v4539_v50, %v4539_v50  ;;  %v10173_v48 = vld [vmem:[#allocation30_spill] sm:$0xff] }
 0x2e0   :  { %5618 = vmatpush3.bf16.msra.mxu0 %v8391_v52  ;;  %v4563_v52 = vcombine.high %v4539_v50, %v4539_v50 }
 0x2e1   :  { %5640 = vmatpush3.bf16.msra.mxu1 %v8397_v53  ;;  %5619 = vmatprep.subr.bf16.mxu0 %v8403_v54  ;;  %v10150_v53 = vld [vmem:[#allocation6_spill] sm:$0xff]  ;;  %v10151_v54 = vld [vmem:[#allocation7_spill] sm:$0xff] }
 0x2e2   :  { %5641 = vmatprep.subr.bf16.mxu1 %v8409_v55  ;;  %v10152_v55 = vld [vmem:[#allocation8_spill] sm:$0xff] }
 0x2e4   :  { %5620 = vmatpush3.bf16.msra.mxu0 %v8415_v62  ;;  %v10153_v62 = vld [vmem:[#allocation9_spill] sm:$0xff] }
 0x2e5   :  { %5642 = vmatpush3.bf16.msra.mxu1 %v8421_v63  ;;  %5621 = vmatprep.subr.bf16.mxu0 %v8427_v0  ;;  %v10154_v63 = vld [vmem:[#allocation10_spill] sm:$0xff]  ;;  %v10155_v0 = vld [vmem:[#allocation11_spill] sm:$0xff] }
 0x2e6   :  { %v5319_v30 = vpop.f32.mrb[60].mxu0  ;;  %5643 = vmatprep.subr.bf16.mxu1 %v8433_v2  ;;  %v10156_v2 = vld [vmem:[#allocation12_spill] sm:$0xff] }
 0x2e7   :  { %v5341_v33 = vpop.f32.mrb[60].mxu1  ;;  %v5320_v36 = vpop.f32.mrb[61].mxu0 }
 0x2e8   :  { %v5321_v37 = vadd.f32 %v5320_v36, %v5319_v30  ;;  %v5342_v38 = vpop.f32.mrb[61].mxu1  ;;  %v5322_v41 = vpop.f32.mrb[62].mxu0  ;;  %5622 = vmatpush3.bf16.msra.mxu0 %v8439_v6  ;;  %v10157_v6 = vld [vmem:[#allocation13_spill] sm:$0xff] }
 0x2e9   :  { %v5343_v19 = vadd.f32 %v5342_v38, %v5341_v33  ;;  %v5344_v42 = vpop.f32.mrb[62].mxu1  ;;  %5644 = vmatpush3.bf16.msra.mxu1 %v8445_v7  ;;  %v5323_v43 = vpop.f32.mrb[63].mxu0  ;;  %5623 = vmatprep.subr.bf16.mxu0 %v8451_v22  ;;  %v10158_v7 = vld [vmem:[#allocation14_spill] sm:$0xff]  ;;  %v10159_v22 = vld [vmem:[#allocation15_spill] sm:$0xff] }
 0x2ea   :  { %v3105_v44 = vadd.f32 %v5321_v37, %v3065_v16  ;;  %v5345_v45 = vpop.f32.mrb[63].mxu1  ;;  %5645 = vmatprep.subr.bf16.mxu1 %v8458_v10  ;;  %v10160_v10 = vld [vmem:[#allocation16_spill] sm:$0xff] }
 0x2ec   :  { %v3145_v46 = vadd.f32 %v5343_v19, %v3105_v44  ;;  %5624 = vmatpush3.bf16.msra.mxu0 %v8466_v12  ;;  %v10161_v12 = vld [vmem:[#allocation17_spill] sm:$0xff] }
 0x2ed   :  { %5646 = vmatpush3.bf16.msra.mxu1 %v8472_v13  ;;  %5625 = vmatprep.subr.bf16.mxu0 %v8478_v14  ;;  %v10162_v14 = vld [vmem:[#allocation18_spill] sm:$0xff] }
 0x2ee   :  { %5647 = vmatprep.subr.bf16.mxu1 %v8484_v15 }
 0x2f0   :  { %5626 = vmatpush3.bf16.msra.mxu0 %v8497_v23 }
 0x2f1   :  { %5648 = vmatpush3.bf16.msra.mxu1 %v8510_v20  ;;  %5655 = vmatprep.subr.bf16.mxu0 %v8516_v9 }
 0x2f2   :  { %5677 = vmatprep.subr.bf16.mxu1 %v8522_v31 }
 0x2f3   :  { %3763 = vmatmul.mubr.bf16.vlgmr.msra.gmra.mrb[88].mxu0 %v4556_v47 }
 0x2f4   :  { %3803 = vmatmul.mubr.bf16.vlgmr.msra.gmra.mrb[88].mxu1 %v4558_v49  ;;  %5656 = vmatpush3.bf16.msra.mxu0 %v8532_v35  ;;  %v10163_v35 = vld [vmem:[#allocation19_spill] sm:$0xff] }
 0x2f5   :  { %5678 = vmatpush3.bf16.msra.mxu1 %v8538_v39  ;;  %5657 = vmatprep.subr.bf16.mxu0 %v8544_v40 }
 0x2f6   :  { %5679 = vmatprep.subr.bf16.mxu1 %v8550_v1  ;;  %3842 = vmatprep.mubr.bf16.mxu0 %v4561_v51  ;;  %v10164_v1 = vld [vmem:[#allocation20_spill] sm:$0xff] }
 0x2f7   :  { %3882 = vmatprep.mubr.bf16.mxu1 %v4563_v52 }
 0x2f8   :  { %5658 = vmatpush3.bf16.msra.mxu0 %v8556_v3 }
 0x2f9   :  { %5680 = vmatpush3.bf16.msra.mxu1 %v8562_v4  ;;  %5659 = vmatprep.subr.bf16.mxu0 %v8568_v24  ;;  %v10165_v4 = vld [vmem:[#allocation21_spill] sm:$0xff] }
 0x2fa   :  { %5681 = vmatprep.subr.bf16.mxu1 %v10150_v53 }
 0x2fc   :  { %5660 = vmatpush3.bf16.msra.mxu0 %v10151_v54 }
 0x2fd   :  { %5682 = vmatpush3.bf16.msra.mxu1 %v10152_v55  ;;  %5661 = vmatprep.subr.bf16.mxu0 %v10153_v62 }
 0x2fe   :  { %5683 = vmatprep.subr.bf16.mxu1 %v10154_v63 }
 0x300   :  { %5662 = vmatpush3.bf16.msra.mxu0 %v10155_v0 }
 0x301   :  { %5684 = vmatpush3.bf16.msra.mxu1 %v10156_v2  ;;  %5663 = vmatprep.subr.bf16.mxu0 %v10157_v6 }
 0x302   :  { %5685 = vmatprep.subr.bf16.mxu1 %v10158_v7 }
 0x304   :  { %5664 = vmatpush3.bf16.msra.mxu0 %v10159_v22 }
 0x305   :  { %5686 = vmatpush3.bf16.msra.mxu1 %v10160_v10  ;;  %5665 = vmatprep.subr.bf16.mxu0 %v10161_v12 }
 0x306   :  { %v5363_v13 = vpop.f32.mrb[64].mxu0  ;;  %5687 = vmatprep.subr.bf16.mxu1 %v10162_v14 }
 0x307   :  { %v5385_v15 = vpop.f32.mrb[64].mxu1  ;;  %v5364_v23 = vpop.f32.mrb[65].mxu0 }
 0x308   :  { %v5365_v20 = vadd.f32 %v5364_v23, %v5363_v13  ;;  %v5386_v9 = vpop.f32.mrb[65].mxu1  ;;  %v5366_v31 = vpop.f32.mrb[66].mxu0  ;;  %5666 = vmatpush3.bf16.msra.mxu0 %v10163_v35 }
 0x309   :  { %v5387_v39 = vadd.f32 %v5386_v9, %v5385_v15  ;;  %v5388_v40 = vpop.f32.mrb[66].mxu1  ;;  %5688 = vmatpush3.bf16.msra.mxu1 %v10164_v1  ;;  %v5367_v3 = vpop.f32.mrb[67].mxu0  ;;  %5667 = vmatprep.subr.bf16.mxu0 %v10165_v4 }
 0x30a   :  { %v3185_v24 = vadd.f32 %v5365_v20, %v3145_v46  ;;  %v5389_v57 = vpop.f32.mrb[67].mxu1  ;;  %5689 = vmatprep.subr.bf16.mxu1 %v10166_v34 }
 0x30c   :  { %v3225_v56 = vadd.f32 %v5387_v39, %v3185_v24  ;;  %5668 = vmatpush3.bf16.msra.mxu0 %v10167_v32 }
 0x30d   :  { %5690 = vmatpush3.bf16.msra.mxu1 %v10168_v58  ;;  %5669 = vmatprep.subr.bf16.mxu0 %v10169_v25 }
 0x30e   :  { %5691 = vmatprep.subr.bf16.mxu1 %v10170_v18 }
 0x310   :  { %5670 = vmatpush3.bf16.msra.mxu0 %v10171_v5 }
 0x311   :  { %5692 = vmatpush3.bf16.msra.mxu1 %v10172_v60 }
 0x313   :  { %3843 = vmatmul.mubr.bf16.vlgmr.msra.gmra.mrb[92].mxu0 %v4560_v8 }
 0x314   :  { %3883 = vmatmul.mubr.bf16.vlgmr.msra.gmra.mrb[92].mxu1 %v4562_v61 }
 0x326   :  { %v5407_v21 = vpop.f32.mrb[68].mxu0 }
 0x327   :  { %v5429_v11 = vpop.f32.mrb[68].mxu1  ;;  %v5408_v16 = vpop.f32.mrb[69].mxu0 }
 0x328   :  { %v5409_v17 = vadd.f32 %v5408_v16, %v5407_v21  ;;  %v5430_v26 = vpop.f32.mrb[69].mxu1  ;;  %v5410_v27 = vpop.f32.mrb[70].mxu0 }
 0x329   :  { %v5431_v59 = vadd.f32 %v5430_v26, %v5429_v11  ;;  %v5432_v28 = vpop.f32.mrb[70].mxu1  ;;  %v5411_v29 = vpop.f32.mrb[71].mxu0 }
 0x32a   :  { %v3265_v30 = vadd.f32 %v5409_v17, %v3225_v56  ;;  %v5433_v33 = vpop.f32.mrb[71].mxu1 }
 0x32c   :  { %v3305_v36 = vadd.f32 %v5431_v59, %v3265_v30 }
 0x32e   :  { %v9248_v37 = vmax.f32 %v3305_v36, 0.0 }
 0x330   :  { %3311 = vmax.xlane.f32.xlu1 %v9248_v37 }
 0x346   :  { %v5451_v38 = vpop.f32.mrb[72].mxu0 }
 0x347   :  { %v5473_v41 = vpop.f32.mrb[72].mxu1  ;;  %v5452_v19 = vpop.f32.mrb[73].mxu0 }
 0x348   :  { %v5453_v42 = vadd.f32 %v5452_v19, %v5451_v38  ;;  %v5474_v43 = vpop.f32.mrb[73].mxu1  ;;  %v5454_v44 = vpop.f32.mrb[74].mxu0 }
 0x349   :  { %v5475_v45 = vadd.f32 %v5474_v43, %v5473_v41  ;;  %v5476_v46 = vpop.f32.mrb[74].mxu1  ;;  %v5455_v47 = vpop.f32.mrb[75].mxu0 }
 0x34a   :  { %v3445_v49 = vadd.f32 %v10173_v48, %v5453_v42  ;;  %v5477_v50 = vpop.f32.mrb[75].mxu1 }
 0x34b   :  { %v3976_v50 = vstv %s9255_s0  ;;  %s9330_s0 = sld [smem:[#allocation2 + $0x26]] }
 0x34c   :  { %v3485_v51 = vadd.f32 %v5475_v45, %v3445_v49 }
 0x366   :  { %v5495_v52 = vpop.f32.mrb[76].mxu0 }
 0x367   :  { %v5517_v53 = vpop.f32.mrb[76].mxu1  ;;  %v5496_v54 = vpop.f32.mrb[77].mxu0 }
 0x368   :  { %v5497_v55 = vadd.f32 %v5496_v54, %v5495_v52  ;;  %v5518_v62 = vpop.f32.mrb[77].mxu1  ;;  %v5498_v63 = vpop.f32.mrb[78].mxu0  ;;  %v4015_v52 = vstv %s9259_s16  ;;  %s9368_s16 = sld [smem:[#allocation2 + $0x18]] }
 0x369   :  { %v5519_v0 = vadd.f32 %v5518_v62, %v5517_v53  ;;  %v5520_v2 = vpop.f32.mrb[78].mxu1  ;;  %v5499_v6 = vpop.f32.mrb[79].mxu0  ;;  %v4035_v53 = vstv %s9261_s17  ;;  %v3913_v62 = vstv %s9265_s19  ;;  %v3933_v63 = vstv %s9267_s2  ;;  %s9373_s17 = sld [smem:[#allocation2 + $0x19]]  ;;  %s9381_s19 = sld [smem:[#allocation2 + $0x1b]] }
 0x36a   :  { %v3525_v7 = vadd.f32 %v5497_v55, %v3485_v51  ;;  %v5521_v22 = vpop.f32.mrb[79].mxu1  ;;  %v3995_v51 = vstv %s9257_s15  ;;  %v2152_v54 = vpop.xlane.xlu0 %2151  ;;  %v3894_v55 = vstv %s9263_s18  ;;  %v4142_v2 = vstv %s9271_s21  ;;  %s9333_s15 = sld [smem:[#allocation2 + $0x27]]  ;;  %s9375_s18 = sld [smem:[#allocation2 + $0x1a]] }
 0x36b   :  { %v4161_v6 = vstv %s9273_s22  ;;  %v4201_v22 = vstv %s9277_s3  ;;  %s9383_s2 = sld [smem:[#allocation2 + $0x8]]  ;;  %s9391_s21 = sld [smem:[#allocation2 + $0xa]] }
 0x36c   :  { %v3565_v10 = vadd.f32 %v5519_v0, %v3525_v7  ;;  %v3953_v0 = vstv %s9269_s20  ;;  %v4181_v7 = vstv %s9275_s23  ;;  %s9389_s20 = sld [smem:[#allocation2 + $0x9]]  ;;  %s9397_s22 = sld [smem:[#allocation2 + $0xb]] }
 0x36d   :  { %s9399_s23 = sld [smem:[#allocation2 + $0x38]]  ;;  %s9401_s3 = sld [smem:[#allocation2 + $0x39]] }
 0x386   :  { %v5539_v12 = vpop.f32.mrb[80].mxu0 }
 0x387   :  { %v5561_v13 = vpop.f32.mrb[80].mxu1  ;;  %v5540_v14 = vpop.f32.mrb[81].mxu0 }
 0x388   :  { %v5541_v15 = vadd.f32 %v5540_v14, %v5539_v12  ;;  %v5562_v23 = vpop.f32.mrb[81].mxu1  ;;  %v5542_v20 = vpop.f32.mrb[82].mxu0  ;;  %v4078_v12 = vstv %s9281_s25  ;;  %v4118_v14 = vstv %s9285_s27  ;;  %s9405_s25 = sld [smem:[#allocation2 + $0x3b]]  ;;  %s9409_s27 = sld [smem:[#allocation2 + $0x29]] }
 0x389   :  { %v5563_v9 = vadd.f32 %v5562_v23, %v5561_v13  ;;  %v5564_v31 = vpop.f32.mrb[82].mxu1  ;;  %v5543_v35 = vpop.f32.mrb[83].mxu0  ;;  %v4098_v13 = vstv %s9283_s26  ;;  %v9337_v23 = vmul.f32 %v3995_v51, %v2152_v54  ;;  %v9339_v20 = vmul.f32 %v4015_v52, %v2152_v54  ;;  %s9407_s26 = sld [smem:[#allocation2 + $0x28]] }
 0x38a   :  { %v3605_v39 = vadd.f32 %v5541_v15, %v3565_v10  ;;  %v5565_v40 = vpop.f32.mrb[83].mxu1  ;;  %v4059_v10 = vstv %s9279_s24  ;;  %v9335_v15 = vmul.f32 %v3976_v50, %v2152_v54  ;;  %v9343_v31 = vmul.f32 %v3894_v55, %v2152_v54  ;;  %s9403_s24 = sld [smem:[#allocation2 + $0x3a]] }
 0x38b   :  { %v9345_v35 = vmul.f32 %v3913_v62, %v2152_v54  ;;  %v9349_v40 = vmul.f32 %v3953_v0, %v2152_v54 }
 0x38c   :  { %v3645_v1 = vadd.f32 %v5563_v9, %v3605_v39  ;;  %v9341_v9 = vmul.f32 %v4035_v53, %v2152_v54  ;;  %v9347_v39 = vmul.f32 %v3933_v63, %v2152_v54 }
 0x3a6   :  { %v5583_v3 = vpop.f32.mrb[84].mxu0 }
 0x3a7   :  { %v5605_v4 = vpop.f32.mrb[84].mxu1  ;;  %v5584_v24 = vpop.f32.mrb[85].mxu0 }
 0x3a8   :  { %v5585_v57 = vadd.f32 %v5584_v24, %v5583_v3  ;;  %v5606_v34 = vpop.f32.mrb[85].mxu1  ;;  %v5586_v56 = vpop.f32.mrb[86].mxu0  ;;  %v9353_v3 = vmul.f32 %v4161_v6, %v2152_v54  ;;  %v9357_v24 = vmul.f32 %v4201_v22, %v2152_v54 }
 0x3a9   :  { %v5607_v32 = vadd.f32 %v5606_v34, %v5605_v4  ;;  %v5608_v58 = vpop.f32.mrb[86].mxu1  ;;  %v5587_v25 = vpop.f32.mrb[87].mxu0  ;;  %v9355_v4 = vmul.f32 %v4181_v7, %v2152_v54  ;;  %v9361_v34 = vmul.f32 %v4078_v12, %v2152_v54  ;;  %v9363_v56 = vmul.f32 %v4098_v13, %v2152_v54 }
 0x3aa   :  { %v3685_v18 = vadd.f32 %v5585_v57, %v3645_v1  ;;  %v5609_v8 = vpop.f32.mrb[87].mxu1  ;;  %v9351_v1 = vmul.f32 %v4142_v2, %v2152_v54  ;;  %v9359_v57 = vmul.f32 %v4059_v10, %v2152_v54  ;;  %v3979_v58 = vstv %s9287_s28  ;;  %s9411_s28 = sld [smem:[#allocation2 + $0x2a]] }
 0x3ab   :  { %v3998_v25 = vstv %s9289_s29  ;;  %v4038_v8 = vstv %s9293_s5  ;;  %s9416_s29 = sld [smem:[#allocation2 + $0x1c]]  ;;  %s9429_s5 = sld [smem:[#allocation2 + $0x1d]] }
 0x3ac   :  { %v3725_v5 = vadd.f32 %v5607_v32, %v3685_v18  ;;  %v9365_v32 = vmul.f32 %v4118_v14, %v2152_v54  ;;  %v4018_v18 = vstv %s9291_s30  ;;  %s9427_s30 = sld [smem:[#allocation2 + $0x2b]] }
 0x3c6   :  { %v5627_v61 = vpop.f32.mrb[88].mxu0 }
 0x3c7   :  { %v5649_v60 = vpop.f32.mrb[88].mxu1  ;;  %v5628_v21 = vpop.f32.mrb[89].mxu0 }
 0x3c8   :  { %v5629_v11 = vadd.f32 %v5628_v21, %v5627_v61  ;;  %v5650_v16 = vpop.f32.mrb[89].mxu1  ;;  %v5630_v17 = vpop.f32.mrb[90].mxu0  ;;  %v3897_v61 = vstv %s9295_s6  ;;  %v3936_v21 = vstv %s9299_s1  ;;  %s9431_s6 = sld [smem:[#allocation2 + $0x1e]]  ;;  %s9447_s1 = sld [smem:[#allocation2 + $0xc]] }
 0x3c9   :  { %v5651_v26 = vadd.f32 %v5650_v16, %v5649_v60  ;;  %v5652_v27 = vpop.f32.mrb[90].mxu1  ;;  %v5631_v59 = vpop.f32.mrb[91].mxu0  ;;  %v3916_v60 = vstv %s9297_s7  ;;  %v4145_v16 = vstv %s9307_s9  ;;  %v4164_v17 = vstv %s9309_s10  ;;  %s9445_s7 = sld [smem:[#allocation2 + $0x1f]]  ;;  %s9463_s9 = sld [smem:[#allocation2 + $0xe]] }
 0x3ca   :  { %v3765_v28 = vadd.f32 %v5629_v11, %v3725_v5  ;;  %v5653_v29 = vpop.f32.mrb[91].mxu1  ;;  %v2732_v5 = vpop.xlane.xlu0 %2731  ;;  %v3956_v11 = vstv %s9301_s8  ;;  %v4204_v27 = vstv %s9317_s12  ;;  %v4062_v59 = vstv %s9323_s13  ;;  %s9461_s8 = sld [smem:[#allocation2 + $0xd]]  ;;  %s9478_s10 = sld [smem:[#allocation2 + $0x44]] }
 0x3cb   :  { %v4101_v29 = vstv %s9330_s0  ;;  %v4063_v50 = vmul.f32 %v4062_v59, %v2732_v5  ;;  %s9485_s12 = sld [smem:[#allocation2 + $0x45]]  ;;  %s9487_s13 = sld [smem:[#allocation2 + $0x46]] }
 0x3cc   :  { %v3805_v30 = vadd.f32 %v5651_v26, %v3765_v28  ;;  %v4184_v26 = vstv %s9315_s11  ;;  %v4081_v28 = vstv %s9325_s14  ;;  %v4102_v52 = vmul.f32 %v4101_v29, %v2732_v5  ;;  %s9483_s11 = sld [smem:[#allocation2 + $0xf]]  ;;  %s9495_s0 = sld [smem:[#allocation2 + $0x40]] }
 0x3cd   :  { %v4082_v51 = vmul.f32 %v4081_v28, %v2732_v5  ;;  %v9466_v14 = vadd.f32 %v4063_v50, %v9359_v57  ;;  %s9493_s14 = sld [smem:[#allocation2 + $0x47]]  ;;  %v4149_v57 = vstv %s9399_s23  ;;  %s9526_s23 = sld [smem:[#allocation2 + $0x2d]] }
 0x3e6   :  { %v5671_v33 = vpop.f32.mrb[92].mxu0 }
 0x3e7   :  { %v5693_v36 = vpop.f32.mrb[92].mxu1  ;;  %v5672_v38 = vpop.f32.mrb[93].mxu0 }
 0x3e8   :  { %v5673_v41 = vadd.f32 %v5672_v38, %v5671_v33  ;;  %v5694_v19 = vpop.f32.mrb[93].mxu1  ;;  %v5674_v42 = vpop.f32.mrb[94].mxu0  ;;  %v3980_v33 = vmul.f32 %v3979_v58, %v2732_v5  ;;  %v4019_v38 = vmul.f32 %v4018_v18, %v2732_v5  ;;  %v4085_v18 = vstv %s9409_s27  ;;  %s9557_s27 = sld [smem:[#allocation2 + $0x49]] }
 0x3e9   :  { %v5695_v43 = vadd.f32 %v5694_v19, %v5693_v36  ;;  %v5696_v44 = vpop.f32.mrb[94].mxu1  ;;  %v5675_v45 = vpop.f32.mrb[95].mxu0  ;;  %v3999_v36 = vmul.f32 %v3998_v25, %v2732_v5  ;;  %v3898_v19 = vmul.f32 %v3897_v61, %v2732_v5  ;;  %v3917_v42 = vmul.f32 %v3916_v60, %v2732_v5 }
 0x3ea   :  { %v3845_v46 = vadd.f32 %v5673_v41, %v3805_v30  ;;  %v5697_v47 = vpop.f32.mrb[95].mxu1  ;;  %v4121_v30 = vstv %s9333_s15  ;;  %v4039_v41 = vmul.f32 %v4038_v8, %v2732_v5  ;;  %v3957_v44 = vmul.f32 %v3956_v11, %v2732_v5  ;;  %s9501_s15 = sld [smem:[#allocation2 + $0x41]] }
 0x3eb   :  { %v4146_v45 = vmul.f32 %v4145_v16, %v2732_v5  ;;  %v4185_v47 = vmul.f32 %v4184_v26, %v2732_v5  ;;  %v4122_v53 = vmul.f32 %v4121_v30, %v2732_v5  ;;  %v9414_v54 = vadd.f32 %v3980_v33, %v9335_v15 }
 0x3ec   :  { %v3885_v48 = vadd.f32 %v5695_v43, %v3845_v46  ;;  %v3937_v43 = vmul.f32 %v3936_v21, %v2732_v5  ;;  %v4165_v46 = vmul.f32 %v4164_v17, %v2732_v5  ;;  %v9419_v55 = vadd.f32 %v3999_v36, %v9337_v23 }
 0x3ed   :  { %v9422_v62 = vadd.f32 %v4019_v38, %v9339_v20  ;;  %v9425_v63 = vadd.f32 %v4039_v41, %v9341_v9  ;;  %v9434_v0 = vadd.f32 %v3898_v19, %v9343_v31  ;;  %v9437_v2 = vadd.f32 %v3917_v42, %v9345_v35  ;;  %v3312_v9 = vpop.xlane.xlu1 %3311 }
 0x3ee   :  { %v9252_v49 = vmax.f32 %v3885_v48, 0.0  ;;  %v4205_v48 = vmul.f32 %v4204_v27, %v2732_v5  ;;  %v9440_v6 = vadd.f32 %v3937_v43, %v9347_v39  ;;  %v9443_v7 = vadd.f32 %v3957_v44, %v9349_v40 }
 0x3ef   :  { %v9450_v22 = vadd.f32 %v4146_v45, %v9351_v1  ;;  %v9453_v10 = vadd.f32 %v4165_v46, %v9353_v3  ;;  %v9456_v12 = vadd.f32 %v4185_v47, %v9355_v4  ;;  %v9469_v15 = vadd.f32 %v4082_v51, %v9361_v34 }
 0x3f0   :  { %3891 = vmax.xlane.f32.xlu1 %v9252_v49  ;;  %v9459_v13 = vadd.f32 %v4205_v48, %v9357_v24  ;;  %v9472_v23 = vadd.f32 %v4102_v52, %v9363_v56  ;;  %v9475_v20 = vadd.f32 %v4122_v53, %v9365_v32  ;;  %v3983_v31 = vstv %s9368_s16  ;;  %s9503_s16 = sld [smem:[#allocation2 + $0x42]] }
 0x3f1   :  { %v4002_v35 = vstv %s9373_s17  ;;  %v4022_v39 = vstv %s9375_s18  ;;  %v4042_v40 = vstv %s9381_s19  ;;  %v3901_v1 = vstv %s9383_s2  ;;  %s9508_s17 = sld [smem:[#allocation2 + $0x43]]  ;;  %s9510_s18 = sld [smem:[#allocation2 + $0x3c]] }
 0x3f2   :  { %v3920_v3 = vstv %s9389_s20  ;;  %v3940_v4 = vstv %s9391_s21  ;;  %v3960_v24 = vstv %s9397_s22  ;;  %v4168_v34 = vstv %s9401_s3  ;;  %s9512_s19 = sld [smem:[#allocation2 + $0x3d]]  ;;  %s9514_s2 = sld [smem:[#allocation2 + $0x3e]] }
 0x3f3   :  { %v4188_v56 = vstv %s9403_s24  ;;  %v4208_v32 = vstv %s9405_s25  ;;  %v3984_v58 = vmul.f32 %v3983_v31, %v3312_v9  ;;  %v4066_v25 = vstv %s9407_s26  ;;  %s9517_s20 = sld [smem:[#allocation2 + $0x3f]]  ;;  %s9519_s21 = sld [smem:[#allocation2 + $0x2c]] }
 0x3f4   :  { %v4105_v8 = vstv %s9411_s28  ;;  %v4003_v5 = vmul.f32 %v4002_v35, %v3312_v9  ;;  %v4023_v61 = vmul.f32 %v4022_v39, %v3312_v9  ;;  %v4043_v60 = vmul.f32 %v4042_v40, %v3312_v9  ;;  %s9524_s22 = sld [smem:[#allocation2 + $0x4c]]  ;;  %s9532_s3 = sld [smem:[#allocation2 + $0x4d]] }
 0x3f5   :  { %v3902_v21 = vmul.f32 %v3901_v1, %v3312_v9  ;;  %v3921_v11 = vmul.f32 %v3920_v3, %v3312_v9  ;;  %v3941_v16 = vmul.f32 %v3940_v4, %v3312_v9  ;;  %v3961_v17 = vmul.f32 %v3960_v24, %v3312_v9  ;;  %s9534_s24 = sld [smem:[#allocation2 + $0x4e]]  ;;  %s9539_s25 = sld [smem:[#allocation2 + $0x4f]] }
 0x3f6   :  { %v4125_v26 = vstv %s9427_s30  ;;  %v4150_v27 = vmul.f32 %v4149_v57, %v3312_v9  ;;  %v4169_v59 = vmul.f32 %v4168_v34, %v3312_v9  ;;  %v4189_v28 = vmul.f32 %v4188_v56, %v3312_v9  ;;  %s9541_s26 = sld [smem:[#allocation2 + $0x48]]  ;;  %s9559_s28 = sld [smem:[#allocation2 + $0x2e]] }
 0x3f7   :  { %v4209_v29 = vmul.f32 %v4208_v32, %v3312_v9  ;;  %v9522_v30 = vadd.f32 %v3984_v58, %v9414_v54  ;;  %v4067_v33 = vmul.f32 %v4066_v25, %v3312_v9  ;;  %v4086_v36 = vmul.f32 %v4085_v18, %v3312_v9  ;;  %s9626_s30 = sld [smem:[#allocation2 + $0x4a]] }
 0x3f8   :  { %v4106_v38 = vmul.f32 %v4105_v8, %v3312_v9  ;;  %v4004_v41 = vadd.f32 %v4003_v5, %v9419_v55  ;;  %v4024_v19 = vadd.f32 %v4023_v61, %v9422_v62  ;;  %v4044_v42 = vadd.f32 %v4043_v60, %v9425_v63 }
 0x3f9   :  { %v3903_v43 = vadd.f32 %v3902_v21, %v9434_v0  ;;  %v3922_v44 = vadd.f32 %v3921_v11, %v9437_v2  ;;  %v3942_v45 = vadd.f32 %v3941_v16, %v9440_v6  ;;  %v3962_v46 = vadd.f32 %v3961_v17, %v9443_v7 }
 0x3fa   :  { %v9543_v47 = vmul.f32 %v4125_v26, %v3312_v9  ;;  %v9546_v48 = vadd.f32 %v4150_v27, %v9450_v22  ;;  %v9549_v50 = vadd.f32 %v4169_v59, %v9453_v10  ;;  %v9552_v51 = vadd.f32 %v4189_v28, %v9456_v12 }
 0x3fb   :  { %v9555_v52 = vadd.f32 %v4209_v29, %v9459_v13  ;;  %v3987_v53 = vstv %s9416_s29  ;;  %v9563_v54 = vadd.f32 %v4067_v33, %v9466_v14  ;;  %v9566_v55 = vadd.f32 %v4086_v36, %v9469_v15  ;;  %s9610_s29 = sld [smem:[#allocation2 + $0x2f]] }
 0x3fc   :  { %v9569_v62 = vadd.f32 %v4106_v38, %v9472_v23  ;;  %v4006_v63 = vstv %s9429_s5  ;;  %v4026_v0 = vstv %s9431_s6  ;;  %v4046_v2 = vstv %s9445_s7  ;;  %s9628_s5 = sld [smem:[#allocation2 + $0x4b]] }
 0x3fd   :  { %v3905_v6 = vstv %s9447_s1  ;;  %v3991_v7 = vstv %s9478_s10  ;;  %v3924_v22 = vstv %s9461_s8  ;;  %v3944_v10 = vstv %s9463_s9 }
 0x3fe   :  { %10174 = vst [vmem:[#allocation31_spill] sm:$0xff] %v9569_v62  ;;  %v3964_v12 = vstv %s9483_s11  ;;  %v4010_v13 = vstv %s9485_s12  ;;  %v4030_v14 = vstv %s9487_s13  ;;  %v4050_v15 = vstv %s9493_s14 }
 0x3ff   :  { %v3909_v23 = vstv %s9495_s0  ;;  %v3928_v9 = vstv %s9501_s15  ;;  %v3948_v31 = vstv %s9503_s16  ;;  %v3968_v35 = vstv %s9508_s17 }
 0x400   :  { %v4153_v39 = vstv %s9510_s18  ;;  %v4172_v40 = vstv %s9512_s19  ;;  %v4192_v1 = vstv %s9514_s2  ;;  %v4212_v3 = vstv %s9517_s20 }
 0x401   :  { %v4070_v4 = vstv %s9519_s21  ;;  %v4157_v24 = vstv %s9524_s22  ;;  %v4176_v57 = vstv %s9532_s3  ;;  %v4196_v34 = vstv %s9534_s24 }
 0x402   :  { %v4089_v56 = vstv %s9526_s23  ;;  %v4074_v25 = vstv %s9541_s26  ;;  %v4093_v18 = vstv %s9557_s27 }
 0x47d   :  { %v9595_v32 = vpop.xlane.xlu1 %3891 }
 0x47e   :  { %v3988_v5 = vmul.f32 %v3987_v53, %v9595_v32  ;;  %v4007_v61 = vmul.f32 %v4006_v63, %v9595_v32  ;;  %v4027_v60 = vmul.f32 %v4026_v0, %v9595_v32  ;;  %v4047_v21 = vmul.f32 %v4046_v2, %v9595_v32 }
 0x47f   :  { %v3906_v11 = vmul.f32 %v3905_v6, %v9595_v32  ;;  %v3925_v16 = vmul.f32 %v3924_v22, %v9595_v32  ;;  %v3945_v17 = vmul.f32 %v3944_v10, %v9595_v32  ;;  %v3965_v26 = vmul.f32 %v3964_v12, %v9595_v32  ;;  %v10175_v10 = vld [vmem:[#allocation5_spill] sm:$0xff] }
 0x480   :  { %v3989_v27 = vadd.f32 %v3988_v5, %v9522_v30  ;;  %v4008_v59 = vadd.f32 %v4007_v61, %v4004_v41  ;;  %v4028_v28 = vadd.f32 %v4027_v60, %v4024_v19  ;;  %v4048_v29 = vadd.f32 %v4047_v21, %v4044_v42  ;;  %v10176_v30 = vld [vmem:[#allocation29_spill] sm:$0xff] }
 0x481   :  { %v3907_v33 = vadd.f32 %v3906_v11, %v3903_v43  ;;  %v3926_v36 = vadd.f32 %v3925_v16, %v3922_v44  ;;  %v3946_v38 = vadd.f32 %v3945_v17, %v3942_v45  ;;  %v3966_v53 = vadd.f32 %v3965_v26, %v3962_v46 }
 0x482   :  { %v3992_v63 = vadd.f32 %v3991_v7, %v3989_v27  ;;  %v4011_v0 = vadd.f32 %v4010_v13, %v4008_v59  ;;  %v4031_v2 = vadd.f32 %v4030_v14, %v4028_v28  ;;  %v4051_v8 = vadd.f32 %v4050_v15, %v4048_v29 }
 0x483   :  { %v3910_v6 = vadd.f32 %v3909_v23, %v3907_v33  ;;  %v3929_v58 = vadd.f32 %v3928_v9, %v3926_v36  ;;  %v3949_v22 = vadd.f32 %v3948_v31, %v3946_v38  ;;  %v3969_v62 = vadd.f32 %v3968_v35, %v3966_v53  ;;  %v10179_v38 = vld [vmem:[#allocation31_spill] sm:$0xff] }
 0x484   :  { %v3993_v12 = vmul.f32 %v3992_v63, %v10175_v10  ;;  %v4012_v41 = vmul.f32 %v4011_v0, %v10176_v30  ;;  %v4032_v19 = vmul.f32 %v4031_v2, %v9248_v37  ;;  %v4052_v42 = vmul.f32 %v4051_v8, %v9252_v49 }
 0x485   :  { %v3911_v43 = vmul.f32 %v3910_v6, %v10175_v10  ;;  %v3930_v44 = vmul.f32 %v3929_v58, %v10176_v30  ;;  %v3950_v45 = vmul.f32 %v3949_v22, %v9248_v37  ;;  %v3970_v46 = vmul.f32 %v3969_v62, %v9252_v49 }
 0x486   :  { %v4013_v7 = vadd.f32 %v4012_v41, %v3993_v12  ;;  %v4154_v13 = vmul.f32 %v4153_v39, %v9595_v32  ;;  %v4173_v14 = vmul.f32 %v4172_v40, %v9595_v32  ;;  %v4193_v15 = vmul.f32 %v4192_v1, %v9595_v32 }
 0x487   :  { %v3931_v23 = vadd.f32 %v3930_v44, %v3911_v43  ;;  %v4213_v9 = vmul.f32 %v4212_v3, %v9595_v32  ;;  %v4071_v31 = vmul.f32 %v4070_v4, %v9595_v32  ;;  %v4090_v35 = vmul.f32 %v4089_v56, %v9595_v32 }
 0x488   :  { %v4033_v62 = vadd.f32 %v4032_v19, %v4013_v7  ;;  %v4155_v58 = vadd.f32 %v4154_v13, %v9546_v48  ;;  %v4174_v39 = vadd.f32 %v4173_v14, %v9549_v50  ;;  %v4194_v40 = vadd.f32 %v4193_v15, %v9552_v51 }
 0x489   :  { %v3951_v1 = vadd.f32 %v3950_v45, %v3931_v23  ;;  %v4214_v3 = vadd.f32 %v4213_v9, %v9555_v52  ;;  %v4072_v4 = vadd.f32 %v4071_v31, %v9563_v54  ;;  %v4091_v56 = vadd.f32 %v4090_v35, %v9566_v55 }
 0x48a   :  { %v4053_v8 = vadd.f32 %v4052_v42, %v4033_v62  ;;  %v4158_v5 = vadd.f32 %v4157_v24, %v4155_v58  ;;  %v4177_v61 = vadd.f32 %v4176_v57, %v4174_v39  ;;  %v4197_v60 = vadd.f32 %v4196_v34, %v4194_v40 }
 0x48b   :  { %v3971_v21 = vadd.f32 %v3970_v46, %v3951_v1  ;;  %v4075_v11 = vadd.f32 %v4074_v25, %v4072_v4  ;;  %v4094_v48 = vadd.f32 %v4093_v18, %v4091_v56  ;;  %v4129_v50 = vstv %s9610_s29 }
 0x48c   :  { %v4054_v51 = vmul.f32 %v4053_v8, %v4053_v8  ;;  %v4159_v16 = vmul.f32 %v4158_v5, %v10175_v10  ;;  %v4178_v52 = vmul.f32 %v4177_v61, %v10176_v30  ;;  %v10177_v17 = vstv %s9539_s25 }
 0x48d   :  { %v4217_v54 = vadd.f32 %v10177_v17, %v4214_v3  ;;  %v3972_v26 = vmul.f32 %v3971_v21, %v3971_v21  ;;  %v4198_v55 = vmul.f32 %v4197_v60, %v9248_v37  ;;  %v4076_v24 = vmul.f32 %v4075_v11, %v10175_v10 }
 0x48e   :  { %v4127_v57 = vadd.f32 %v9543_v47, %v9475_v20  ;;  %4055 = vadd.xlane.f32.xlu1 %v4054_v51  ;;  %v4179_v34 = vadd.f32 %v4178_v52, %v4159_v16  ;;  %v4095_v25 = vmul.f32 %v4094_v48, %v10176_v30  ;;  %v10178_v18 = vstv %s9559_s28 }
 0x48f   :  { %v4110_v27 = vmul.f32 %v10178_v18, %v9595_v32  ;;  %v4130_v59 = vmul.f32 %v4129_v50, %v9595_v32  ;;  %3973 = vadd.xlane.f32.xlu0 %v3972_v26  ;;  %v4113_v28 = vstv %s9626_s30  ;;  %v4133_v29 = vstv %s9628_s5 }
 0x490   :  { %v4199_v33 = vadd.f32 %v4198_v55, %v4179_v34  ;;  %v4218_v36 = vmul.f32 %v4217_v54, %v9252_v49  ;;  %v4096_v20 = vadd.f32 %v4095_v25, %v4076_v24 }
 0x491   :  { %v4111_v53 = vadd.f32 %v4110_v27, %v10179_v38  ;;  %v4131_v63 = vadd.f32 %v4130_v59, %v4127_v57 }
 0x492   :  { %v4219_v0 = vadd.f32 %v4218_v36, %v4199_v33 }
 0x493   :  { %v4114_v47 = vadd.f32 %v4113_v28, %v4111_v53  ;;  %v4134_v2 = vadd.f32 %v4133_v29, %v4131_v63 }
 0x494   :  { %v4220_v6 = vmul.f32 %v4219_v0, %v4219_v0 }
 0x495   :  { %v4115_v22 = vmul.f32 %v4114_v47, %v9248_v37  ;;  %v4135_v32 = vmul.f32 %v4134_v2, %v9252_v49 }
 0x496   :  { %4221 = vadd.xlane.f32.xlu1 %v4220_v6 }
 0x497   :  { %v4116_v10 = vadd.f32 %v4115_v22, %v4096_v20 }
 0x499   :  { %v4136_v12 = vadd.f32 %v4135_v32, %v4116_v10 }
 0x49b   :  { %v4137_v30 = vmul.f32 %v4136_v12, %v4136_v12 }
 0x49d   :  { %4138 = vadd.xlane.f32.xlu0 %v4137_v30 }
 0x51b   :  { %v4056_v19 = vpop.xlane.xlu1 %4055 }
 0x51c   :  { %v3974_v41 = vpop.xlane.xlu0 %3973 }
 0x51d   :  { %v4057_v42 = vadd.f32 %v4056_v19, %v3974_v41 }
 0x523   :  { %v4222_v45 = vpop.xlane.xlu1 %4221 }
 0x52a   :  { %v4139_v43 = vpop.xlane.xlu0 %4138 }
 0x52b   :  { %v4140_v44 = vadd.f32 %v4139_v43, %v4057_v42 }
 0x52d   :  { %v4223_v46 = vadd.f32 %v4222_v45, %v4140_v44 }
 0x52f   :  { %v4224_v7 = vmax.f32 %v4223_v46, 1e-24 }
 0x531   :  { %5988 = vrsqrt.f32 %v4224_v7 }
 0x53b   :  { %v5989_v13 = vpop.eup %5988 }
 0x53c   :  { %v4226_v14 = vmul.f32 %v5989_v13, %v3971_v21  ;;  %v4228_v15 = vmul.f32 %v5989_v13, %v4053_v8  ;;  %v4230_v37 = vmul.f32 %v5989_v13, %v4136_v12  ;;  %v4232_v23 = vmul.f32 %v5989_v13, %v4219_v0 }
 0x53e   :  { %4227 = vst [vmem:[%s9672_s4] sm:$0xff] %v4226_v14  ;;  %4229 = vst [vmem:[%s9672_s4 + $0x8] sm:$0xff] %v4228_v15 }
 0x53f   :  { %4231 = vst [vmem:[%s9672_s4 + $0x10] sm:$0xff] %v4230_v37  ;;  %4233 = vst [vmem:[%s9672_s4 + $0x18] sm:$0xff] %v4232_v23 }
 0x540   :  { %4238 = vsyncpa [#allocation3], 1 }

</bundles_post_ra>
